<compile_context>
chip_gen: v7x
topology: tpu7x:2x2x1
jax: 0.10.0
libtpu: 0.0.40
codegen_flags: <defaults>
</compile_context>

<pallas_src>
import functools
import math

import jax
import jax.numpy as jnp
from jax import lax
from jax.experimental import pallas as pl
from jax.experimental.pallas import tpu as pltpu


def _layer_configs(cin0: int, base_c: int, H: int, W: int):
    """Static per-layer dimensions for the 4-conv encoder."""
    defs = [
        (cin0, base_c, 2, False),       # conv1 (no activation)
        (base_c, base_c, 1, True),      # conv2 + GELU
        (base_c, 2 * base_c, 2, True),  # conv3 + GELU
        (2 * base_c, 2 * base_c, 2, True),  # conv4 + GELU
    ]
    cfgs = []
    h, w = H, W
    for cin, cout, s, gelu in defs:
        ho = (h - 1) // s + 1   # 3x3 conv, padding=1
        wo = (w - 1) // s + 1
        cfgs.append(dict(Cin=cin, Cout=cout, stride=s, gelu=gelu,
                         Hin=h, Win=w, Hout=ho, Wout=wo,
                         M=ho * wo, K=9 * cin))
        h, w = ho, wo
    return cfgs


# ----------------------------------------------------------------------------
# Fully fused encoder kernel: one grid step == one image of the batch.
# Activations are kept as 2D (H*W, C) VMEM buffers (spatial rows on sublanes,
# channels on lanes); padded copies carry the conv halo.
# ----------------------------------------------------------------------------
def _encoder_kernel(x_ref, *refs, cfgs):
    n_layers = len(cfgs)
    wb_refs = refs[:2 * n_layers]
    out_ref = refs[2 * n_layers]
    scratch = refs[2 * n_layers + 1:]
    pad_refs = scratch[:n_layers]                 # zero-padded layer inputs
    patch_refs = scratch[n_layers:2 * n_layers]   # im2col patch matrices
    act_refs = scratch[2 * n_layers:]             # inter-layer activations

    # Zero the padded buffers (only the 1-pixel borders really need it, but a
    # full clear is a handful of stores).  Done every grid step so the kernel
    # is safe when the "parallel" grid axis is split across TensorCores.
    for p in pad_refs:
        p[...] = jnp.zeros(p.shape, p.dtype)

    # Scatter the input image (rows = y*W + x, channels on lanes) into the
    # first zero-padded buffer.
    c0 = cfgs[0]
    wp0 = c0["Win"] + 2
    for y in range(c0["Hin"]):
        dst = (y + 1) * wp0 + 1
        pad_refs[0][dst:dst + c0["Win"], :] = \
            x_ref[y * c0["Win"]:(y + 1) * c0["Win"], :]

    for li, cfg in enumerate(cfgs):
        cin, cout = cfg["Cin"], cfg["Cout"]
        ho, wo, s = cfg["Hout"], cfg["Wout"], cfg["stride"]
        wp = cfg["Win"] + 2
        pad_ref = pad_refs[li]
        patch_ref = patch_refs[li]
        w_ref = wb_refs[2 * li]
        b_ref = wb_refs[2 * li + 1]

        # ---- in-VMEM im2col: build the (Ho*Wo, 9*Cin) patch matrix ---------
        # For a fixed output row oy and tap (ki, kj) the needed input pixels
        # are a (strided) run of rows of the padded 2D buffer.
        for oy in range(ho):
            for ki in range(3):
                base = (oy * s + ki) * wp
                for kj in range(3):
                    tap = ki * 3 + kj
                    if s == 1:
                        rows = pl.ds(base + kj, wo)
                    else:
                        rows = pl.ds(base + kj, wo, stride=s)
                    patch_ref[oy * wo:(oy + 1) * wo,
                              tap * cin:(tap + 1) * cin] = pad_ref[rows, :]

        # ---- one MXU matmul per layer; bias + exact GELU fused epilogue ----
        acc = jnp.dot(patch_ref[...], w_ref[...],
                      preferred_element_type=jnp.float32)
        acc = acc + b_ref[...]                       # (1, Cout) broadcast
        if cfg["gelu"]:
            # Exact GELU (PyTorch nn.GELU default): 0.5*x*(1+erf(x/sqrt(2)))
            acc = 0.5 * acc * (1.0 + lax.erf(acc * jnp.float32(0.7071067811865476)))

        if li == n_layers - 1:
            out_ref[...] = acc.astype(out_ref.dtype)
        else:
            act_ref = act_refs[li]
            act_ref[...] = acc
            # Scatter into the next layer's zero-padded buffer (per output row).
            wp_next = wo + 2
            for oy in range(ho):
                dst = (oy + 1) * wp_next + 1
                pad_refs[li + 1][dst:dst + wo, :] = \
                    act_ref[oy * wo:(oy + 1) * wo, :]


# ----------------------------------------------------------------------------
# Wrapper: layout plumbing only (NCHW <-> internal 2D layout).
# ----------------------------------------------------------------------------
def encoder_forward(x_nchw, params):
    x = x_nchw.astype(jnp.float32)
    N, Cin, H, W = x.shape
    base_c = params["w1"].shape[-1]
    cfgs = _layer_configs(Cin, base_c, H, W)
    last = cfgs[-1]

    # NCHW -> (N, H*W, Cin): spatial rows (y-major) on sublanes, channels on lanes.
    x2d = jnp.transpose(x, (0, 2, 3, 1)).reshape(N, H * W, Cin)

    flat_wb = []
    for i, cfg in enumerate(cfgs, start=1):
        flat_wb.append(params[f"w{i}"].reshape(cfg["K"], cfg["Cout"]).astype(jnp.float32))
        flat_wb.append(params[f"b{i}"].reshape(1, cfg["Cout"]).astype(jnp.float32))

    in_specs = [pl.BlockSpec((None, H * W, Cin), lambda n: (n, 0, 0))]
    for arr in flat_wb:   # resident full-extent weight / bias blocks
        in_specs.append(pl.BlockSpec(arr.shape, lambda n: (0, 0)))

    scratch_shapes = []
    for cfg in cfgs:       # zero-padded layer inputs: ((H+2)*(W+2), Cin)
        scratch_shapes.append(
            pltpu.VMEM(((cfg["Hin"] + 2) * (cfg["Win"] + 2), cfg["Cin"]), jnp.float32))
    for cfg in cfgs:       # im2col patch matrices: (Ho*Wo, 9*Cin)
        scratch_shapes.append(pltpu.VMEM((cfg["M"], cfg["K"]), jnp.float32))
    for cfg in cfgs[:-1]:  # inter-layer activations: (Ho*Wo, Cout)
        scratch_shapes.append(pltpu.VMEM((cfg["M"], cfg["Cout"]), jnp.float32))

    flops = 2 * N * sum(cfg["M"] * cfg["K"] * cfg["Cout"] for cfg in cfgs)
    transcendentals = N * sum(cfg["M"] * cfg["Cout"] for cfg in cfgs if cfg["gelu"])
    bytes_accessed = 4 * (x2d.size + sum(a.size for a in flat_wb)
                          + N * last["M"] * last["Cout"])

    out3 = pl.pallas_call(
        functools.partial(_encoder_kernel, cfgs=cfgs),
        out_shape=jax.ShapeDtypeStruct((N, last["M"], last["Cout"]), jnp.float32),
        grid=(N,),
        in_specs=in_specs,
        out_specs=pl.BlockSpec((None, last["M"], last["Cout"]), lambda n: (n, 0, 0)),
        scratch_shapes=scratch_shapes,
        compiler_params=pltpu.CompilerParams(dimension_semantics=("parallel",)),
        cost_estimate=pl.CostEstimate(flops=flops,
                                      transcendentals=transcendentals,
                                      bytes_accessed=bytes_accessed),
    )(x2d, *flat_wb)

    # (N, Ho*Wo, Cout) -> NCHW
    out = out3.reshape(N, last["Hout"], last["Wout"], last["Cout"])
    return jnp.transpose(out, (0, 3, 1, 2))


def init_params(key, num_input_channels: int, base_channel_size: int):
    """Deterministic init mimicking PyTorch Conv2d default (uniform +/- 1/sqrt(fan_in))."""
    c = base_channel_size
    layer_defs = [
        (num_input_channels, c),
        (c, c),
        (c, 2 * c),
        (2 * c, 2 * c),
    ]
    params = {}
    for idx, (cin, cout) in enumerate(layer_defs, start=1):
        key, kw, kb = jax.random.split(key, 3)
        fan_in = cin * 9
        bound = 1.0 / math.sqrt(fan_in)
        params[f"w{idx}"] = jax.random.uniform(
            kw, (3, 3, cin, cout), jnp.float32, -bound, bound)
        params[f"b{idx}"] = jax.random.uniform(
            kb, (cout,), jnp.float32, -bound, bound)
    return params


# ----------------------------------------------------------------------------
# Pure-JAX reference (lax.conv) for a correctness check
# ----------------------------------------------------------------------------
def encoder_reference(x_nchw, params):
    x = x_nchw.astype(jnp.float32)
    defs = [("w1", "b1", 2, False), ("w2", "b2", 1, True),
            ("w3", "b3", 2, True), ("w4", "b4", 2, True)]
    for wname, bname, stride, act in defs:
        w = params[wname]  # (kh, kw, Cin, Cout)
        w_oihw = jnp.transpose(w, (3, 2, 0, 1))
        x = lax.conv_general_dilated(
            x, w_oihw, window_strides=(stride, stride), padding=((1, 1), (1, 1)),
            dimension_numbers=("NCHW", "OIHW", "NCHW"),
            precision=lax.Precision.HIGHEST)
        x = x + params[bname][None, :, None, None]
        if act:
            x = jax.nn.gelu(x, approximate=False)
    return x


if __name__ == "__main__":
    key = jax.random.PRNGKey(0)
    k_in, k_par = jax.random.split(key)

    N, Cin, H, W = 2, 4, 16, 16
    c_hid = 16

    x = jax.random.normal(k_in, (N, Cin, H, W), jnp.float32)
    params = init_params(k_par, Cin, c_hid)

    out = jax.jit(encoder_forward)(x, params)
    out = jax.block_until_ready(out)

    assert out.shape == (N, 2 * c_hid, H // 8, W // 8), out.shape

    ref = jax.block_until_ready(encoder_reference(x, params))
    assert jnp.allclose(out, ref, atol=2e-3, rtol=2e-3), float(jnp.max(jnp.abs(out - ref)))

    print("KERNEL_OK")
</pallas_src>

<mosaic_0001>
module attributes {stable_mosaic.version = 11 : i64} {
  func.func @_encoder_kernel(%arg0: i32, %arg1: memref<1x256x4xf32, #tpu.memory_space<vmem>>, %arg2: memref<36x16xf32, #tpu.memory_space<vmem>>, %arg3: memref<1x16xf32, #tpu.memory_space<vmem>>, %arg4: memref<144x16xf32, #tpu.memory_space<vmem>>, %arg5: memref<1x16xf32, #tpu.memory_space<vmem>>, %arg6: memref<144x32xf32, #tpu.memory_space<vmem>>, %arg7: memref<1x32xf32, #tpu.memory_space<vmem>>, %arg8: memref<288x32xf32, #tpu.memory_space<vmem>>, %arg9: memref<1x32xf32, #tpu.memory_space<vmem>>, %arg10: memref<1x4x32xf32, #tpu.memory_space<vmem>>, %arg11: memref<324x4xf32, #tpu.memory_space<vmem>>, %arg12: memref<100x16xf32, #tpu.memory_space<vmem>>, %arg13: memref<100x16xf32, #tpu.memory_space<vmem>>, %arg14: memref<36x32xf32, #tpu.memory_space<vmem>>, %arg15: memref<64x36xf32, #tpu.memory_space<vmem>>, %arg16: memref<64x144xf32, #tpu.memory_space<vmem>>, %arg17: memref<16x144xf32, #tpu.memory_space<vmem>>, %arg18: memref<4x288xf32, #tpu.memory_space<vmem>>, %arg19: memref<64x16xf32, #tpu.memory_space<vmem>>, %arg20: memref<64x16xf32, #tpu.memory_space<vmem>>, %arg21: memref<16x32xf32, #tpu.memory_space<vmem>>) attributes {dimension_semantics = [#tpu.dimension_semantics<parallel>], iteration_bounds = array<i64: 2>, scalar_prefetch = 0 : i64, scratch_operands = 11 : i64, tpu.core_type = #tpu.core_type<tc>, window_params = [{transform_indices = @transform_0, window_bounds = array<i64: 1, 256, 4>}, {pipeline_mode = #tpu.pipeline_mode<synchronous>, transform_indices = @transform_1, window_bounds = array<i64: 36, 16>}, {pipeline_mode = #tpu.pipeline_mode<synchronous>, transform_indices = @transform_2, window_bounds = array<i64: 1, 16>}, {pipeline_mode = #tpu.pipeline_mode<synchronous>, transform_indices = @transform_3, window_bounds = array<i64: 144, 16>}, {pipeline_mode = #tpu.pipeline_mode<synchronous>, transform_indices = @transform_4, window_bounds = array<i64: 1, 16>}, {pipeline_mode = #tpu.pipeline_mode<synchronous>, transform_indices = @transform_5, window_bounds = array<i64: 144, 32>}, {pipeline_mode = #tpu.pipeline_mode<synchronous>, transform_indices = @transform_6, window_bounds = array<i64: 1, 32>}, {pipeline_mode = #tpu.pipeline_mode<synchronous>, transform_indices = @transform_7, window_bounds = array<i64: 288, 32>}, {pipeline_mode = #tpu.pipeline_mode<synchronous>, transform_indices = @transform_8, window_bounds = array<i64: 1, 32>}, {transform_indices = @transform_9, window_bounds = array<i64: 1, 4, 32>}]} {
    %cst = arith.constant 0.000000e+00 : f32
    %0 = vector.broadcast %cst : f32 to vector<324x4xf32>
    %c0 = arith.constant 0 : index
    %c0_0 = arith.constant 0 : index
    %1 = vector.load %arg11[%c0, %c0_0] : memref<324x4xf32, #tpu.memory_space<vmem>>, vector<324x4xf32>
    tpu.vector_store %arg11[%c0, %c0_0], %0 {strides = array<i32>} : memref<324x4xf32, #tpu.memory_space<vmem>>, vector<324x4xf32>,
    %cst_1 = arith.constant 0.000000e+00 : f32
    %2 = vector.broadcast %cst_1 : f32 to vector<100x16xf32>
    %c0_2 = arith.constant 0 : index
    %c0_3 = arith.constant 0 : index
    %3 = vector.load %arg12[%c0_2, %c0_3] : memref<100x16xf32, #tpu.memory_space<vmem>>, vector<100x16xf32>
    tpu.vector_store %arg12[%c0_2, %c0_3], %2 {strides = array<i32>} : memref<100x16xf32, #tpu.memory_space<vmem>>, vector<100x16xf32>,
    %cst_4 = arith.constant 0.000000e+00 : f32
    %4 = vector.broadcast %cst_4 : f32 to vector<100x16xf32>
    %c0_5 = arith.constant 0 : index
    %c0_6 = arith.constant 0 : index
    %5 = vector.load %arg13[%c0_5, %c0_6] : memref<100x16xf32, #tpu.memory_space<vmem>>, vector<100x16xf32>
    tpu.vector_store %arg13[%c0_5, %c0_6], %4 {strides = array<i32>} : memref<100x16xf32, #tpu.memory_space<vmem>>, vector<100x16xf32>,
    %cst_7 = arith.constant 0.000000e+00 : f32
    %6 = vector.broadcast %cst_7 : f32 to vector<36x32xf32>
    %c0_8 = arith.constant 0 : index
    %c0_9 = arith.constant 0 : index
    %7 = vector.load %arg14[%c0_8, %c0_9] : memref<36x32xf32, #tpu.memory_space<vmem>>, vector<36x32xf32>
    tpu.vector_store %arg14[%c0_8, %c0_9], %6 {strides = array<i32>} : memref<36x32xf32, #tpu.memory_space<vmem>>, vector<36x32xf32>,
    %c0_10 = arith.constant 0 : index
    %c0_11 = arith.constant 0 : index
    %c0_12 = arith.constant 0 : index
    %8 = vector.load %arg1[%c0_10, %c0_11, %c0_12] : memref<1x256x4xf32, #tpu.memory_space<vmem>>, vector<1x16x4xf32>
    %9 = vector.shape_cast %8 : vector<1x16x4xf32> to vector<16x4xf32>
    %c19 = arith.constant 19 : index
    %c0_13 = arith.constant 0 : index
    %10 = vector.load %arg11[%c19, %c0_13] : memref<324x4xf32, #tpu.memory_space<vmem>>, vector<16x4xf32>
    tpu.vector_store %arg11[%c19, %c0_13], %9 {strides = array<i32>} : memref<324x4xf32, #tpu.memory_space<vmem>>, vector<16x4xf32>,
    %c0_14 = arith.constant 0 : index
    %c16 = arith.constant 16 : index
    %c0_15 = arith.constant 0 : index
    %11 = vector.load %arg1[%c0_14, %c16, %c0_15] : memref<1x256x4xf32, #tpu.memory_space<vmem>>, vector<1x16x4xf32>
    %12 = vector.shape_cast %11 : vector<1x16x4xf32> to vector<16x4xf32>
    %c37 = arith.constant 37 : index
    %c0_16 = arith.constant 0 : index
    %13 = vector.load %arg11[%c37, %c0_16] : memref<324x4xf32, #tpu.memory_space<vmem>>, vector<16x4xf32>
    tpu.vector_store %arg11[%c37, %c0_16], %12 {strides = array<i32>} : memref<324x4xf32, #tpu.memory_space<vmem>>, vector<16x4xf32>,
    %c0_17 = arith.constant 0 : index
    %c32 = arith.constant 32 : index
    %c0_18 = arith.constant 0 : index
    %14 = vector.load %arg1[%c0_17, %c32, %c0_18] : memref<1x256x4xf32, #tpu.memory_space<vmem>>, vector<1x16x4xf32>
    %15 = vector.shape_cast %14 : vector<1x16x4xf32> to vector<16x4xf32>
    %c55 = arith.constant 55 : index
    %c0_19 = arith.constant 0 : index
    %16 = vector.load %arg11[%c55, %c0_19] : memref<324x4xf32, #tpu.memory_space<vmem>>, vector<16x4xf32>
    tpu.vector_store %arg11[%c55, %c0_19], %15 {strides = array<i32>} : memref<324x4xf32, #tpu.memory_space<vmem>>, vector<16x4xf32>,
    %c0_20 = arith.constant 0 : index
    %c48 = arith.constant 48 : index
    %c0_21 = arith.constant 0 : index
    %17 = vector.load %arg1[%c0_20, %c48, %c0_21] : memref<1x256x4xf32, #tpu.memory_space<vmem>>, vector<1x16x4xf32>
    %18 = vector.shape_cast %17 : vector<1x16x4xf32> to vector<16x4xf32>
    %c73 = arith.constant 73 : index
    %c0_22 = arith.constant 0 : index
    %19 = vector.load %arg11[%c73, %c0_22] : memref<324x4xf32, #tpu.memory_space<vmem>>, vector<16x4xf32>
    tpu.vector_store %arg11[%c73, %c0_22], %18 {strides = array<i32>} : memref<324x4xf32, #tpu.memory_space<vmem>>, vector<16x4xf32>,
    %c0_23 = arith.constant 0 : index
    %c64 = arith.constant 64 : index
    %c0_24 = arith.constant 0 : index
    %20 = vector.load %arg1[%c0_23, %c64, %c0_24] : memref<1x256x4xf32, #tpu.memory_space<vmem>>, vector<1x16x4xf32>
    %21 = vector.shape_cast %20 : vector<1x16x4xf32> to vector<16x4xf32>
    %c91 = arith.constant 91 : index
    %c0_25 = arith.constant 0 : index
    %22 = vector.load %arg11[%c91, %c0_25] : memref<324x4xf32, #tpu.memory_space<vmem>>, vector<16x4xf32>
    tpu.vector_store %arg11[%c91, %c0_25], %21 {strides = array<i32>} : memref<324x4xf32, #tpu.memory_space<vmem>>, vector<16x4xf32>,
    %c0_26 = arith.constant 0 : index
    %c80 = arith.constant 80 : index
    %c0_27 = arith.constant 0 : index
    %23 = vector.load %arg1[%c0_26, %c80, %c0_27] : memref<1x256x4xf32, #tpu.memory_space<vmem>>, vector<1x16x4xf32>
    %24 = vector.shape_cast %23 : vector<1x16x4xf32> to vector<16x4xf32>
    %c109 = arith.constant 109 : index
    %c0_28 = arith.constant 0 : index
    %25 = vector.load %arg11[%c109, %c0_28] : memref<324x4xf32, #tpu.memory_space<vmem>>, vector<16x4xf32>
    tpu.vector_store %arg11[%c109, %c0_28], %24 {strides = array<i32>} : memref<324x4xf32, #tpu.memory_space<vmem>>, vector<16x4xf32>,
    %c0_29 = arith.constant 0 : index
    %c96 = arith.constant 96 : index
    %c0_30 = arith.constant 0 : index
    %26 = vector.load %arg1[%c0_29, %c96, %c0_30] : memref<1x256x4xf32, #tpu.memory_space<vmem>>, vector<1x16x4xf32>
    %27 = vector.shape_cast %26 : vector<1x16x4xf32> to vector<16x4xf32>
    %c127 = arith.constant 127 : index
    %c0_31 = arith.constant 0 : index
    %28 = vector.load %arg11[%c127, %c0_31] : memref<324x4xf32, #tpu.memory_space<vmem>>, vector<16x4xf32>
    tpu.vector_store %arg11[%c127, %c0_31], %27 {strides = array<i32>} : memref<324x4xf32, #tpu.memory_space<vmem>>, vector<16x4xf32>,
    %c0_32 = arith.constant 0 : index
    %c112 = arith.constant 112 : index
    %c0_33 = arith.constant 0 : index
    %29 = vector.load %arg1[%c0_32, %c112, %c0_33] : memref<1x256x4xf32, #tpu.memory_space<vmem>>, vector<1x16x4xf32>
    %30 = vector.shape_cast %29 : vector<1x16x4xf32> to vector<16x4xf32>
    %c145 = arith.constant 145 : index
    %c0_34 = arith.constant 0 : index
    %31 = vector.load %arg11[%c145, %c0_34] : memref<324x4xf32, #tpu.memory_space<vmem>>, vector<16x4xf32>
    tpu.vector_store %arg11[%c145, %c0_34], %30 {strides = array<i32>} : memref<324x4xf32, #tpu.memory_space<vmem>>, vector<16x4xf32>,
    %c0_35 = arith.constant 0 : index
    %c128 = arith.constant 128 : index
    %c0_36 = arith.constant 0 : index
    %32 = vector.load %arg1[%c0_35, %c128, %c0_36] : memref<1x256x4xf32, #tpu.memory_space<vmem>>, vector<1x16x4xf32>
    %33 = vector.shape_cast %32 : vector<1x16x4xf32> to vector<16x4xf32>
    %c163 = arith.constant 163 : index
    %c0_37 = arith.constant 0 : index
    %34 = vector.load %arg11[%c163, %c0_37] : memref<324x4xf32, #tpu.memory_space<vmem>>, vector<16x4xf32>
    tpu.vector_store %arg11[%c163, %c0_37], %33 {strides = array<i32>} : memref<324x4xf32, #tpu.memory_space<vmem>>, vector<16x4xf32>,
    %c0_38 = arith.constant 0 : index
    %c144 = arith.constant 144 : index
    %c0_39 = arith.constant 0 : index
    %35 = vector.load %arg1[%c0_38, %c144, %c0_39] : memref<1x256x4xf32, #tpu.memory_space<vmem>>, vector<1x16x4xf32>
    %36 = vector.shape_cast %35 : vector<1x16x4xf32> to vector<16x4xf32>
    %c181 = arith.constant 181 : index
    %c0_40 = arith.constant 0 : index
    %37 = vector.load %arg11[%c181, %c0_40] : memref<324x4xf32, #tpu.memory_space<vmem>>, vector<16x4xf32>
    tpu.vector_store %arg11[%c181, %c0_40], %36 {strides = array<i32>} : memref<324x4xf32, #tpu.memory_space<vmem>>, vector<16x4xf32>,
    %c0_41 = arith.constant 0 : index
    %c160 = arith.constant 160 : index
    %c0_42 = arith.constant 0 : index
    %38 = vector.load %arg1[%c0_41, %c160, %c0_42] : memref<1x256x4xf32, #tpu.memory_space<vmem>>, vector<1x16x4xf32>
    %39 = vector.shape_cast %38 : vector<1x16x4xf32> to vector<16x4xf32>
    %c199 = arith.constant 199 : index
    %c0_43 = arith.constant 0 : index
    %40 = vector.load %arg11[%c199, %c0_43] : memref<324x4xf32, #tpu.memory_space<vmem>>, vector<16x4xf32>
    tpu.vector_store %arg11[%c199, %c0_43], %39 {strides = array<i32>} : memref<324x4xf32, #tpu.memory_space<vmem>>, vector<16x4xf32>,
    %c0_44 = arith.constant 0 : index
    %c176 = arith.constant 176 : index
    %c0_45 = arith.constant 0 : index
    %41 = vector.load %arg1[%c0_44, %c176, %c0_45] : memref<1x256x4xf32, #tpu.memory_space<vmem>>, vector<1x16x4xf32>
    %42 = vector.shape_cast %41 : vector<1x16x4xf32> to vector<16x4xf32>
    %c217 = arith.constant 217 : index
    %c0_46 = arith.constant 0 : index
    %43 = vector.load %arg11[%c217, %c0_46] : memref<324x4xf32, #tpu.memory_space<vmem>>, vector<16x4xf32>
    tpu.vector_store %arg11[%c217, %c0_46], %42 {strides = array<i32>} : memref<324x4xf32, #tpu.memory_space<vmem>>, vector<16x4xf32>,
    %c0_47 = arith.constant 0 : index
    %c192 = arith.constant 192 : index
    %c0_48 = arith.constant 0 : index
    %44 = vector.load %arg1[%c0_47, %c192, %c0_48] : memref<1x256x4xf32, #tpu.memory_space<vmem>>, vector<1x16x4xf32>
    %45 = vector.shape_cast %44 : vector<1x16x4xf32> to vector<16x4xf32>
    %c235 = arith.constant 235 : index
    %c0_49 = arith.constant 0 : index
    %46 = vector.load %arg11[%c235, %c0_49] : memref<324x4xf32, #tpu.memory_space<vmem>>, vector<16x4xf32>
    tpu.vector_store %arg11[%c235, %c0_49], %45 {strides = array<i32>} : memref<324x4xf32, #tpu.memory_space<vmem>>, vector<16x4xf32>,
    %c0_50 = arith.constant 0 : index
    %c208 = arith.constant 208 : index
    %c0_51 = arith.constant 0 : index
    %47 = vector.load %arg1[%c0_50, %c208, %c0_51] : memref<1x256x4xf32, #tpu.memory_space<vmem>>, vector<1x16x4xf32>
    %48 = vector.shape_cast %47 : vector<1x16x4xf32> to vector<16x4xf32>
    %c253 = arith.constant 253 : index
    %c0_52 = arith.constant 0 : index
    %49 = vector.load %arg11[%c253, %c0_52] : memref<324x4xf32, #tpu.memory_space<vmem>>, vector<16x4xf32>
    tpu.vector_store %arg11[%c253, %c0_52], %48 {strides = array<i32>} : memref<324x4xf32, #tpu.memory_space<vmem>>, vector<16x4xf32>,
    %c0_53 = arith.constant 0 : index
    %c224 = arith.constant 224 : index
    %c0_54 = arith.constant 0 : index
    %50 = vector.load %arg1[%c0_53, %c224, %c0_54] : memref<1x256x4xf32, #tpu.memory_space<vmem>>, vector<1x16x4xf32>
    %51 = vector.shape_cast %50 : vector<1x16x4xf32> to vector<16x4xf32>
    %c271 = arith.constant 271 : index
    %c0_55 = arith.constant 0 : index
    %52 = vector.load %arg11[%c271, %c0_55] : memref<324x4xf32, #tpu.memory_space<vmem>>, vector<16x4xf32>
    tpu.vector_store %arg11[%c271, %c0_55], %51 {strides = array<i32>} : memref<324x4xf32, #tpu.memory_space<vmem>>, vector<16x4xf32>,
    %c0_56 = arith.constant 0 : index
    %c240 = arith.constant 240 : index
    %c0_57 = arith.constant 0 : index
    %53 = vector.load %arg1[%c0_56, %c240, %c0_57] : memref<1x256x4xf32, #tpu.memory_space<vmem>>, vector<1x16x4xf32>
    %54 = vector.shape_cast %53 : vector<1x16x4xf32> to vector<16x4xf32>
    %c289 = arith.constant 289 : index
    %c0_58 = arith.constant 0 : index
    %55 = vector.load %arg11[%c289, %c0_58] : memref<324x4xf32, #tpu.memory_space<vmem>>, vector<16x4xf32>
    tpu.vector_store %arg11[%c289, %c0_58], %54 {strides = array<i32>} : memref<324x4xf32, #tpu.memory_space<vmem>>, vector<16x4xf32>,
    %c0_59 = arith.constant 0 : index
    %c0_60 = arith.constant 0 : index
    %56 = tpu.strided_load %arg11[%c0_59, %c0_60] {strides = array<i32: 2, 1>} : memref<324x4xf32, #tpu.memory_space<vmem>>, vector<8x4xf32>
    %c0_61 = arith.constant 0 : index
    %c0_62 = arith.constant 0 : index
    %57 = vector.load %arg15[%c0_61, %c0_62] : memref<64x36xf32, #tpu.memory_space<vmem>>, vector<8x4xf32>
    tpu.vector_store %arg15[%c0_61, %c0_62], %56 {strides = array<i32>} : memref<64x36xf32, #tpu.memory_space<vmem>>, vector<8x4xf32>,
    %c1 = arith.constant 1 : index
    %c0_63 = arith.constant 0 : index
    %58 = tpu.strided_load %arg11[%c1, %c0_63] {strides = array<i32: 2, 1>} : memref<324x4xf32, #tpu.memory_space<vmem>>, vector<8x4xf32>
    %c0_64 = arith.constant 0 : index
    %c4 = arith.constant 4 : index
    %59 = vector.load %arg15[%c0_64, %c4] : memref<64x36xf32, #tpu.memory_space<vmem>>, vector<8x4xf32>
    tpu.vector_store %arg15[%c0_64, %c4], %58 {strides = array<i32>} : memref<64x36xf32, #tpu.memory_space<vmem>>, vector<8x4xf32>,
    %c2 = arith.constant 2 : index
    %c0_65 = arith.constant 0 : index
    %60 = tpu.strided_load %arg11[%c2, %c0_65] {strides = array<i32: 2, 1>} : memref<324x4xf32, #tpu.memory_space<vmem>>, vector<8x4xf32>
    %c0_66 = arith.constant 0 : index
    %c8 = arith.constant 8 : index
    %61 = vector.load %arg15[%c0_66, %c8] : memref<64x36xf32, #tpu.memory_space<vmem>>, vector<8x4xf32>
    tpu.vector_store %arg15[%c0_66, %c8], %60 {strides = array<i32>} : memref<64x36xf32, #tpu.memory_space<vmem>>, vector<8x4xf32>,
    %c18 = arith.constant 18 : index
    %c0_67 = arith.constant 0 : index
    %62 = tpu.strided_load %arg11[%c18, %c0_67] {strides = array<i32: 2, 1>} : memref<324x4xf32, #tpu.memory_space<vmem>>, vector<8x4xf32>
    %c0_68 = arith.constant 0 : index
    %c12 = arith.constant 12 : index
    %63 = vector.load %arg15[%c0_68, %c12] : memref<64x36xf32, #tpu.memory_space<vmem>>, vector<8x4xf32>
    tpu.vector_store %arg15[%c0_68, %c12], %62 {strides = array<i32>} : memref<64x36xf32, #tpu.memory_space<vmem>>, vector<8x4xf32>,
    %c19_69 = arith.constant 19 : index
    %c0_70 = arith.constant 0 : index
    %64 = tpu.strided_load %arg11[%c19_69, %c0_70] {strides = array<i32: 2, 1>} : memref<324x4xf32, #tpu.memory_space<vmem>>, vector<8x4xf32>
    %c0_71 = arith.constant 0 : index
    %c16_72 = arith.constant 16 : index
    %65 = vector.load %arg15[%c0_71, %c16_72] : memref<64x36xf32, #tpu.memory_space<vmem>>, vector<8x4xf32>
    tpu.vector_store %arg15[%c0_71, %c16_72], %64 {strides = array<i32>} : memref<64x36xf32, #tpu.memory_space<vmem>>, vector<8x4xf32>,
    %c20 = arith.constant 20 : index
    %c0_73 = arith.constant 0 : index
    %66 = tpu.strided_load %arg11[%c20, %c0_73] {strides = array<i32: 2, 1>} : memref<324x4xf32, #tpu.memory_space<vmem>>, vector<8x4xf32>
    %c0_74 = arith.constant 0 : index
    %c20_75 = arith.constant 20 : index
    %67 = vector.load %arg15[%c0_74, %c20_75] : memref<64x36xf32, #tpu.memory_space<vmem>>, vector<8x4xf32>
    tpu.vector_store %arg15[%c0_74, %c20_75], %66 {strides = array<i32>} : memref<64x36xf32, #tpu.memory_space<vmem>>, vector<8x4xf32>,
    %c36 = arith.constant 36 : index
    %c0_76 = arith.constant 0 : index
    %68 = tpu.strided_load %arg11[%c36, %c0_76] {strides = array<i32: 2, 1>} : memref<324x4xf32, #tpu.memory_space<vmem>>, vector<8x4xf32>
    %c0_77 = arith.constant 0 : index
    %c24 = arith.constant 24 : index
    %69 = vector.load %arg15[%c0_77, %c24] : memref<64x36xf32, #tpu.memory_space<vmem>>, vector<8x4xf32>
    tpu.vector_store %arg15[%c0_77, %c24], %68 {strides = array<i32>} : memref<64x36xf32, #tpu.memory_space<vmem>>, vector<8x4xf32>,
    %c37_78 = arith.constant 37 : index
    %c0_79 = arith.constant 0 : index
    %70 = tpu.strided_load %arg11[%c37_78, %c0_79] {strides = array<i32: 2, 1>} : memref<324x4xf32, #tpu.memory_space<vmem>>, vector<8x4xf32>
    %c0_80 = arith.constant 0 : index
    %c28 = arith.constant 28 : index
    %71 = vector.load %arg15[%c0_80, %c28] : memref<64x36xf32, #tpu.memory_space<vmem>>, vector<8x4xf32>
    tpu.vector_store %arg15[%c0_80, %c28], %70 {strides = array<i32>} : memref<64x36xf32, #tpu.memory_space<vmem>>, vector<8x4xf32>,
    %c38 = arith.constant 38 : index
    %c0_81 = arith.constant 0 : index
    %72 = tpu.strided_load %arg11[%c38, %c0_81] {strides = array<i32: 2, 1>} : memref<324x4xf32, #tpu.memory_space<vmem>>, vector<8x4xf32>
    %c0_82 = arith.constant 0 : index
    %c32_83 = arith.constant 32 : index
    %73 = vector.load %arg15[%c0_82, %c32_83] : memref<64x36xf32, #tpu.memory_space<vmem>>, vector<8x4xf32>
    tpu.vector_store %arg15[%c0_82, %c32_83], %72 {strides = array<i32>} : memref<64x36xf32, #tpu.memory_space<vmem>>, vector<8x4xf32>,
    %c36_84 = arith.constant 36 : index
    %c0_85 = arith.constant 0 : index
    %74 = tpu.strided_load %arg11[%c36_84, %c0_85] {strides = array<i32: 2, 1>} : memref<324x4xf32, #tpu.memory_space<vmem>>, vector<8x4xf32>
    %c8_86 = arith.constant 8 : index
    %c0_87 = arith.constant 0 : index
    %75 = vector.load %arg15[%c8_86, %c0_87] : memref<64x36xf32, #tpu.memory_space<vmem>>, vector<8x4xf32>
    tpu.vector_store %arg15[%c8_86, %c0_87], %74 {strides = array<i32>} : memref<64x36xf32, #tpu.memory_space<vmem>>, vector<8x4xf32>,
    %c37_88 = arith.constant 37 : index
    %c0_89 = arith.constant 0 : index
    %76 = tpu.strided_load %arg11[%c37_88, %c0_89] {strides = array<i32: 2, 1>} : memref<324x4xf32, #tpu.memory_space<vmem>>, vector<8x4xf32>
    %c8_90 = arith.constant 8 : index
    %c4_91 = arith.constant 4 : index
    %77 = vector.load %arg15[%c8_90, %c4_91] : memref<64x36xf32, #tpu.memory_space<vmem>>, vector<8x4xf32>
    tpu.vector_store %arg15[%c8_90, %c4_91], %76 {strides = array<i32>} : memref<64x36xf32, #tpu.memory_space<vmem>>, vector<8x4xf32>,
    %c38_92 = arith.constant 38 : index
    %c0_93 = arith.constant 0 : index
    %78 = tpu.strided_load %arg11[%c38_92, %c0_93] {strides = array<i32: 2, 1>} : memref<324x4xf32, #tpu.memory_space<vmem>>, vector<8x4xf32>
    %c8_94 = arith.constant 8 : index
    %c8_95 = arith.constant 8 : index
    %79 = vector.load %arg15[%c8_94, %c8_95] : memref<64x36xf32, #tpu.memory_space<vmem>>, vector<8x4xf32>
    tpu.vector_store %arg15[%c8_94, %c8_95], %78 {strides = array<i32>} : memref<64x36xf32, #tpu.memory_space<vmem>>, vector<8x4xf32>,
    %c54 = arith.constant 54 : index
    %c0_96 = arith.constant 0 : index
    %80 = tpu.strided_load %arg11[%c54, %c0_96] {strides = array<i32: 2, 1>} : memref<324x4xf32, #tpu.memory_space<vmem>>, vector<8x4xf32>
    %c8_97 = arith.constant 8 : index
    %c12_98 = arith.constant 12 : index
    %81 = vector.load %arg15[%c8_97, %c12_98] : memref<64x36xf32, #tpu.memory_space<vmem>>, vector<8x4xf32>
    tpu.vector_store %arg15[%c8_97, %c12_98], %80 {strides = array<i32>} : memref<64x36xf32, #tpu.memory_space<vmem>>, vector<8x4xf32>,
    %c55_99 = arith.constant 55 : index
    %c0_100 = arith.constant 0 : index
    %82 = tpu.strided_load %arg11[%c55_99, %c0_100] {strides = array<i32: 2, 1>} : memref<324x4xf32, #tpu.memory_space<vmem>>, vector<8x4xf32>
    %c8_101 = arith.constant 8 : index
    %c16_102 = arith.constant 16 : index
    %83 = vector.load %arg15[%c8_101, %c16_102] : memref<64x36xf32, #tpu.memory_space<vmem>>, vector<8x4xf32>
    tpu.vector_store %arg15[%c8_101, %c16_102], %82 {strides = array<i32>} : memref<64x36xf32, #tpu.memory_space<vmem>>, vector<8x4xf32>,
    %c56 = arith.constant 56 : index
    %c0_103 = arith.constant 0 : index
    %84 = tpu.strided_load %arg11[%c56, %c0_103] {strides = array<i32: 2, 1>} : memref<324x4xf32, #tpu.memory_space<vmem>>, vector<8x4xf32>
    %c8_104 = arith.constant 8 : index
    %c20_105 = arith.constant 20 : index
    %85 = vector.load %arg15[%c8_104, %c20_105] : memref<64x36xf32, #tpu.memory_space<vmem>>, vector<8x4xf32>
    tpu.vector_store %arg15[%c8_104, %c20_105], %84 {strides = array<i32>} : memref<64x36xf32, #tpu.memory_space<vmem>>, vector<8x4xf32>,
    %c72 = arith.constant 72 : index
    %c0_106 = arith.constant 0 : index
    %86 = tpu.strided_load %arg11[%c72, %c0_106] {strides = array<i32: 2, 1>} : memref<324x4xf32, #tpu.memory_space<vmem>>, vector<8x4xf32>
    %c8_107 = arith.constant 8 : index
    %c24_108 = arith.constant 24 : index
    %87 = vector.load %arg15[%c8_107, %c24_108] : memref<64x36xf32, #tpu.memory_space<vmem>>, vector<8x4xf32>
    tpu.vector_store %arg15[%c8_107, %c24_108], %86 {strides = array<i32>} : memref<64x36xf32, #tpu.memory_space<vmem>>, vector<8x4xf32>,
    %c73_109 = arith.constant 73 : index
    %c0_110 = arith.constant 0 : index
    %88 = tpu.strided_load %arg11[%c73_109, %c0_110] {strides = array<i32: 2, 1>} : memref<324x4xf32, #tpu.memory_space<vmem>>, vector<8x4xf32>
    %c8_111 = arith.constant 8 : index
    %c28_112 = arith.constant 28 : index
    %89 = vector.load %arg15[%c8_111, %c28_112] : memref<64x36xf32, #tpu.memory_space<vmem>>, vector<8x4xf32>
    tpu.vector_store %arg15[%c8_111, %c28_112], %88 {strides = array<i32>} : memref<64x36xf32, #tpu.memory_space<vmem>>, vector<8x4xf32>,
    %c74 = arith.constant 74 : index
    %c0_113 = arith.constant 0 : index
    %90 = tpu.strided_load %arg11[%c74, %c0_113] {strides = array<i32: 2, 1>} : memref<324x4xf32, #tpu.memory_space<vmem>>, vector<8x4xf32>
    %c8_114 = arith.constant 8 : index
    %c32_115 = arith.constant 32 : index
    %91 = vector.load %arg15[%c8_114, %c32_115] : memref<64x36xf32, #tpu.memory_space<vmem>>, vector<8x4xf32>
    tpu.vector_store %arg15[%c8_114, %c32_115], %90 {strides = array<i32>} : memref<64x36xf32, #tpu.memory_space<vmem>>, vector<8x4xf32>,
    %c72_116 = arith.constant 72 : index
    %c0_117 = arith.constant 0 : index
    %92 = tpu.strided_load %arg11[%c72_116, %c0_117] {strides = array<i32: 2, 1>} : memref<324x4xf32, #tpu.memory_space<vmem>>, vector<8x4xf32>
    %c16_118 = arith.constant 16 : index
    %c0_119 = arith.constant 0 : index
    %93 = vector.load %arg15[%c16_118, %c0_119] : memref<64x36xf32, #tpu.memory_space<vmem>>, vector<8x4xf32>
    tpu.vector_store %arg15[%c16_118, %c0_119], %92 {strides = array<i32>} : memref<64x36xf32, #tpu.memory_space<vmem>>, vector<8x4xf32>,
    %c73_120 = arith.constant 73 : index
    %c0_121 = arith.constant 0 : index
    %94 = tpu.strided_load %arg11[%c73_120, %c0_121] {strides = array<i32: 2, 1>} : memref<324x4xf32, #tpu.memory_space<vmem>>, vector<8x4xf32>
    %c16_122 = arith.constant 16 : index
    %c4_123 = arith.constant 4 : index
    %95 = vector.load %arg15[%c16_122, %c4_123] : memref<64x36xf32, #tpu.memory_space<vmem>>, vector<8x4xf32>
    tpu.vector_store %arg15[%c16_122, %c4_123], %94 {strides = array<i32>} : memref<64x36xf32, #tpu.memory_space<vmem>>, vector<8x4xf32>,
    %c74_124 = arith.constant 74 : index
    %c0_125 = arith.constant 0 : index
    %96 = tpu.strided_load %arg11[%c74_124, %c0_125] {strides = array<i32: 2, 1>} : memref<324x4xf32, #tpu.memory_space<vmem>>, vector<8x4xf32>
    %c16_126 = arith.constant 16 : index
    %c8_127 = arith.constant 8 : index
    %97 = vector.load %arg15[%c16_126, %c8_127] : memref<64x36xf32, #tpu.memory_space<vmem>>, vector<8x4xf32>
    tpu.vector_store %arg15[%c16_126, %c8_127], %96 {strides = array<i32>} : memref<64x36xf32, #tpu.memory_space<vmem>>, vector<8x4xf32>,
    %c90 = arith.constant 90 : index
    %c0_128 = arith.constant 0 : index
    %98 = tpu.strided_load %arg11[%c90, %c0_128] {strides = array<i32: 2, 1>} : memref<324x4xf32, #tpu.memory_space<vmem>>, vector<8x4xf32>
    %c16_129 = arith.constant 16 : index
    %c12_130 = arith.constant 12 : index
    %99 = vector.load %arg15[%c16_129, %c12_130] : memref<64x36xf32, #tpu.memory_space<vmem>>, vector<8x4xf32>
    tpu.vector_store %arg15[%c16_129, %c12_130], %98 {strides = array<i32>} : memref<64x36xf32, #tpu.memory_space<vmem>>, vector<8x4xf32>,
    %c91_131 = arith.constant 91 : index
    %c0_132 = arith.constant 0 : index
    %100 = tpu.strided_load %arg11[%c91_131, %c0_132] {strides = array<i32: 2, 1>} : memref<324x4xf32, #tpu.memory_space<vmem>>, vector<8x4xf32>
    %c16_133 = arith.constant 16 : index
    %c16_134 = arith.constant 16 : index
    %101 = vector.load %arg15[%c16_133, %c16_134] : memref<64x36xf32, #tpu.memory_space<vmem>>, vector<8x4xf32>
    tpu.vector_store %arg15[%c16_133, %c16_134], %100 {strides = array<i32>} : memref<64x36xf32, #tpu.memory_space<vmem>>, vector<8x4xf32>,
    %c92 = arith.constant 92 : index
    %c0_135 = arith.constant 0 : index
    %102 = tpu.strided_load %arg11[%c92, %c0_135] {strides = array<i32: 2, 1>} : memref<324x4xf32, #tpu.memory_space<vmem>>, vector<8x4xf32>
    %c16_136 = arith.constant 16 : index
    %c20_137 = arith.constant 20 : index
    %103 = vector.load %arg15[%c16_136, %c20_137] : memref<64x36xf32, #tpu.memory_space<vmem>>, vector<8x4xf32>
    tpu.vector_store %arg15[%c16_136, %c20_137], %102 {strides = array<i32>} : memref<64x36xf32, #tpu.memory_space<vmem>>, vector<8x4xf32>,
    %c108 = arith.constant 108 : index
    %c0_138 = arith.constant 0 : index
    %104 = tpu.strided_load %arg11[%c108, %c0_138] {strides = array<i32: 2, 1>} : memref<324x4xf32, #tpu.memory_space<vmem>>, vector<8x4xf32>
    %c16_139 = arith.constant 16 : index
    %c24_140 = arith.constant 24 : index
    %105 = vector.load %arg15[%c16_139, %c24_140] : memref<64x36xf32, #tpu.memory_space<vmem>>, vector<8x4xf32>
    tpu.vector_store %arg15[%c16_139, %c24_140], %104 {strides = array<i32>} : memref<64x36xf32, #tpu.memory_space<vmem>>, vector<8x4xf32>,
    %c109_141 = arith.constant 109 : index
    %c0_142 = arith.constant 0 : index
    %106 = tpu.strided_load %arg11[%c109_141, %c0_142] {strides = array<i32: 2, 1>} : memref<324x4xf32, #tpu.memory_space<vmem>>, vector<8x4xf32>
    %c16_143 = arith.constant 16 : index
    %c28_144 = arith.constant 28 : index
    %107 = vector.load %arg15[%c16_143, %c28_144] : memref<64x36xf32, #tpu.memory_space<vmem>>, vector<8x4xf32>
    tpu.vector_store %arg15[%c16_143, %c28_144], %106 {strides = array<i32>} : memref<64x36xf32, #tpu.memory_space<vmem>>, vector<8x4xf32>,
    %c110 = arith.constant 110 : index
    %c0_145 = arith.constant 0 : index
    %108 = tpu.strided_load %arg11[%c110, %c0_145] {strides = array<i32: 2, 1>} : memref<324x4xf32, #tpu.memory_space<vmem>>, vector<8x4xf32>
    %c16_146 = arith.constant 16 : index
    %c32_147 = arith.constant 32 : index
    %109 = vector.load %arg15[%c16_146, %c32_147] : memref<64x36xf32, #tpu.memory_space<vmem>>, vector<8x4xf32>
    tpu.vector_store %arg15[%c16_146, %c32_147], %108 {strides = array<i32>} : memref<64x36xf32, #tpu.memory_space<vmem>>, vector<8x4xf32>,
    %c108_148 = arith.constant 108 : index
    %c0_149 = arith.constant 0 : index
    %110 = tpu.strided_load %arg11[%c108_148, %c0_149] {strides = array<i32: 2, 1>} : memref<324x4xf32, #tpu.memory_space<vmem>>, vector<8x4xf32>
    %c24_150 = arith.constant 24 : index
    %c0_151 = arith.constant 0 : index
    %111 = vector.load %arg15[%c24_150, %c0_151] : memref<64x36xf32, #tpu.memory_space<vmem>>, vector<8x4xf32>
    tpu.vector_store %arg15[%c24_150, %c0_151], %110 {strides = array<i32>} : memref<64x36xf32, #tpu.memory_space<vmem>>, vector<8x4xf32>,
    %c109_152 = arith.constant 109 : index
    %c0_153 = arith.constant 0 : index
    %112 = tpu.strided_load %arg11[%c109_152, %c0_153] {strides = array<i32: 2, 1>} : memref<324x4xf32, #tpu.memory_space<vmem>>, vector<8x4xf32>
    %c24_154 = arith.constant 24 : index
    %c4_155 = arith.constant 4 : index
    %113 = vector.load %arg15[%c24_154, %c4_155] : memref<64x36xf32, #tpu.memory_space<vmem>>, vector<8x4xf32>
    tpu.vector_store %arg15[%c24_154, %c4_155], %112 {strides = array<i32>} : memref<64x36xf32, #tpu.memory_space<vmem>>, vector<8x4xf32>,
    %c110_156 = arith.constant 110 : index
    %c0_157 = arith.constant 0 : index
    %114 = tpu.strided_load %arg11[%c110_156, %c0_157] {strides = array<i32: 2, 1>} : memref<324x4xf32, #tpu.memory_space<vmem>>, vector<8x4xf32>
    %c24_158 = arith.constant 24 : index
    %c8_159 = arith.constant 8 : index
    %115 = vector.load %arg15[%c24_158, %c8_159] : memref<64x36xf32, #tpu.memory_space<vmem>>, vector<8x4xf32>
    tpu.vector_store %arg15[%c24_158, %c8_159], %114 {strides = array<i32>} : memref<64x36xf32, #tpu.memory_space<vmem>>, vector<8x4xf32>,
    %c126 = arith.constant 126 : index
    %c0_160 = arith.constant 0 : index
    %116 = tpu.strided_load %arg11[%c126, %c0_160] {strides = array<i32: 2, 1>} : memref<324x4xf32, #tpu.memory_space<vmem>>, vector<8x4xf32>
    %c24_161 = arith.constant 24 : index
    %c12_162 = arith.constant 12 : index
    %117 = vector.load %arg15[%c24_161, %c12_162] : memref<64x36xf32, #tpu.memory_space<vmem>>, vector<8x4xf32>
    tpu.vector_store %arg15[%c24_161, %c12_162], %116 {strides = array<i32>} : memref<64x36xf32, #tpu.memory_space<vmem>>, vector<8x4xf32>,
    %c127_163 = arith.constant 127 : index
    %c0_164 = arith.constant 0 : index
    %118 = tpu.strided_load %arg11[%c127_163, %c0_164] {strides = array<i32: 2, 1>} : memref<324x4xf32, #tpu.memory_space<vmem>>, vector<8x4xf32>
    %c24_165 = arith.constant 24 : index
    %c16_166 = arith.constant 16 : index
    %119 = vector.load %arg15[%c24_165, %c16_166] : memref<64x36xf32, #tpu.memory_space<vmem>>, vector<8x4xf32>
    tpu.vector_store %arg15[%c24_165, %c16_166], %118 {strides = array<i32>} : memref<64x36xf32, #tpu.memory_space<vmem>>, vector<8x4xf32>,
    %c128_167 = arith.constant 128 : index
    %c0_168 = arith.constant 0 : index
    %120 = tpu.strided_load %arg11[%c128_167, %c0_168] {strides = array<i32: 2, 1>} : memref<324x4xf32, #tpu.memory_space<vmem>>, vector<8x4xf32>
    %c24_169 = arith.constant 24 : index
    %c20_170 = arith.constant 20 : index
    %121 = vector.load %arg15[%c24_169, %c20_170] : memref<64x36xf32, #tpu.memory_space<vmem>>, vector<8x4xf32>
    tpu.vector_store %arg15[%c24_169, %c20_170], %120 {strides = array<i32>} : memref<64x36xf32, #tpu.memory_space<vmem>>, vector<8x4xf32>,
    %c144_171 = arith.constant 144 : index
    %c0_172 = arith.constant 0 : index
    %122 = tpu.strided_load %arg11[%c144_171, %c0_172] {strides = array<i32: 2, 1>} : memref<324x4xf32, #tpu.memory_space<vmem>>, vector<8x4xf32>
    %c24_173 = arith.constant 24 : index
    %c24_174 = arith.constant 24 : index
    %123 = vector.load %arg15[%c24_173, %c24_174] : memref<64x36xf32, #tpu.memory_space<vmem>>, vector<8x4xf32>
    tpu.vector_store %arg15[%c24_173, %c24_174], %122 {strides = array<i32>} : memref<64x36xf32, #tpu.memory_space<vmem>>, vector<8x4xf32>,
    %c145_175 = arith.constant 145 : index
    %c0_176 = arith.constant 0 : index
    %124 = tpu.strided_load %arg11[%c145_175, %c0_176] {strides = array<i32: 2, 1>} : memref<324x4xf32, #tpu.memory_space<vmem>>, vector<8x4xf32>
    %c24_177 = arith.constant 24 : index
    %c28_178 = arith.constant 28 : index
    %125 = vector.load %arg15[%c24_177, %c28_178] : memref<64x36xf32, #tpu.memory_space<vmem>>, vector<8x4xf32>
    tpu.vector_store %arg15[%c24_177, %c28_178], %124 {strides = array<i32>} : memref<64x36xf32, #tpu.memory_space<vmem>>, vector<8x4xf32>,
    %c146 = arith.constant 146 : index
    %c0_179 = arith.constant 0 : index
    %126 = tpu.strided_load %arg11[%c146, %c0_179] {strides = array<i32: 2, 1>} : memref<324x4xf32, #tpu.memory_space<vmem>>, vector<8x4xf32>
    %c24_180 = arith.constant 24 : index
    %c32_181 = arith.constant 32 : index
    %127 = vector.load %arg15[%c24_180, %c32_181] : memref<64x36xf32, #tpu.memory_space<vmem>>, vector<8x4xf32>
    tpu.vector_store %arg15[%c24_180, %c32_181], %126 {strides = array<i32>} : memref<64x36xf32, #tpu.memory_space<vmem>>, vector<8x4xf32>,
    %c144_182 = arith.constant 144 : index
    %c0_183 = arith.constant 0 : index
    %128 = tpu.strided_load %arg11[%c144_182, %c0_183] {strides = array<i32: 2, 1>} : memref<324x4xf32, #tpu.memory_space<vmem>>, vector<8x4xf32>
    %c32_184 = arith.constant 32 : index
    %c0_185 = arith.constant 0 : index
    %129 = vector.load %arg15[%c32_184, %c0_185] : memref<64x36xf32, #tpu.memory_space<vmem>>, vector<8x4xf32>
    tpu.vector_store %arg15[%c32_184, %c0_185], %128 {strides = array<i32>} : memref<64x36xf32, #tpu.memory_space<vmem>>, vector<8x4xf32>,
    %c145_186 = arith.constant 145 : index
    %c0_187 = arith.constant 0 : index
    %130 = tpu.strided_load %arg11[%c145_186, %c0_187] {strides = array<i32: 2, 1>} : memref<324x4xf32, #tpu.memory_space<vmem>>, vector<8x4xf32>
    %c32_188 = arith.constant 32 : index
    %c4_189 = arith.constant 4 : index
    %131 = vector.load %arg15[%c32_188, %c4_189] : memref<64x36xf32, #tpu.memory_space<vmem>>, vector<8x4xf32>
    tpu.vector_store %arg15[%c32_188, %c4_189], %130 {strides = array<i32>} : memref<64x36xf32, #tpu.memory_space<vmem>>, vector<8x4xf32>,
    %c146_190 = arith.constant 146 : index
    %c0_191 = arith.constant 0 : index
    %132 = tpu.strided_load %arg11[%c146_190, %c0_191] {strides = array<i32: 2, 1>} : memref<324x4xf32, #tpu.memory_space<vmem>>, vector<8x4xf32>
    %c32_192 = arith.constant 32 : index
    %c8_193 = arith.constant 8 : index
    %133 = vector.load %arg15[%c32_192, %c8_193] : memref<64x36xf32, #tpu.memory_space<vmem>>, vector<8x4xf32>
    tpu.vector_store %arg15[%c32_192, %c8_193], %132 {strides = array<i32>} : memref<64x36xf32, #tpu.memory_space<vmem>>, vector<8x4xf32>,
    %c162 = arith.constant 162 : index
    %c0_194 = arith.constant 0 : index
    %134 = tpu.strided_load %arg11[%c162, %c0_194] {strides = array<i32: 2, 1>} : memref<324x4xf32, #tpu.memory_space<vmem>>, vector<8x4xf32>
    %c32_195 = arith.constant 32 : index
    %c12_196 = arith.constant 12 : index
    %135 = vector.load %arg15[%c32_195, %c12_196] : memref<64x36xf32, #tpu.memory_space<vmem>>, vector<8x4xf32>
    tpu.vector_store %arg15[%c32_195, %c12_196], %134 {strides = array<i32>} : memref<64x36xf32, #tpu.memory_space<vmem>>, vector<8x4xf32>,
    %c163_197 = arith.constant 163 : index
    %c0_198 = arith.constant 0 : index
    %136 = tpu.strided_load %arg11[%c163_197, %c0_198] {strides = array<i32: 2, 1>} : memref<324x4xf32, #tpu.memory_space<vmem>>, vector<8x4xf32>
    %c32_199 = arith.constant 32 : index
    %c16_200 = arith.constant 16 : index
    %137 = vector.load %arg15[%c32_199, %c16_200] : memref<64x36xf32, #tpu.memory_space<vmem>>, vector<8x4xf32>
    tpu.vector_store %arg15[%c32_199, %c16_200], %136 {strides = array<i32>} : memref<64x36xf32, #tpu.memory_space<vmem>>, vector<8x4xf32>,
    %c164 = arith.constant 164 : index
    %c0_201 = arith.constant 0 : index
    %138 = tpu.strided_load %arg11[%c164, %c0_201] {strides = array<i32: 2, 1>} : memref<324x4xf32, #tpu.memory_space<vmem>>, vector<8x4xf32>
    %c32_202 = arith.constant 32 : index
    %c20_203 = arith.constant 20 : index
    %139 = vector.load %arg15[%c32_202, %c20_203] : memref<64x36xf32, #tpu.memory_space<vmem>>, vector<8x4xf32>
    tpu.vector_store %arg15[%c32_202, %c20_203], %138 {strides = array<i32>} : memref<64x36xf32, #tpu.memory_space<vmem>>, vector<8x4xf32>,
    %c180 = arith.constant 180 : index
    %c0_204 = arith.constant 0 : index
    %140 = tpu.strided_load %arg11[%c180, %c0_204] {strides = array<i32: 2, 1>} : memref<324x4xf32, #tpu.memory_space<vmem>>, vector<8x4xf32>
    %c32_205 = arith.constant 32 : index
    %c24_206 = arith.constant 24 : index
    %141 = vector.load %arg15[%c32_205, %c24_206] : memref<64x36xf32, #tpu.memory_space<vmem>>, vector<8x4xf32>
    tpu.vector_store %arg15[%c32_205, %c24_206], %140 {strides = array<i32>} : memref<64x36xf32, #tpu.memory_space<vmem>>, vector<8x4xf32>,
    %c181_207 = arith.constant 181 : index
    %c0_208 = arith.constant 0 : index
    %142 = tpu.strided_load %arg11[%c181_207, %c0_208] {strides = array<i32: 2, 1>} : memref<324x4xf32, #tpu.memory_space<vmem>>, vector<8x4xf32>
    %c32_209 = arith.constant 32 : index
    %c28_210 = arith.constant 28 : index
    %143 = vector.load %arg15[%c32_209, %c28_210] : memref<64x36xf32, #tpu.memory_space<vmem>>, vector<8x4xf32>
    tpu.vector_store %arg15[%c32_209, %c28_210], %142 {strides = array<i32>} : memref<64x36xf32, #tpu.memory_space<vmem>>, vector<8x4xf32>,
    %c182 = arith.constant 182 : index
    %c0_211 = arith.constant 0 : index
    %144 = tpu.strided_load %arg11[%c182, %c0_211] {strides = array<i32: 2, 1>} : memref<324x4xf32, #tpu.memory_space<vmem>>, vector<8x4xf32>
    %c32_212 = arith.constant 32 : index
    %c32_213 = arith.constant 32 : index
    %145 = vector.load %arg15[%c32_212, %c32_213] : memref<64x36xf32, #tpu.memory_space<vmem>>, vector<8x4xf32>
    tpu.vector_store %arg15[%c32_212, %c32_213], %144 {strides = array<i32>} : memref<64x36xf32, #tpu.memory_space<vmem>>, vector<8x4xf32>,
    %c180_214 = arith.constant 180 : index
    %c0_215 = arith.constant 0 : index
    %146 = tpu.strided_load %arg11[%c180_214, %c0_215] {strides = array<i32: 2, 1>} : memref<324x4xf32, #tpu.memory_space<vmem>>, vector<8x4xf32>
    %c40 = arith.constant 40 : index
    %c0_216 = arith.constant 0 : index
    %147 = vector.load %arg15[%c40, %c0_216] : memref<64x36xf32, #tpu.memory_space<vmem>>, vector<8x4xf32>
    tpu.vector_store %arg15[%c40, %c0_216], %146 {strides = array<i32>} : memref<64x36xf32, #tpu.memory_space<vmem>>, vector<8x4xf32>,
    %c181_217 = arith.constant 181 : index
    %c0_218 = arith.constant 0 : index
    %148 = tpu.strided_load %arg11[%c181_217, %c0_218] {strides = array<i32: 2, 1>} : memref<324x4xf32, #tpu.memory_space<vmem>>, vector<8x4xf32>
    %c40_219 = arith.constant 40 : index
    %c4_220 = arith.constant 4 : index
    %149 = vector.load %arg15[%c40_219, %c4_220] : memref<64x36xf32, #tpu.memory_space<vmem>>, vector<8x4xf32>
    tpu.vector_store %arg15[%c40_219, %c4_220], %148 {strides = array<i32>} : memref<64x36xf32, #tpu.memory_space<vmem>>, vector<8x4xf32>,
    %c182_221 = arith.constant 182 : index
    %c0_222 = arith.constant 0 : index
    %150 = tpu.strided_load %arg11[%c182_221, %c0_222] {strides = array<i32: 2, 1>} : memref<324x4xf32, #tpu.memory_space<vmem>>, vector<8x4xf32>
    %c40_223 = arith.constant 40 : index
    %c8_224 = arith.constant 8 : index
    %151 = vector.load %arg15[%c40_223, %c8_224] : memref<64x36xf32, #tpu.memory_space<vmem>>, vector<8x4xf32>
    tpu.vector_store %arg15[%c40_223, %c8_224], %150 {strides = array<i32>} : memref<64x36xf32, #tpu.memory_space<vmem>>, vector<8x4xf32>,
    %c198 = arith.constant 198 : index
    %c0_225 = arith.constant 0 : index
    %152 = tpu.strided_load %arg11[%c198, %c0_225] {strides = array<i32: 2, 1>} : memref<324x4xf32, #tpu.memory_space<vmem>>, vector<8x4xf32>
    %c40_226 = arith.constant 40 : index
    %c12_227 = arith.constant 12 : index
    %153 = vector.load %arg15[%c40_226, %c12_227] : memref<64x36xf32, #tpu.memory_space<vmem>>, vector<8x4xf32>
    tpu.vector_store %arg15[%c40_226, %c12_227], %152 {strides = array<i32>} : memref<64x36xf32, #tpu.memory_space<vmem>>, vector<8x4xf32>,
    %c199_228 = arith.constant 199 : index
    %c0_229 = arith.constant 0 : index
    %154 = tpu.strided_load %arg11[%c199_228, %c0_229] {strides = array<i32: 2, 1>} : memref<324x4xf32, #tpu.memory_space<vmem>>, vector<8x4xf32>
    %c40_230 = arith.constant 40 : index
    %c16_231 = arith.constant 16 : index
    %155 = vector.load %arg15[%c40_230, %c16_231] : memref<64x36xf32, #tpu.memory_space<vmem>>, vector<8x4xf32>
    tpu.vector_store %arg15[%c40_230, %c16_231], %154 {strides = array<i32>} : memref<64x36xf32, #tpu.memory_space<vmem>>, vector<8x4xf32>,
    %c200 = arith.constant 200 : index
    %c0_232 = arith.constant 0 : index
    %156 = tpu.strided_load %arg11[%c200, %c0_232] {strides = array<i32: 2, 1>} : memref<324x4xf32, #tpu.memory_space<vmem>>, vector<8x4xf32>
    %c40_233 = arith.constant 40 : index
    %c20_234 = arith.constant 20 : index
    %157 = vector.load %arg15[%c40_233, %c20_234] : memref<64x36xf32, #tpu.memory_space<vmem>>, vector<8x4xf32>
    tpu.vector_store %arg15[%c40_233, %c20_234], %156 {strides = array<i32>} : memref<64x36xf32, #tpu.memory_space<vmem>>, vector<8x4xf32>,
    %c216 = arith.constant 216 : index
    %c0_235 = arith.constant 0 : index
    %158 = tpu.strided_load %arg11[%c216, %c0_235] {strides = array<i32: 2, 1>} : memref<324x4xf32, #tpu.memory_space<vmem>>, vector<8x4xf32>
    %c40_236 = arith.constant 40 : index
    %c24_237 = arith.constant 24 : index
    %159 = vector.load %arg15[%c40_236, %c24_237] : memref<64x36xf32, #tpu.memory_space<vmem>>, vector<8x4xf32>
    tpu.vector_store %arg15[%c40_236, %c24_237], %158 {strides = array<i32>} : memref<64x36xf32, #tpu.memory_space<vmem>>, vector<8x4xf32>,
    %c217_238 = arith.constant 217 : index
    %c0_239 = arith.constant 0 : index
    %160 = tpu.strided_load %arg11[%c217_238, %c0_239] {strides = array<i32: 2, 1>} : memref<324x4xf32, #tpu.memory_space<vmem>>, vector<8x4xf32>
    %c40_240 = arith.constant 40 : index
    %c28_241 = arith.constant 28 : index
    %161 = vector.load %arg15[%c40_240, %c28_241] : memref<64x36xf32, #tpu.memory_space<vmem>>, vector<8x4xf32>
    tpu.vector_store %arg15[%c40_240, %c28_241], %160 {strides = array<i32>} : memref<64x36xf32, #tpu.memory_space<vmem>>, vector<8x4xf32>,
    %c218 = arith.constant 218 : index
    %c0_242 = arith.constant 0 : index
    %162 = tpu.strided_load %arg11[%c218, %c0_242] {strides = array<i32: 2, 1>} : memref<324x4xf32, #tpu.memory_space<vmem>>, vector<8x4xf32>
    %c40_243 = arith.constant 40 : index
    %c32_244 = arith.constant 32 : index
    %163 = vector.load %arg15[%c40_243, %c32_244] : memref<64x36xf32, #tpu.memory_space<vmem>>, vector<8x4xf32>
    tpu.vector_store %arg15[%c40_243, %c32_244], %162 {strides = array<i32>} : memref<64x36xf32, #tpu.memory_space<vmem>>, vector<8x4xf32>,
    %c216_245 = arith.constant 216 : index
    %c0_246 = arith.constant 0 : index
    %164 = tpu.strided_load %arg11[%c216_245, %c0_246] {strides = array<i32: 2, 1>} : memref<324x4xf32, #tpu.memory_space<vmem>>, vector<8x4xf32>
    %c48_247 = arith.constant 48 : index
    %c0_248 = arith.constant 0 : index
    %165 = vector.load %arg15[%c48_247, %c0_248] : memref<64x36xf32, #tpu.memory_space<vmem>>, vector<8x4xf32>
    tpu.vector_store %arg15[%c48_247, %c0_248], %164 {strides = array<i32>} : memref<64x36xf32, #tpu.memory_space<vmem>>, vector<8x4xf32>,
    %c217_249 = arith.constant 217 : index
    %c0_250 = arith.constant 0 : index
    %166 = tpu.strided_load %arg11[%c217_249, %c0_250] {strides = array<i32: 2, 1>} : memref<324x4xf32, #tpu.memory_space<vmem>>, vector<8x4xf32>
    %c48_251 = arith.constant 48 : index
    %c4_252 = arith.constant 4 : index
    %167 = vector.load %arg15[%c48_251, %c4_252] : memref<64x36xf32, #tpu.memory_space<vmem>>, vector<8x4xf32>
    tpu.vector_store %arg15[%c48_251, %c4_252], %166 {strides = array<i32>} : memref<64x36xf32, #tpu.memory_space<vmem>>, vector<8x4xf32>,
    %c218_253 = arith.constant 218 : index
    %c0_254 = arith.constant 0 : index
    %168 = tpu.strided_load %arg11[%c218_253, %c0_254] {strides = array<i32: 2, 1>} : memref<324x4xf32, #tpu.memory_space<vmem>>, vector<8x4xf32>
    %c48_255 = arith.constant 48 : index
    %c8_256 = arith.constant 8 : index
    %169 = vector.load %arg15[%c48_255, %c8_256] : memref<64x36xf32, #tpu.memory_space<vmem>>, vector<8x4xf32>
    tpu.vector_store %arg15[%c48_255, %c8_256], %168 {strides = array<i32>} : memref<64x36xf32, #tpu.memory_space<vmem>>, vector<8x4xf32>,
    %c234 = arith.constant 234 : index
    %c0_257 = arith.constant 0 : index
    %170 = tpu.strided_load %arg11[%c234, %c0_257] {strides = array<i32: 2, 1>} : memref<324x4xf32, #tpu.memory_space<vmem>>, vector<8x4xf32>
    %c48_258 = arith.constant 48 : index
    %c12_259 = arith.constant 12 : index
    %171 = vector.load %arg15[%c48_258, %c12_259] : memref<64x36xf32, #tpu.memory_space<vmem>>, vector<8x4xf32>
    tpu.vector_store %arg15[%c48_258, %c12_259], %170 {strides = array<i32>} : memref<64x36xf32, #tpu.memory_space<vmem>>, vector<8x4xf32>,
    %c235_260 = arith.constant 235 : index
    %c0_261 = arith.constant 0 : index
    %172 = tpu.strided_load %arg11[%c235_260, %c0_261] {strides = array<i32: 2, 1>} : memref<324x4xf32, #tpu.memory_space<vmem>>, vector<8x4xf32>
    %c48_262 = arith.constant 48 : index
    %c16_263 = arith.constant 16 : index
    %173 = vector.load %arg15[%c48_262, %c16_263] : memref<64x36xf32, #tpu.memory_space<vmem>>, vector<8x4xf32>
    tpu.vector_store %arg15[%c48_262, %c16_263], %172 {strides = array<i32>} : memref<64x36xf32, #tpu.memory_space<vmem>>, vector<8x4xf32>,
    %c236 = arith.constant 236 : index
    %c0_264 = arith.constant 0 : index
    %174 = tpu.strided_load %arg11[%c236, %c0_264] {strides = array<i32: 2, 1>} : memref<324x4xf32, #tpu.memory_space<vmem>>, vector<8x4xf32>
    %c48_265 = arith.constant 48 : index
    %c20_266 = arith.constant 20 : index
    %175 = vector.load %arg15[%c48_265, %c20_266] : memref<64x36xf32, #tpu.memory_space<vmem>>, vector<8x4xf32>
    tpu.vector_store %arg15[%c48_265, %c20_266], %174 {strides = array<i32>} : memref<64x36xf32, #tpu.memory_space<vmem>>, vector<8x4xf32>,
    %c252 = arith.constant 252 : index
    %c0_267 = arith.constant 0 : index
    %176 = tpu.strided_load %arg11[%c252, %c0_267] {strides = array<i32: 2, 1>} : memref<324x4xf32, #tpu.memory_space<vmem>>, vector<8x4xf32>
    %c48_268 = arith.constant 48 : index
    %c24_269 = arith.constant 24 : index
    %177 = vector.load %arg15[%c48_268, %c24_269] : memref<64x36xf32, #tpu.memory_space<vmem>>, vector<8x4xf32>
    tpu.vector_store %arg15[%c48_268, %c24_269], %176 {strides = array<i32>} : memref<64x36xf32, #tpu.memory_space<vmem>>, vector<8x4xf32>,
    %c253_270 = arith.constant 253 : index
    %c0_271 = arith.constant 0 : index
    %178 = tpu.strided_load %arg11[%c253_270, %c0_271] {strides = array<i32: 2, 1>} : memref<324x4xf32, #tpu.memory_space<vmem>>, vector<8x4xf32>
    %c48_272 = arith.constant 48 : index
    %c28_273 = arith.constant 28 : index
    %179 = vector.load %arg15[%c48_272, %c28_273] : memref<64x36xf32, #tpu.memory_space<vmem>>, vector<8x4xf32>
    tpu.vector_store %arg15[%c48_272, %c28_273], %178 {strides = array<i32>} : memref<64x36xf32, #tpu.memory_space<vmem>>, vector<8x4xf32>,
    %c254 = arith.constant 254 : index
    %c0_274 = arith.constant 0 : index
    %180 = tpu.strided_load %arg11[%c254, %c0_274] {strides = array<i32: 2, 1>} : memref<324x4xf32, #tpu.memory_space<vmem>>, vector<8x4xf32>
    %c48_275 = arith.constant 48 : index
    %c32_276 = arith.constant 32 : index
    %181 = vector.load %arg15[%c48_275, %c32_276] : memref<64x36xf32, #tpu.memory_space<vmem>>, vector<8x4xf32>
    tpu.vector_store %arg15[%c48_275, %c32_276], %180 {strides = array<i32>} : memref<64x36xf32, #tpu.memory_space<vmem>>, vector<8x4xf32>,
    %c252_277 = arith.constant 252 : index
    %c0_278 = arith.constant 0 : index
    %182 = tpu.strided_load %arg11[%c252_277, %c0_278] {strides = array<i32: 2, 1>} : memref<324x4xf32, #tpu.memory_space<vmem>>, vector<8x4xf32>
    %c56_279 = arith.constant 56 : index
    %c0_280 = arith.constant 0 : index
    %183 = vector.load %arg15[%c56_279, %c0_280] : memref<64x36xf32, #tpu.memory_space<vmem>>, vector<8x4xf32>
    tpu.vector_store %arg15[%c56_279, %c0_280], %182 {strides = array<i32>} : memref<64x36xf32, #tpu.memory_space<vmem>>, vector<8x4xf32>,
    %c253_281 = arith.constant 253 : index
    %c0_282 = arith.constant 0 : index
    %184 = tpu.strided_load %arg11[%c253_281, %c0_282] {strides = array<i32: 2, 1>} : memref<324x4xf32, #tpu.memory_space<vmem>>, vector<8x4xf32>
    %c56_283 = arith.constant 56 : index
    %c4_284 = arith.constant 4 : index
    %185 = vector.load %arg15[%c56_283, %c4_284] : memref<64x36xf32, #tpu.memory_space<vmem>>, vector<8x4xf32>
    tpu.vector_store %arg15[%c56_283, %c4_284], %184 {strides = array<i32>} : memref<64x36xf32, #tpu.memory_space<vmem>>, vector<8x4xf32>,
    %c254_285 = arith.constant 254 : index
    %c0_286 = arith.constant 0 : index
    %186 = tpu.strided_load %arg11[%c254_285, %c0_286] {strides = array<i32: 2, 1>} : memref<324x4xf32, #tpu.memory_space<vmem>>, vector<8x4xf32>
    %c56_287 = arith.constant 56 : index
    %c8_288 = arith.constant 8 : index
    %187 = vector.load %arg15[%c56_287, %c8_288] : memref<64x36xf32, #tpu.memory_space<vmem>>, vector<8x4xf32>
    tpu.vector_store %arg15[%c56_287, %c8_288], %186 {strides = array<i32>} : memref<64x36xf32, #tpu.memory_space<vmem>>, vector<8x4xf32>,
    %c270 = arith.constant 270 : index
    %c0_289 = arith.constant 0 : index
    %188 = tpu.strided_load %arg11[%c270, %c0_289] {strides = array<i32: 2, 1>} : memref<324x4xf32, #tpu.memory_space<vmem>>, vector<8x4xf32>
    %c56_290 = arith.constant 56 : index
    %c12_291 = arith.constant 12 : index
    %189 = vector.load %arg15[%c56_290, %c12_291] : memref<64x36xf32, #tpu.memory_space<vmem>>, vector<8x4xf32>
    tpu.vector_store %arg15[%c56_290, %c12_291], %188 {strides = array<i32>} : memref<64x36xf32, #tpu.memory_space<vmem>>, vector<8x4xf32>,
    %c271_292 = arith.constant 271 : index
    %c0_293 = arith.constant 0 : index
    %190 = tpu.strided_load %arg11[%c271_292, %c0_293] {strides = array<i32: 2, 1>} : memref<324x4xf32, #tpu.memory_space<vmem>>, vector<8x4xf32>
    %c56_294 = arith.constant 56 : index
    %c16_295 = arith.constant 16 : index
    %191 = vector.load %arg15[%c56_294, %c16_295] : memref<64x36xf32, #tpu.memory_space<vmem>>, vector<8x4xf32>
    tpu.vector_store %arg15[%c56_294, %c16_295], %190 {strides = array<i32>} : memref<64x36xf32, #tpu.memory_space<vmem>>, vector<8x4xf32>,
    %c272 = arith.constant 272 : index
    %c0_296 = arith.constant 0 : index
    %192 = tpu.strided_load %arg11[%c272, %c0_296] {strides = array<i32: 2, 1>} : memref<324x4xf32, #tpu.memory_space<vmem>>, vector<8x4xf32>
    %c56_297 = arith.constant 56 : index
    %c20_298 = arith.constant 20 : index
    %193 = vector.load %arg15[%c56_297, %c20_298] : memref<64x36xf32, #tpu.memory_space<vmem>>, vector<8x4xf32>
    tpu.vector_store %arg15[%c56_297, %c20_298], %192 {strides = array<i32>} : memref<64x36xf32, #tpu.memory_space<vmem>>, vector<8x4xf32>,
    %c288 = arith.constant 288 : index
    %c0_299 = arith.constant 0 : index
    %194 = tpu.strided_load %arg11[%c288, %c0_299] {strides = array<i32: 2, 1>} : memref<324x4xf32, #tpu.memory_space<vmem>>, vector<8x4xf32>
    %c56_300 = arith.constant 56 : index
    %c24_301 = arith.constant 24 : index
    %195 = vector.load %arg15[%c56_300, %c24_301] : memref<64x36xf32, #tpu.memory_space<vmem>>, vector<8x4xf32>
    tpu.vector_store %arg15[%c56_300, %c24_301], %194 {strides = array<i32>} : memref<64x36xf32, #tpu.memory_space<vmem>>, vector<8x4xf32>,
    %c289_302 = arith.constant 289 : index
    %c0_303 = arith.constant 0 : index
    %196 = tpu.strided_load %arg11[%c289_302, %c0_303] {strides = array<i32: 2, 1>} : memref<324x4xf32, #tpu.memory_space<vmem>>, vector<8x4xf32>
    %c56_304 = arith.constant 56 : index
    %c28_305 = arith.constant 28 : index
    %197 = vector.load %arg15[%c56_304, %c28_305] : memref<64x36xf32, #tpu.memory_space<vmem>>, vector<8x4xf32>
    tpu.vector_store %arg15[%c56_304, %c28_305], %196 {strides = array<i32>} : memref<64x36xf32, #tpu.memory_space<vmem>>, vector<8x4xf32>,
    %c290 = arith.constant 290 : index
    %c0_306 = arith.constant 0 : index
    %198 = tpu.strided_load %arg11[%c290, %c0_306] {strides = array<i32: 2, 1>} : memref<324x4xf32, #tpu.memory_space<vmem>>, vector<8x4xf32>
    %c56_307 = arith.constant 56 : index
    %c32_308 = arith.constant 32 : index
    %199 = vector.load %arg15[%c56_307, %c32_308] : memref<64x36xf32, #tpu.memory_space<vmem>>, vector<8x4xf32>
    tpu.vector_store %arg15[%c56_307, %c32_308], %198 {strides = array<i32>} : memref<64x36xf32, #tpu.memory_space<vmem>>, vector<8x4xf32>,
    %c0_309 = arith.constant 0 : index
    %c0_310 = arith.constant 0 : index
    %200 = vector.load %arg15[%c0_309, %c0_310] : memref<64x36xf32, #tpu.memory_space<vmem>>, vector<64x36xf32>
    %c0_311 = arith.constant 0 : index
    %c0_312 = arith.constant 0 : index
    %201 = vector.load %arg2[%c0_311, %c0_312] : memref<36x16xf32, #tpu.memory_space<vmem>>, vector<36x16xf32>
    %cst_313 = arith.constant dense<0.000000e+00> : vector<64x16xf32>
    %202 = tpu.matmul %200, %201, %cst_313 {dimension_numbers = #tpu.dot_dimension_numbers<[1], [0], [0], [1], [0, 0, 1, 1], [], []>} : vector<64x36xf32>, vector<36x16xf32>, vector<64x16xf32> -> vector<64x16xf32>
    %c0_314 = arith.constant 0 : index
    %c0_315 = arith.constant 0 : index
    %203 = vector.load %arg3[%c0_314, %c0_315] : memref<1x16xf32, #tpu.memory_space<vmem>>, vector<1x16xf32>
    %204 = vector.broadcast %203 : vector<1x16xf32> to vector<64x16xf32>
    %205 = arith.addf %202, %204 : vector<64x16xf32>
    %c0_316 = arith.constant 0 : index
    %c0_317 = arith.constant 0 : index
    %206 = vector.load %arg19[%c0_316, %c0_317] : memref<64x16xf32, #tpu.memory_space<vmem>>, vector<64x16xf32>
    tpu.vector_store %arg19[%c0_316, %c0_317], %205 {strides = array<i32>} : memref<64x16xf32, #tpu.memory_space<vmem>>, vector<64x16xf32>,
    %c0_318 = arith.constant 0 : index
    %c0_319 = arith.constant 0 : index
    %207 = vector.load %arg19[%c0_318, %c0_319] : memref<64x16xf32, #tpu.memory_space<vmem>>, vector<8x16xf32>
    %c11 = arith.constant 11 : index
    %c0_320 = arith.constant 0 : index
    %208 = vector.load %arg12[%c11, %c0_320] : memref<100x16xf32, #tpu.memory_space<vmem>>, vector<8x16xf32>
    tpu.vector_store %arg12[%c11, %c0_320], %207 {strides = array<i32>} : memref<100x16xf32, #tpu.memory_space<vmem>>, vector<8x16xf32>,
    %c8_321 = arith.constant 8 : index
    %c0_322 = arith.constant 0 : index
    %209 = vector.load %arg19[%c8_321, %c0_322] : memref<64x16xf32, #tpu.memory_space<vmem>>, vector<8x16xf32>
    %c21 = arith.constant 21 : index
    %c0_323 = arith.constant 0 : index
    %210 = vector.load %arg12[%c21, %c0_323] : memref<100x16xf32, #tpu.memory_space<vmem>>, vector<8x16xf32>
    tpu.vector_store %arg12[%c21, %c0_323], %209 {strides = array<i32>} : memref<100x16xf32, #tpu.memory_space<vmem>>, vector<8x16xf32>,
    %c16_324 = arith.constant 16 : index
    %c0_325 = arith.constant 0 : index
    %211 = vector.load %arg19[%c16_324, %c0_325] : memref<64x16xf32, #tpu.memory_space<vmem>>, vector<8x16xf32>
    %c31 = arith.constant 31 : index
    %c0_326 = arith.constant 0 : index
    %212 = vector.load %arg12[%c31, %c0_326] : memref<100x16xf32, #tpu.memory_space<vmem>>, vector<8x16xf32>
    tpu.vector_store %arg12[%c31, %c0_326], %211 {strides = array<i32>} : memref<100x16xf32, #tpu.memory_space<vmem>>, vector<8x16xf32>,
    %c24_327 = arith.constant 24 : index
    %c0_328 = arith.constant 0 : index
    %213 = vector.load %arg19[%c24_327, %c0_328] : memref<64x16xf32, #tpu.memory_space<vmem>>, vector<8x16xf32>
    %c41 = arith.constant 41 : index
    %c0_329 = arith.constant 0 : index
    %214 = vector.load %arg12[%c41, %c0_329] : memref<100x16xf32, #tpu.memory_space<vmem>>, vector<8x16xf32>
    tpu.vector_store %arg12[%c41, %c0_329], %213 {strides = array<i32>} : memref<100x16xf32, #tpu.memory_space<vmem>>, vector<8x16xf32>,
    %c32_330 = arith.constant 32 : index
    %c0_331 = arith.constant 0 : index
    %215 = vector.load %arg19[%c32_330, %c0_331] : memref<64x16xf32, #tpu.memory_space<vmem>>, vector<8x16xf32>
    %c51 = arith.constant 51 : index
    %c0_332 = arith.constant 0 : index
    %216 = vector.load %arg12[%c51, %c0_332] : memref<100x16xf32, #tpu.memory_space<vmem>>, vector<8x16xf32>
    tpu.vector_store %arg12[%c51, %c0_332], %215 {strides = array<i32>} : memref<100x16xf32, #tpu.memory_space<vmem>>, vector<8x16xf32>,
    %c40_333 = arith.constant 40 : index
    %c0_334 = arith.constant 0 : index
    %217 = vector.load %arg19[%c40_333, %c0_334] : memref<64x16xf32, #tpu.memory_space<vmem>>, vector<8x16xf32>
    %c61 = arith.constant 61 : index
    %c0_335 = arith.constant 0 : index
    %218 = vector.load %arg12[%c61, %c0_335] : memref<100x16xf32, #tpu.memory_space<vmem>>, vector<8x16xf32>
    tpu.vector_store %arg12[%c61, %c0_335], %217 {strides = array<i32>} : memref<100x16xf32, #tpu.memory_space<vmem>>, vector<8x16xf32>,
    %c48_336 = arith.constant 48 : index
    %c0_337 = arith.constant 0 : index
    %219 = vector.load %arg19[%c48_336, %c0_337] : memref<64x16xf32, #tpu.memory_space<vmem>>, vector<8x16xf32>
    %c71 = arith.constant 71 : index
    %c0_338 = arith.constant 0 : index
    %220 = vector.load %arg12[%c71, %c0_338] : memref<100x16xf32, #tpu.memory_space<vmem>>, vector<8x16xf32>
    tpu.vector_store %arg12[%c71, %c0_338], %219 {strides = array<i32>} : memref<100x16xf32, #tpu.memory_space<vmem>>, vector<8x16xf32>,
    %c56_339 = arith.constant 56 : index
    %c0_340 = arith.constant 0 : index
    %221 = vector.load %arg19[%c56_339, %c0_340] : memref<64x16xf32, #tpu.memory_space<vmem>>, vector<8x16xf32>
    %c81 = arith.constant 81 : index
    %c0_341 = arith.constant 0 : index
    %222 = vector.load %arg12[%c81, %c0_341] : memref<100x16xf32, #tpu.memory_space<vmem>>, vector<8x16xf32>
    tpu.vector_store %arg12[%c81, %c0_341], %221 {strides = array<i32>} : memref<100x16xf32, #tpu.memory_space<vmem>>, vector<8x16xf32>,
    %c0_342 = arith.constant 0 : index
    %c0_343 = arith.constant 0 : index
    %223 = vector.load %arg12[%c0_342, %c0_343] : memref<100x16xf32, #tpu.memory_space<vmem>>, vector<8x16xf32>
    %c0_344 = arith.constant 0 : index
    %c0_345 = arith.constant 0 : index
    %224 = vector.load %arg16[%c0_344, %c0_345] : memref<64x144xf32, #tpu.memory_space<vmem>>, vector<8x16xf32>
    tpu.vector_store %arg16[%c0_344, %c0_345], %223 {strides = array<i32>} : memref<64x144xf32, #tpu.memory_space<vmem>>, vector<8x16xf32>,
    %c1_346 = arith.constant 1 : index
    %c0_347 = arith.constant 0 : index
    %225 = vector.load %arg12[%c1_346, %c0_347] : memref<100x16xf32, #tpu.memory_space<vmem>>, vector<8x16xf32>
    %c0_348 = arith.constant 0 : index
    %c16_349 = arith.constant 16 : index
    %226 = vector.load %arg16[%c0_348, %c16_349] : memref<64x144xf32, #tpu.memory_space<vmem>>, vector<8x16xf32>
    tpu.vector_store %arg16[%c0_348, %c16_349], %225 {strides = array<i32>} : memref<64x144xf32, #tpu.memory_space<vmem>>, vector<8x16xf32>,
    %c2_350 = arith.constant 2 : index
    %c0_351 = arith.constant 0 : index
    %227 = vector.load %arg12[%c2_350, %c0_351] : memref<100x16xf32, #tpu.memory_space<vmem>>, vector<8x16xf32>
    %c0_352 = arith.constant 0 : index
    %c32_353 = arith.constant 32 : index
    %228 = vector.load %arg16[%c0_352, %c32_353] : memref<64x144xf32, #tpu.memory_space<vmem>>, vector<8x16xf32>
    tpu.vector_store %arg16[%c0_352, %c32_353], %227 {strides = array<i32>} : memref<64x144xf32, #tpu.memory_space<vmem>>, vector<8x16xf32>,
    %c10 = arith.constant 10 : index
    %c0_354 = arith.constant 0 : index
    %229 = vector.load %arg12[%c10, %c0_354] : memref<100x16xf32, #tpu.memory_space<vmem>>, vector<8x16xf32>
    %c0_355 = arith.constant 0 : index
    %c48_356 = arith.constant 48 : index
    %230 = vector.load %arg16[%c0_355, %c48_356] : memref<64x144xf32, #tpu.memory_space<vmem>>, vector<8x16xf32>
    tpu.vector_store %arg16[%c0_355, %c48_356], %229 {strides = array<i32>} : memref<64x144xf32, #tpu.memory_space<vmem>>, vector<8x16xf32>,
    %c11_357 = arith.constant 11 : index
    %c0_358 = arith.constant 0 : index
    %231 = vector.load %arg12[%c11_357, %c0_358] : memref<100x16xf32, #tpu.memory_space<vmem>>, vector<8x16xf32>
    %c0_359 = arith.constant 0 : index
    %c64_360 = arith.constant 64 : index
    %232 = vector.load %arg16[%c0_359, %c64_360] : memref<64x144xf32, #tpu.memory_space<vmem>>, vector<8x16xf32>
    tpu.vector_store %arg16[%c0_359, %c64_360], %231 {strides = array<i32>} : memref<64x144xf32, #tpu.memory_space<vmem>>, vector<8x16xf32>,
    %c12_361 = arith.constant 12 : index
    %c0_362 = arith.constant 0 : index
    %233 = vector.load %arg12[%c12_361, %c0_362] : memref<100x16xf32, #tpu.memory_space<vmem>>, vector<8x16xf32>
    %c0_363 = arith.constant 0 : index
    %c80_364 = arith.constant 80 : index
    %234 = vector.load %arg16[%c0_363, %c80_364] : memref<64x144xf32, #tpu.memory_space<vmem>>, vector<8x16xf32>
    tpu.vector_store %arg16[%c0_363, %c80_364], %233 {strides = array<i32>} : memref<64x144xf32, #tpu.memory_space<vmem>>, vector<8x16xf32>,
    %c20_365 = arith.constant 20 : index
    %c0_366 = arith.constant 0 : index
    %235 = vector.load %arg12[%c20_365, %c0_366] : memref<100x16xf32, #tpu.memory_space<vmem>>, vector<8x16xf32>
    %c0_367 = arith.constant 0 : index
    %c96_368 = arith.constant 96 : index
    %236 = vector.load %arg16[%c0_367, %c96_368] : memref<64x144xf32, #tpu.memory_space<vmem>>, vector<8x16xf32>
    tpu.vector_store %arg16[%c0_367, %c96_368], %235 {strides = array<i32>} : memref<64x144xf32, #tpu.memory_space<vmem>>, vector<8x16xf32>,
    %c21_369 = arith.constant 21 : index
    %c0_370 = arith.constant 0 : index
    %237 = vector.load %arg12[%c21_369, %c0_370] : memref<100x16xf32, #tpu.memory_space<vmem>>, vector<8x16xf32>
    %c0_371 = arith.constant 0 : index
    %c112_372 = arith.constant 112 : index
    %238 = vector.load %arg16[%c0_371, %c112_372] : memref<64x144xf32, #tpu.memory_space<vmem>>, vector<8x16xf32>
    tpu.vector_store %arg16[%c0_371, %c112_372], %237 {strides = array<i32>} : memref<64x144xf32, #tpu.memory_space<vmem>>, vector<8x16xf32>,
    %c22 = arith.constant 22 : index
    %c0_373 = arith.constant 0 : index
    %239 = vector.load %arg12[%c22, %c0_373] : memref<100x16xf32, #tpu.memory_space<vmem>>, vector<8x16xf32>
    %c0_374 = arith.constant 0 : index
    %c128_375 = arith.constant 128 : index
    %240 = vector.load %arg16[%c0_374, %c128_375] : memref<64x144xf32, #tpu.memory_space<vmem>>, vector<8x16xf32>
    tpu.vector_store %arg16[%c0_374, %c128_375], %239 {strides = array<i32>} : memref<64x144xf32, #tpu.memory_space<vmem>>, vector<8x16xf32>,
    %c10_376 = arith.constant 10 : index
    %c0_377 = arith.constant 0 : index
    %241 = vector.load %arg12[%c10_376, %c0_377] : memref<100x16xf32, #tpu.memory_space<vmem>>, vector<8x16xf32>
    %c8_378 = arith.constant 8 : index
    %c0_379 = arith.constant 0 : index
    %242 = vector.load %arg16[%c8_378, %c0_379] : memref<64x144xf32, #tpu.memory_space<vmem>>, vector<8x16xf32>
    tpu.vector_store %arg16[%c8_378, %c0_379], %241 {strides = array<i32>} : memref<64x144xf32, #tpu.memory_space<vmem>>, vector<8x16xf32>,
    %c11_380 = arith.constant 11 : index
    %c0_381 = arith.constant 0 : index
    %243 = vector.load %arg12[%c11_380, %c0_381] : memref<100x16xf32, #tpu.memory_space<vmem>>, vector<8x16xf32>
    %c8_382 = arith.constant 8 : index
    %c16_383 = arith.constant 16 : index
    %244 = vector.load %arg16[%c8_382, %c16_383] : memref<64x144xf32, #tpu.memory_space<vmem>>, vector<8x16xf32>
    tpu.vector_store %arg16[%c8_382, %c16_383], %243 {strides = array<i32>} : memref<64x144xf32, #tpu.memory_space<vmem>>, vector<8x16xf32>,
    %c12_384 = arith.constant 12 : index
    %c0_385 = arith.constant 0 : index
    %245 = vector.load %arg12[%c12_384, %c0_385] : memref<100x16xf32, #tpu.memory_space<vmem>>, vector<8x16xf32>
    %c8_386 = arith.constant 8 : index
    %c32_387 = arith.constant 32 : index
    %246 = vector.load %arg16[%c8_386, %c32_387] : memref<64x144xf32, #tpu.memory_space<vmem>>, vector<8x16xf32>
    tpu.vector_store %arg16[%c8_386, %c32_387], %245 {strides = array<i32>} : memref<64x144xf32, #tpu.memory_space<vmem>>, vector<8x16xf32>,
    %c20_388 = arith.constant 20 : index
    %c0_389 = arith.constant 0 : index
    %247 = vector.load %arg12[%c20_388, %c0_389] : memref<100x16xf32, #tpu.memory_space<vmem>>, vector<8x16xf32>
    %c8_390 = arith.constant 8 : index
    %c48_391 = arith.constant 48 : index
    %248 = vector.load %arg16[%c8_390, %c48_391] : memref<64x144xf32, #tpu.memory_space<vmem>>, vector<8x16xf32>
    tpu.vector_store %arg16[%c8_390, %c48_391], %247 {strides = array<i32>} : memref<64x144xf32, #tpu.memory_space<vmem>>, vector<8x16xf32>,
    %c21_392 = arith.constant 21 : index
    %c0_393 = arith.constant 0 : index
    %249 = vector.load %arg12[%c21_392, %c0_393] : memref<100x16xf32, #tpu.memory_space<vmem>>, vector<8x16xf32>
    %c8_394 = arith.constant 8 : index
    %c64_395 = arith.constant 64 : index
    %250 = vector.load %arg16[%c8_394, %c64_395] : memref<64x144xf32, #tpu.memory_space<vmem>>, vector<8x16xf32>
    tpu.vector_store %arg16[%c8_394, %c64_395], %249 {strides = array<i32>} : memref<64x144xf32, #tpu.memory_space<vmem>>, vector<8x16xf32>,
    %c22_396 = arith.constant 22 : index
    %c0_397 = arith.constant 0 : index
    %251 = vector.load %arg12[%c22_396, %c0_397] : memref<100x16xf32, #tpu.memory_space<vmem>>, vector<8x16xf32>
    %c8_398 = arith.constant 8 : index
    %c80_399 = arith.constant 80 : index
    %252 = vector.load %arg16[%c8_398, %c80_399] : memref<64x144xf32, #tpu.memory_space<vmem>>, vector<8x16xf32>
    tpu.vector_store %arg16[%c8_398, %c80_399], %251 {strides = array<i32>} : memref<64x144xf32, #tpu.memory_space<vmem>>, vector<8x16xf32>,
    %c30 = arith.constant 30 : index
    %c0_400 = arith.constant 0 : index
    %253 = vector.load %arg12[%c30, %c0_400] : memref<100x16xf32, #tpu.memory_space<vmem>>, vector<8x16xf32>
    %c8_401 = arith.constant 8 : index
    %c96_402 = arith.constant 96 : index
    %254 = vector.load %arg16[%c8_401, %c96_402] : memref<64x144xf32, #tpu.memory_space<vmem>>, vector<8x16xf32>
    tpu.vector_store %arg16[%c8_401, %c96_402], %253 {strides = array<i32>} : memref<64x144xf32, #tpu.memory_space<vmem>>, vector<8x16xf32>,
    %c31_403 = arith.constant 31 : index
    %c0_404 = arith.constant 0 : index
    %255 = vector.load %arg12[%c31_403, %c0_404] : memref<100x16xf32, #tpu.memory_space<vmem>>, vector<8x16xf32>
    %c8_405 = arith.constant 8 : index
    %c112_406 = arith.constant 112 : index
    %256 = vector.load %arg16[%c8_405, %c112_406] : memref<64x144xf32, #tpu.memory_space<vmem>>, vector<8x16xf32>
    tpu.vector_store %arg16[%c8_405, %c112_406], %255 {strides = array<i32>} : memref<64x144xf32, #tpu.memory_space<vmem>>, vector<8x16xf32>,
    %c32_407 = arith.constant 32 : index
    %c0_408 = arith.constant 0 : index
    %257 = vector.load %arg12[%c32_407, %c0_408] : memref<100x16xf32, #tpu.memory_space<vmem>>, vector<8x16xf32>
    %c8_409 = arith.constant 8 : index
    %c128_410 = arith.constant 128 : index
    %258 = vector.load %arg16[%c8_409, %c128_410] : memref<64x144xf32, #tpu.memory_space<vmem>>, vector<8x16xf32>
    tpu.vector_store %arg16[%c8_409, %c128_410], %257 {strides = array<i32>} : memref<64x144xf32, #tpu.memory_space<vmem>>, vector<8x16xf32>,
    %c20_411 = arith.constant 20 : index
    %c0_412 = arith.constant 0 : index
    %259 = vector.load %arg12[%c20_411, %c0_412] : memref<100x16xf32, #tpu.memory_space<vmem>>, vector<8x16xf32>
    %c16_413 = arith.constant 16 : index
    %c0_414 = arith.constant 0 : index
    %260 = vector.load %arg16[%c16_413, %c0_414] : memref<64x144xf32, #tpu.memory_space<vmem>>, vector<8x16xf32>
    tpu.vector_store %arg16[%c16_413, %c0_414], %259 {strides = array<i32>} : memref<64x144xf32, #tpu.memory_space<vmem>>, vector<8x16xf32>,
    %c21_415 = arith.constant 21 : index
    %c0_416 = arith.constant 0 : index
    %261 = vector.load %arg12[%c21_415, %c0_416] : memref<100x16xf32, #tpu.memory_space<vmem>>, vector<8x16xf32>
    %c16_417 = arith.constant 16 : index
    %c16_418 = arith.constant 16 : index
    %262 = vector.load %arg16[%c16_417, %c16_418] : memref<64x144xf32, #tpu.memory_space<vmem>>, vector<8x16xf32>
    tpu.vector_store %arg16[%c16_417, %c16_418], %261 {strides = array<i32>} : memref<64x144xf32, #tpu.memory_space<vmem>>, vector<8x16xf32>,
    %c22_419 = arith.constant 22 : index
    %c0_420 = arith.constant 0 : index
    %263 = vector.load %arg12[%c22_419, %c0_420] : memref<100x16xf32, #tpu.memory_space<vmem>>, vector<8x16xf32>
    %c16_421 = arith.constant 16 : index
    %c32_422 = arith.constant 32 : index
    %264 = vector.load %arg16[%c16_421, %c32_422] : memref<64x144xf32, #tpu.memory_space<vmem>>, vector<8x16xf32>
    tpu.vector_store %arg16[%c16_421, %c32_422], %263 {strides = array<i32>} : memref<64x144xf32, #tpu.memory_space<vmem>>, vector<8x16xf32>,
    %c30_423 = arith.constant 30 : index
    %c0_424 = arith.constant 0 : index
    %265 = vector.load %arg12[%c30_423, %c0_424] : memref<100x16xf32, #tpu.memory_space<vmem>>, vector<8x16xf32>
    %c16_425 = arith.constant 16 : index
    %c48_426 = arith.constant 48 : index
    %266 = vector.load %arg16[%c16_425, %c48_426] : memref<64x144xf32, #tpu.memory_space<vmem>>, vector<8x16xf32>
    tpu.vector_store %arg16[%c16_425, %c48_426], %265 {strides = array<i32>} : memref<64x144xf32, #tpu.memory_space<vmem>>, vector<8x16xf32>,
    %c31_427 = arith.constant 31 : index
    %c0_428 = arith.constant 0 : index
    %267 = vector.load %arg12[%c31_427, %c0_428] : memref<100x16xf32, #tpu.memory_space<vmem>>, vector<8x16xf32>
    %c16_429 = arith.constant 16 : index
    %c64_430 = arith.constant 64 : index
    %268 = vector.load %arg16[%c16_429, %c64_430] : memref<64x144xf32, #tpu.memory_space<vmem>>, vector<8x16xf32>
    tpu.vector_store %arg16[%c16_429, %c64_430], %267 {strides = array<i32>} : memref<64x144xf32, #tpu.memory_space<vmem>>, vector<8x16xf32>,
    %c32_431 = arith.constant 32 : index
    %c0_432 = arith.constant 0 : index
    %269 = vector.load %arg12[%c32_431, %c0_432] : memref<100x16xf32, #tpu.memory_space<vmem>>, vector<8x16xf32>
    %c16_433 = arith.constant 16 : index
    %c80_434 = arith.constant 80 : index
    %270 = vector.load %arg16[%c16_433, %c80_434] : memref<64x144xf32, #tpu.memory_space<vmem>>, vector<8x16xf32>
    tpu.vector_store %arg16[%c16_433, %c80_434], %269 {strides = array<i32>} : memref<64x144xf32, #tpu.memory_space<vmem>>, vector<8x16xf32>,
    %c40_435 = arith.constant 40 : index
    %c0_436 = arith.constant 0 : index
    %271 = vector.load %arg12[%c40_435, %c0_436] : memref<100x16xf32, #tpu.memory_space<vmem>>, vector<8x16xf32>
    %c16_437 = arith.constant 16 : index
    %c96_438 = arith.constant 96 : index
    %272 = vector.load %arg16[%c16_437, %c96_438] : memref<64x144xf32, #tpu.memory_space<vmem>>, vector<8x16xf32>
    tpu.vector_store %arg16[%c16_437, %c96_438], %271 {strides = array<i32>} : memref<64x144xf32, #tpu.memory_space<vmem>>, vector<8x16xf32>,
    %c41_439 = arith.constant 41 : index
    %c0_440 = arith.constant 0 : index
    %273 = vector.load %arg12[%c41_439, %c0_440] : memref<100x16xf32, #tpu.memory_space<vmem>>, vector<8x16xf32>
    %c16_441 = arith.constant 16 : index
    %c112_442 = arith.constant 112 : index
    %274 = vector.load %arg16[%c16_441, %c112_442] : memref<64x144xf32, #tpu.memory_space<vmem>>, vector<8x16xf32>
    tpu.vector_store %arg16[%c16_441, %c112_442], %273 {strides = array<i32>} : memref<64x144xf32, #tpu.memory_space<vmem>>, vector<8x16xf32>,
    %c42 = arith.constant 42 : index
    %c0_443 = arith.constant 0 : index
    %275 = vector.load %arg12[%c42, %c0_443] : memref<100x16xf32, #tpu.memory_space<vmem>>, vector<8x16xf32>
    %c16_444 = arith.constant 16 : index
    %c128_445 = arith.constant 128 : index
    %276 = vector.load %arg16[%c16_444, %c128_445] : memref<64x144xf32, #tpu.memory_space<vmem>>, vector<8x16xf32>
    tpu.vector_store %arg16[%c16_444, %c128_445], %275 {strides = array<i32>} : memref<64x144xf32, #tpu.memory_space<vmem>>, vector<8x16xf32>,
    %c30_446 = arith.constant 30 : index
    %c0_447 = arith.constant 0 : index
    %277 = vector.load %arg12[%c30_446, %c0_447] : memref<100x16xf32, #tpu.memory_space<vmem>>, vector<8x16xf32>
    %c24_448 = arith.constant 24 : index
    %c0_449 = arith.constant 0 : index
    %278 = vector.load %arg16[%c24_448, %c0_449] : memref<64x144xf32, #tpu.memory_space<vmem>>, vector<8x16xf32>
    tpu.vector_store %arg16[%c24_448, %c0_449], %277 {strides = array<i32>} : memref<64x144xf32, #tpu.memory_space<vmem>>, vector<8x16xf32>,
    %c31_450 = arith.constant 31 : index
    %c0_451 = arith.constant 0 : index
    %279 = vector.load %arg12[%c31_450, %c0_451] : memref<100x16xf32, #tpu.memory_space<vmem>>, vector<8x16xf32>
    %c24_452 = arith.constant 24 : index
    %c16_453 = arith.constant 16 : index
    %280 = vector.load %arg16[%c24_452, %c16_453] : memref<64x144xf32, #tpu.memory_space<vmem>>, vector<8x16xf32>
    tpu.vector_store %arg16[%c24_452, %c16_453], %279 {strides = array<i32>} : memref<64x144xf32, #tpu.memory_space<vmem>>, vector<8x16xf32>,
    %c32_454 = arith.constant 32 : index
    %c0_455 = arith.constant 0 : index
    %281 = vector.load %arg12[%c32_454, %c0_455] : memref<100x16xf32, #tpu.memory_space<vmem>>, vector<8x16xf32>
    %c24_456 = arith.constant 24 : index
    %c32_457 = arith.constant 32 : index
    %282 = vector.load %arg16[%c24_456, %c32_457] : memref<64x144xf32, #tpu.memory_space<vmem>>, vector<8x16xf32>
    tpu.vector_store %arg16[%c24_456, %c32_457], %281 {strides = array<i32>} : memref<64x144xf32, #tpu.memory_space<vmem>>, vector<8x16xf32>,
    %c40_458 = arith.constant 40 : index
    %c0_459 = arith.constant 0 : index
    %283 = vector.load %arg12[%c40_458, %c0_459] : memref<100x16xf32, #tpu.memory_space<vmem>>, vector<8x16xf32>
    %c24_460 = arith.constant 24 : index
    %c48_461 = arith.constant 48 : index
    %284 = vector.load %arg16[%c24_460, %c48_461] : memref<64x144xf32, #tpu.memory_space<vmem>>, vector<8x16xf32>
    tpu.vector_store %arg16[%c24_460, %c48_461], %283 {strides = array<i32>} : memref<64x144xf32, #tpu.memory_space<vmem>>, vector<8x16xf32>,
    %c41_462 = arith.constant 41 : index
    %c0_463 = arith.constant 0 : index
    %285 = vector.load %arg12[%c41_462, %c0_463] : memref<100x16xf32, #tpu.memory_space<vmem>>, vector<8x16xf32>
    %c24_464 = arith.constant 24 : index
    %c64_465 = arith.constant 64 : index
    %286 = vector.load %arg16[%c24_464, %c64_465] : memref<64x144xf32, #tpu.memory_space<vmem>>, vector<8x16xf32>
    tpu.vector_store %arg16[%c24_464, %c64_465], %285 {strides = array<i32>} : memref<64x144xf32, #tpu.memory_space<vmem>>, vector<8x16xf32>,
    %c42_466 = arith.constant 42 : index
    %c0_467 = arith.constant 0 : index
    %287 = vector.load %arg12[%c42_466, %c0_467] : memref<100x16xf32, #tpu.memory_space<vmem>>, vector<8x16xf32>
    %c24_468 = arith.constant 24 : index
    %c80_469 = arith.constant 80 : index
    %288 = vector.load %arg16[%c24_468, %c80_469] : memref<64x144xf32, #tpu.memory_space<vmem>>, vector<8x16xf32>
    tpu.vector_store %arg16[%c24_468, %c80_469], %287 {strides = array<i32>} : memref<64x144xf32, #tpu.memory_space<vmem>>, vector<8x16xf32>,
    %c50 = arith.constant 50 : index
    %c0_470 = arith.constant 0 : index
    %289 = vector.load %arg12[%c50, %c0_470] : memref<100x16xf32, #tpu.memory_space<vmem>>, vector<8x16xf32>
    %c24_471 = arith.constant 24 : index
    %c96_472 = arith.constant 96 : index
    %290 = vector.load %arg16[%c24_471, %c96_472] : memref<64x144xf32, #tpu.memory_space<vmem>>, vector<8x16xf32>
    tpu.vector_store %arg16[%c24_471, %c96_472], %289 {strides = array<i32>} : memref<64x144xf32, #tpu.memory_space<vmem>>, vector<8x16xf32>,
    %c51_473 = arith.constant 51 : index
    %c0_474 = arith.constant 0 : index
    %291 = vector.load %arg12[%c51_473, %c0_474] : memref<100x16xf32, #tpu.memory_space<vmem>>, vector<8x16xf32>
    %c24_475 = arith.constant 24 : index
    %c112_476 = arith.constant 112 : index
    %292 = vector.load %arg16[%c24_475, %c112_476] : memref<64x144xf32, #tpu.memory_space<vmem>>, vector<8x16xf32>
    tpu.vector_store %arg16[%c24_475, %c112_476], %291 {strides = array<i32>} : memref<64x144xf32, #tpu.memory_space<vmem>>, vector<8x16xf32>,
    %c52 = arith.constant 52 : index
    %c0_477 = arith.constant 0 : index
    %293 = vector.load %arg12[%c52, %c0_477] : memref<100x16xf32, #tpu.memory_space<vmem>>, vector<8x16xf32>
    %c24_478 = arith.constant 24 : index
    %c128_479 = arith.constant 128 : index
    %294 = vector.load %arg16[%c24_478, %c128_479] : memref<64x144xf32, #tpu.memory_space<vmem>>, vector<8x16xf32>
    tpu.vector_store %arg16[%c24_478, %c128_479], %293 {strides = array<i32>} : memref<64x144xf32, #tpu.memory_space<vmem>>, vector<8x16xf32>,
    %c40_480 = arith.constant 40 : index
    %c0_481 = arith.constant 0 : index
    %295 = vector.load %arg12[%c40_480, %c0_481] : memref<100x16xf32, #tpu.memory_space<vmem>>, vector<8x16xf32>
    %c32_482 = arith.constant 32 : index
    %c0_483 = arith.constant 0 : index
    %296 = vector.load %arg16[%c32_482, %c0_483] : memref<64x144xf32, #tpu.memory_space<vmem>>, vector<8x16xf32>
    tpu.vector_store %arg16[%c32_482, %c0_483], %295 {strides = array<i32>} : memref<64x144xf32, #tpu.memory_space<vmem>>, vector<8x16xf32>,
    %c41_484 = arith.constant 41 : index
    %c0_485 = arith.constant 0 : index
    %297 = vector.load %arg12[%c41_484, %c0_485] : memref<100x16xf32, #tpu.memory_space<vmem>>, vector<8x16xf32>
    %c32_486 = arith.constant 32 : index
    %c16_487 = arith.constant 16 : index
    %298 = vector.load %arg16[%c32_486, %c16_487] : memref<64x144xf32, #tpu.memory_space<vmem>>, vector<8x16xf32>
    tpu.vector_store %arg16[%c32_486, %c16_487], %297 {strides = array<i32>} : memref<64x144xf32, #tpu.memory_space<vmem>>, vector<8x16xf32>,
    %c42_488 = arith.constant 42 : index
    %c0_489 = arith.constant 0 : index
    %299 = vector.load %arg12[%c42_488, %c0_489] : memref<100x16xf32, #tpu.memory_space<vmem>>, vector<8x16xf32>
    %c32_490 = arith.constant 32 : index
    %c32_491 = arith.constant 32 : index
    %300 = vector.load %arg16[%c32_490, %c32_491] : memref<64x144xf32, #tpu.memory_space<vmem>>, vector<8x16xf32>
    tpu.vector_store %arg16[%c32_490, %c32_491], %299 {strides = array<i32>} : memref<64x144xf32, #tpu.memory_space<vmem>>, vector<8x16xf32>,
    %c50_492 = arith.constant 50 : index
    %c0_493 = arith.constant 0 : index
    %301 = vector.load %arg12[%c50_492, %c0_493] : memref<100x16xf32, #tpu.memory_space<vmem>>, vector<8x16xf32>
    %c32_494 = arith.constant 32 : index
    %c48_495 = arith.constant 48 : index
    %302 = vector.load %arg16[%c32_494, %c48_495] : memref<64x144xf32, #tpu.memory_space<vmem>>, vector<8x16xf32>
    tpu.vector_store %arg16[%c32_494, %c48_495], %301 {strides = array<i32>} : memref<64x144xf32, #tpu.memory_space<vmem>>, vector<8x16xf32>,
    %c51_496 = arith.constant 51 : index
    %c0_497 = arith.constant 0 : index
    %303 = vector.load %arg12[%c51_496, %c0_497] : memref<100x16xf32, #tpu.memory_space<vmem>>, vector<8x16xf32>
    %c32_498 = arith.constant 32 : index
    %c64_499 = arith.constant 64 : index
    %304 = vector.load %arg16[%c32_498, %c64_499] : memref<64x144xf32, #tpu.memory_space<vmem>>, vector<8x16xf32>
    tpu.vector_store %arg16[%c32_498, %c64_499], %303 {strides = array<i32>} : memref<64x144xf32, #tpu.memory_space<vmem>>, vector<8x16xf32>,
    %c52_500 = arith.constant 52 : index
    %c0_501 = arith.constant 0 : index
    %305 = vector.load %arg12[%c52_500, %c0_501] : memref<100x16xf32, #tpu.memory_space<vmem>>, vector<8x16xf32>
    %c32_502 = arith.constant 32 : index
    %c80_503 = arith.constant 80 : index
    %306 = vector.load %arg16[%c32_502, %c80_503] : memref<64x144xf32, #tpu.memory_space<vmem>>, vector<8x16xf32>
    tpu.vector_store %arg16[%c32_502, %c80_503], %305 {strides = array<i32>} : memref<64x144xf32, #tpu.memory_space<vmem>>, vector<8x16xf32>,
    %c60 = arith.constant 60 : index
    %c0_504 = arith.constant 0 : index
    %307 = vector.load %arg12[%c60, %c0_504] : memref<100x16xf32, #tpu.memory_space<vmem>>, vector<8x16xf32>
    %c32_505 = arith.constant 32 : index
    %c96_506 = arith.constant 96 : index
    %308 = vector.load %arg16[%c32_505, %c96_506] : memref<64x144xf32, #tpu.memory_space<vmem>>, vector<8x16xf32>
    tpu.vector_store %arg16[%c32_505, %c96_506], %307 {strides = array<i32>} : memref<64x144xf32, #tpu.memory_space<vmem>>, vector<8x16xf32>,
    %c61_507 = arith.constant 61 : index
    %c0_508 = arith.constant 0 : index
    %309 = vector.load %arg12[%c61_507, %c0_508] : memref<100x16xf32, #tpu.memory_space<vmem>>, vector<8x16xf32>
    %c32_509 = arith.constant 32 : index
    %c112_510 = arith.constant 112 : index
    %310 = vector.load %arg16[%c32_509, %c112_510] : memref<64x144xf32, #tpu.memory_space<vmem>>, vector<8x16xf32>
    tpu.vector_store %arg16[%c32_509, %c112_510], %309 {strides = array<i32>} : memref<64x144xf32, #tpu.memory_space<vmem>>, vector<8x16xf32>,
    %c62 = arith.constant 62 : index
    %c0_511 = arith.constant 0 : index
    %311 = vector.load %arg12[%c62, %c0_511] : memref<100x16xf32, #tpu.memory_space<vmem>>, vector<8x16xf32>
    %c32_512 = arith.constant 32 : index
    %c128_513 = arith.constant 128 : index
    %312 = vector.load %arg16[%c32_512, %c128_513] : memref<64x144xf32, #tpu.memory_space<vmem>>, vector<8x16xf32>
    tpu.vector_store %arg16[%c32_512, %c128_513], %311 {strides = array<i32>} : memref<64x144xf32, #tpu.memory_space<vmem>>, vector<8x16xf32>,
    %c50_514 = arith.constant 50 : index
    %c0_515 = arith.constant 0 : index
    %313 = vector.load %arg12[%c50_514, %c0_515] : memref<100x16xf32, #tpu.memory_space<vmem>>, vector<8x16xf32>
    %c40_516 = arith.constant 40 : index
    %c0_517 = arith.constant 0 : index
    %314 = vector.load %arg16[%c40_516, %c0_517] : memref<64x144xf32, #tpu.memory_space<vmem>>, vector<8x16xf32>
    tpu.vector_store %arg16[%c40_516, %c0_517], %313 {strides = array<i32>} : memref<64x144xf32, #tpu.memory_space<vmem>>, vector<8x16xf32>,
    %c51_518 = arith.constant 51 : index
    %c0_519 = arith.constant 0 : index
    %315 = vector.load %arg12[%c51_518, %c0_519] : memref<100x16xf32, #tpu.memory_space<vmem>>, vector<8x16xf32>
    %c40_520 = arith.constant 40 : index
    %c16_521 = arith.constant 16 : index
    %316 = vector.load %arg16[%c40_520, %c16_521] : memref<64x144xf32, #tpu.memory_space<vmem>>, vector<8x16xf32>
    tpu.vector_store %arg16[%c40_520, %c16_521], %315 {strides = array<i32>} : memref<64x144xf32, #tpu.memory_space<vmem>>, vector<8x16xf32>,
    %c52_522 = arith.constant 52 : index
    %c0_523 = arith.constant 0 : index
    %317 = vector.load %arg12[%c52_522, %c0_523] : memref<100x16xf32, #tpu.memory_space<vmem>>, vector<8x16xf32>
    %c40_524 = arith.constant 40 : index
    %c32_525 = arith.constant 32 : index
    %318 = vector.load %arg16[%c40_524, %c32_525] : memref<64x144xf32, #tpu.memory_space<vmem>>, vector<8x16xf32>
    tpu.vector_store %arg16[%c40_524, %c32_525], %317 {strides = array<i32>} : memref<64x144xf32, #tpu.memory_space<vmem>>, vector<8x16xf32>,
    %c60_526 = arith.constant 60 : index
    %c0_527 = arith.constant 0 : index
    %319 = vector.load %arg12[%c60_526, %c0_527] : memref<100x16xf32, #tpu.memory_space<vmem>>, vector<8x16xf32>
    %c40_528 = arith.constant 40 : index
    %c48_529 = arith.constant 48 : index
    %320 = vector.load %arg16[%c40_528, %c48_529] : memref<64x144xf32, #tpu.memory_space<vmem>>, vector<8x16xf32>
    tpu.vector_store %arg16[%c40_528, %c48_529], %319 {strides = array<i32>} : memref<64x144xf32, #tpu.memory_space<vmem>>, vector<8x16xf32>,
    %c61_530 = arith.constant 61 : index
    %c0_531 = arith.constant 0 : index
    %321 = vector.load %arg12[%c61_530, %c0_531] : memref<100x16xf32, #tpu.memory_space<vmem>>, vector<8x16xf32>
    %c40_532 = arith.constant 40 : index
    %c64_533 = arith.constant 64 : index
    %322 = vector.load %arg16[%c40_532, %c64_533] : memref<64x144xf32, #tpu.memory_space<vmem>>, vector<8x16xf32>
    tpu.vector_store %arg16[%c40_532, %c64_533], %321 {strides = array<i32>} : memref<64x144xf32, #tpu.memory_space<vmem>>, vector<8x16xf32>,
    %c62_534 = arith.constant 62 : index
    %c0_535 = arith.constant 0 : index
    %323 = vector.load %arg12[%c62_534, %c0_535] : memref<100x16xf32, #tpu.memory_space<vmem>>, vector<8x16xf32>
    %c40_536 = arith.constant 40 : index
    %c80_537 = arith.constant 80 : index
    %324 = vector.load %arg16[%c40_536, %c80_537] : memref<64x144xf32, #tpu.memory_space<vmem>>, vector<8x16xf32>
    tpu.vector_store %arg16[%c40_536, %c80_537], %323 {strides = array<i32>} : memref<64x144xf32, #tpu.memory_space<vmem>>, vector<8x16xf32>,
    %c70 = arith.constant 70 : index
    %c0_538 = arith.constant 0 : index
    %325 = vector.load %arg12[%c70, %c0_538] : memref<100x16xf32, #tpu.memory_space<vmem>>, vector<8x16xf32>
    %c40_539 = arith.constant 40 : index
    %c96_540 = arith.constant 96 : index
    %326 = vector.load %arg16[%c40_539, %c96_540] : memref<64x144xf32, #tpu.memory_space<vmem>>, vector<8x16xf32>
    tpu.vector_store %arg16[%c40_539, %c96_540], %325 {strides = array<i32>} : memref<64x144xf32, #tpu.memory_space<vmem>>, vector<8x16xf32>,
    %c71_541 = arith.constant 71 : index
    %c0_542 = arith.constant 0 : index
    %327 = vector.load %arg12[%c71_541, %c0_542] : memref<100x16xf32, #tpu.memory_space<vmem>>, vector<8x16xf32>
    %c40_543 = arith.constant 40 : index
    %c112_544 = arith.constant 112 : index
    %328 = vector.load %arg16[%c40_543, %c112_544] : memref<64x144xf32, #tpu.memory_space<vmem>>, vector<8x16xf32>
    tpu.vector_store %arg16[%c40_543, %c112_544], %327 {strides = array<i32>} : memref<64x144xf32, #tpu.memory_space<vmem>>, vector<8x16xf32>,
    %c72_545 = arith.constant 72 : index
    %c0_546 = arith.constant 0 : index
    %329 = vector.load %arg12[%c72_545, %c0_546] : memref<100x16xf32, #tpu.memory_space<vmem>>, vector<8x16xf32>
    %c40_547 = arith.constant 40 : index
    %c128_548 = arith.constant 128 : index
    %330 = vector.load %arg16[%c40_547, %c128_548] : memref<64x144xf32, #tpu.memory_space<vmem>>, vector<8x16xf32>
    tpu.vector_store %arg16[%c40_547, %c128_548], %329 {strides = array<i32>} : memref<64x144xf32, #tpu.memory_space<vmem>>, vector<8x16xf32>,
    %c60_549 = arith.constant 60 : index
    %c0_550 = arith.constant 0 : index
    %331 = vector.load %arg12[%c60_549, %c0_550] : memref<100x16xf32, #tpu.memory_space<vmem>>, vector<8x16xf32>
    %c48_551 = arith.constant 48 : index
    %c0_552 = arith.constant 0 : index
    %332 = vector.load %arg16[%c48_551, %c0_552] : memref<64x144xf32, #tpu.memory_space<vmem>>, vector<8x16xf32>
    tpu.vector_store %arg16[%c48_551, %c0_552], %331 {strides = array<i32>} : memref<64x144xf32, #tpu.memory_space<vmem>>, vector<8x16xf32>,
    %c61_553 = arith.constant 61 : index
    %c0_554 = arith.constant 0 : index
    %333 = vector.load %arg12[%c61_553, %c0_554] : memref<100x16xf32, #tpu.memory_space<vmem>>, vector<8x16xf32>
    %c48_555 = arith.constant 48 : index
    %c16_556 = arith.constant 16 : index
    %334 = vector.load %arg16[%c48_555, %c16_556] : memref<64x144xf32, #tpu.memory_space<vmem>>, vector<8x16xf32>
    tpu.vector_store %arg16[%c48_555, %c16_556], %333 {strides = array<i32>} : memref<64x144xf32, #tpu.memory_space<vmem>>, vector<8x16xf32>,
    %c62_557 = arith.constant 62 : index
    %c0_558 = arith.constant 0 : index
    %335 = vector.load %arg12[%c62_557, %c0_558] : memref<100x16xf32, #tpu.memory_space<vmem>>, vector<8x16xf32>
    %c48_559 = arith.constant 48 : index
    %c32_560 = arith.constant 32 : index
    %336 = vector.load %arg16[%c48_559, %c32_560] : memref<64x144xf32, #tpu.memory_space<vmem>>, vector<8x16xf32>
    tpu.vector_store %arg16[%c48_559, %c32_560], %335 {strides = array<i32>} : memref<64x144xf32, #tpu.memory_space<vmem>>, vector<8x16xf32>,
    %c70_561 = arith.constant 70 : index
    %c0_562 = arith.constant 0 : index
    %337 = vector.load %arg12[%c70_561, %c0_562] : memref<100x16xf32, #tpu.memory_space<vmem>>, vector<8x16xf32>
    %c48_563 = arith.constant 48 : index
    %c48_564 = arith.constant 48 : index
    %338 = vector.load %arg16[%c48_563, %c48_564] : memref<64x144xf32, #tpu.memory_space<vmem>>, vector<8x16xf32>
    tpu.vector_store %arg16[%c48_563, %c48_564], %337 {strides = array<i32>} : memref<64x144xf32, #tpu.memory_space<vmem>>, vector<8x16xf32>,
    %c71_565 = arith.constant 71 : index
    %c0_566 = arith.constant 0 : index
    %339 = vector.load %arg12[%c71_565, %c0_566] : memref<100x16xf32, #tpu.memory_space<vmem>>, vector<8x16xf32>
    %c48_567 = arith.constant 48 : index
    %c64_568 = arith.constant 64 : index
    %340 = vector.load %arg16[%c48_567, %c64_568] : memref<64x144xf32, #tpu.memory_space<vmem>>, vector<8x16xf32>
    tpu.vector_store %arg16[%c48_567, %c64_568], %339 {strides = array<i32>} : memref<64x144xf32, #tpu.memory_space<vmem>>, vector<8x16xf32>,
    %c72_569 = arith.constant 72 : index
    %c0_570 = arith.constant 0 : index
    %341 = vector.load %arg12[%c72_569, %c0_570] : memref<100x16xf32, #tpu.memory_space<vmem>>, vector<8x16xf32>
    %c48_571 = arith.constant 48 : index
    %c80_572 = arith.constant 80 : index
    %342 = vector.load %arg16[%c48_571, %c80_572] : memref<64x144xf32, #tpu.memory_space<vmem>>, vector<8x16xf32>
    tpu.vector_store %arg16[%c48_571, %c80_572], %341 {strides = array<i32>} : memref<64x144xf32, #tpu.memory_space<vmem>>, vector<8x16xf32>,
    %c80_573 = arith.constant 80 : index
    %c0_574 = arith.constant 0 : index
    %343 = vector.load %arg12[%c80_573, %c0_574] : memref<100x16xf32, #tpu.memory_space<vmem>>, vector<8x16xf32>
    %c48_575 = arith.constant 48 : index
    %c96_576 = arith.constant 96 : index
    %344 = vector.load %arg16[%c48_575, %c96_576] : memref<64x144xf32, #tpu.memory_space<vmem>>, vector<8x16xf32>
    tpu.vector_store %arg16[%c48_575, %c96_576], %343 {strides = array<i32>} : memref<64x144xf32, #tpu.memory_space<vmem>>, vector<8x16xf32>,
    %c81_577 = arith.constant 81 : index
    %c0_578 = arith.constant 0 : index
    %345 = vector.load %arg12[%c81_577, %c0_578] : memref<100x16xf32, #tpu.memory_space<vmem>>, vector<8x16xf32>
    %c48_579 = arith.constant 48 : index
    %c112_580 = arith.constant 112 : index
    %346 = vector.load %arg16[%c48_579, %c112_580] : memref<64x144xf32, #tpu.memory_space<vmem>>, vector<8x16xf32>
    tpu.vector_store %arg16[%c48_579, %c112_580], %345 {strides = array<i32>} : memref<64x144xf32, #tpu.memory_space<vmem>>, vector<8x16xf32>,
    %c82 = arith.constant 82 : index
    %c0_581 = arith.constant 0 : index
    %347 = vector.load %arg12[%c82, %c0_581] : memref<100x16xf32, #tpu.memory_space<vmem>>, vector<8x16xf32>
    %c48_582 = arith.constant 48 : index
    %c128_583 = arith.constant 128 : index
    %348 = vector.load %arg16[%c48_582, %c128_583] : memref<64x144xf32, #tpu.memory_space<vmem>>, vector<8x16xf32>
    tpu.vector_store %arg16[%c48_582, %c128_583], %347 {strides = array<i32>} : memref<64x144xf32, #tpu.memory_space<vmem>>, vector<8x16xf32>,
    %c70_584 = arith.constant 70 : index
    %c0_585 = arith.constant 0 : index
    %349 = vector.load %arg12[%c70_584, %c0_585] : memref<100x16xf32, #tpu.memory_space<vmem>>, vector<8x16xf32>
    %c56_586 = arith.constant 56 : index
    %c0_587 = arith.constant 0 : index
    %350 = vector.load %arg16[%c56_586, %c0_587] : memref<64x144xf32, #tpu.memory_space<vmem>>, vector<8x16xf32>
    tpu.vector_store %arg16[%c56_586, %c0_587], %349 {strides = array<i32>} : memref<64x144xf32, #tpu.memory_space<vmem>>, vector<8x16xf32>,
    %c71_588 = arith.constant 71 : index
    %c0_589 = arith.constant 0 : index
    %351 = vector.load %arg12[%c71_588, %c0_589] : memref<100x16xf32, #tpu.memory_space<vmem>>, vector<8x16xf32>
    %c56_590 = arith.constant 56 : index
    %c16_591 = arith.constant 16 : index
    %352 = vector.load %arg16[%c56_590, %c16_591] : memref<64x144xf32, #tpu.memory_space<vmem>>, vector<8x16xf32>
    tpu.vector_store %arg16[%c56_590, %c16_591], %351 {strides = array<i32>} : memref<64x144xf32, #tpu.memory_space<vmem>>, vector<8x16xf32>,
    %c72_592 = arith.constant 72 : index
    %c0_593 = arith.constant 0 : index
    %353 = vector.load %arg12[%c72_592, %c0_593] : memref<100x16xf32, #tpu.memory_space<vmem>>, vector<8x16xf32>
    %c56_594 = arith.constant 56 : index
    %c32_595 = arith.constant 32 : index
    %354 = vector.load %arg16[%c56_594, %c32_595] : memref<64x144xf32, #tpu.memory_space<vmem>>, vector<8x16xf32>
    tpu.vector_store %arg16[%c56_594, %c32_595], %353 {strides = array<i32>} : memref<64x144xf32, #tpu.memory_space<vmem>>, vector<8x16xf32>,
    %c80_596 = arith.constant 80 : index
    %c0_597 = arith.constant 0 : index
    %355 = vector.load %arg12[%c80_596, %c0_597] : memref<100x16xf32, #tpu.memory_space<vmem>>, vector<8x16xf32>
    %c56_598 = arith.constant 56 : index
    %c48_599 = arith.constant 48 : index
    %356 = vector.load %arg16[%c56_598, %c48_599] : memref<64x144xf32, #tpu.memory_space<vmem>>, vector<8x16xf32>
    tpu.vector_store %arg16[%c56_598, %c48_599], %355 {strides = array<i32>} : memref<64x144xf32, #tpu.memory_space<vmem>>, vector<8x16xf32>,
    %c81_600 = arith.constant 81 : index
    %c0_601 = arith.constant 0 : index
    %357 = vector.load %arg12[%c81_600, %c0_601] : memref<100x16xf32, #tpu.memory_space<vmem>>, vector<8x16xf32>
    %c56_602 = arith.constant 56 : index
    %c64_603 = arith.constant 64 : index
    %358 = vector.load %arg16[%c56_602, %c64_603] : memref<64x144xf32, #tpu.memory_space<vmem>>, vector<8x16xf32>
    tpu.vector_store %arg16[%c56_602, %c64_603], %357 {strides = array<i32>} : memref<64x144xf32, #tpu.memory_space<vmem>>, vector<8x16xf32>,
    %c82_604 = arith.constant 82 : index
    %c0_605 = arith.constant 0 : index
    %359 = vector.load %arg12[%c82_604, %c0_605] : memref<100x16xf32, #tpu.memory_space<vmem>>, vector<8x16xf32>
    %c56_606 = arith.constant 56 : index
    %c80_607 = arith.constant 80 : index
    %360 = vector.load %arg16[%c56_606, %c80_607] : memref<64x144xf32, #tpu.memory_space<vmem>>, vector<8x16xf32>
    tpu.vector_store %arg16[%c56_606, %c80_607], %359 {strides = array<i32>} : memref<64x144xf32, #tpu.memory_space<vmem>>, vector<8x16xf32>,
    %c90_608 = arith.constant 90 : index
    %c0_609 = arith.constant 0 : index
    %361 = vector.load %arg12[%c90_608, %c0_609] : memref<100x16xf32, #tpu.memory_space<vmem>>, vector<8x16xf32>
    %c56_610 = arith.constant 56 : index
    %c96_611 = arith.constant 96 : index
    %362 = vector.load %arg16[%c56_610, %c96_611] : memref<64x144xf32, #tpu.memory_space<vmem>>, vector<8x16xf32>
    tpu.vector_store %arg16[%c56_610, %c96_611], %361 {strides = array<i32>} : memref<64x144xf32, #tpu.memory_space<vmem>>, vector<8x16xf32>,
    %c91_612 = arith.constant 91 : index
    %c0_613 = arith.constant 0 : index
    %363 = vector.load %arg12[%c91_612, %c0_613] : memref<100x16xf32, #tpu.memory_space<vmem>>, vector<8x16xf32>
    %c56_614 = arith.constant 56 : index
    %c112_615 = arith.constant 112 : index
    %364 = vector.load %arg16[%c56_614, %c112_615] : memref<64x144xf32, #tpu.memory_space<vmem>>, vector<8x16xf32>
    tpu.vector_store %arg16[%c56_614, %c112_615], %363 {strides = array<i32>} : memref<64x144xf32, #tpu.memory_space<vmem>>, vector<8x16xf32>,
    %c92_616 = arith.constant 92 : index
    %c0_617 = arith.constant 0 : index
    %365 = vector.load %arg12[%c92_616, %c0_617] : memref<100x16xf32, #tpu.memory_space<vmem>>, vector<8x16xf32>
    %c56_618 = arith.constant 56 : index
    %c128_619 = arith.constant 128 : index
    %366 = vector.load %arg16[%c56_618, %c128_619] : memref<64x144xf32, #tpu.memory_space<vmem>>, vector<8x16xf32>
    tpu.vector_store %arg16[%c56_618, %c128_619], %365 {strides = array<i32>} : memref<64x144xf32, #tpu.memory_space<vmem>>, vector<8x16xf32>,
    %c0_620 = arith.constant 0 : index
    %c0_621 = arith.constant 0 : index
    %367 = vector.load %arg16[%c0_620, %c0_621] : memref<64x144xf32, #tpu.memory_space<vmem>>, vector<64x144xf32>
    %c0_622 = arith.constant 0 : index
    %c0_623 = arith.constant 0 : index
    %368 = vector.load %arg4[%c0_622, %c0_623] : memref<144x16xf32, #tpu.memory_space<vmem>>, vector<144x16xf32>
    %cst_624 = arith.constant dense<0.000000e+00> : vector<64x16xf32>
    %369 = tpu.matmul %367, %368, %cst_624 {dimension_numbers = #tpu.dot_dimension_numbers<[1], [0], [0], [1], [0, 0, 1, 1], [], []>} : vector<64x144xf32>, vector<144x16xf32>, vector<64x16xf32> -> vector<64x16xf32>
    %c0_625 = arith.constant 0 : index
    %c0_626 = arith.constant 0 : index
    %370 = vector.load %arg5[%c0_625, %c0_626] : memref<1x16xf32, #tpu.memory_space<vmem>>, vector<1x16xf32>
    %371 = vector.broadcast %370 : vector<1x16xf32> to vector<64x16xf32>
    %372 = arith.addf %369, %371 : vector<64x16xf32>
    %cst_627 = arith.constant 5.000000e-01 : f32
    %373 = vector.broadcast %cst_627 : f32 to vector<64x16xf32>
    %374 = arith.mulf %373, %372 : vector<64x16xf32>
    %cst_628 = arith.constant 0.707106769 : f32
    %375 = vector.broadcast %cst_628 : f32 to vector<64x16xf32>
    %376 = arith.mulf %372, %375 : vector<64x16xf32>
    %377 = math.erf %376 : vector<64x16xf32>
    %cst_629 = arith.constant 1.000000e+00 : f32
    %378 = vector.broadcast %cst_629 : f32 to vector<64x16xf32>
    %379 = arith.addf %378, %377 : vector<64x16xf32>
    %380 = arith.mulf %374, %379 : vector<64x16xf32>
    %c0_630 = arith.constant 0 : index
    %c0_631 = arith.constant 0 : index
    %381 = vector.load %arg20[%c0_630, %c0_631] : memref<64x16xf32, #tpu.memory_space<vmem>>, vector<64x16xf32>
    tpu.vector_store %arg20[%c0_630, %c0_631], %380 {strides = array<i32>} : memref<64x16xf32, #tpu.memory_space<vmem>>, vector<64x16xf32>,
    %c0_632 = arith.constant 0 : index
    %c0_633 = arith.constant 0 : index
    %382 = vector.load %arg20[%c0_632, %c0_633] : memref<64x16xf32, #tpu.memory_space<vmem>>, vector<8x16xf32>
    %c11_634 = arith.constant 11 : index
    %c0_635 = arith.constant 0 : index
    %383 = vector.load %arg13[%c11_634, %c0_635] : memref<100x16xf32, #tpu.memory_space<vmem>>, vector<8x16xf32>
    tpu.vector_store %arg13[%c11_634, %c0_635], %382 {strides = array<i32>} : memref<100x16xf32, #tpu.memory_space<vmem>>, vector<8x16xf32>,
    %c8_636 = arith.constant 8 : index
    %c0_637 = arith.constant 0 : index
    %384 = vector.load %arg20[%c8_636, %c0_637] : memref<64x16xf32, #tpu.memory_space<vmem>>, vector<8x16xf32>
    %c21_638 = arith.constant 21 : index
    %c0_639 = arith.constant 0 : index
    %385 = vector.load %arg13[%c21_638, %c0_639] : memref<100x16xf32, #tpu.memory_space<vmem>>, vector<8x16xf32>
    tpu.vector_store %arg13[%c21_638, %c0_639], %384 {strides = array<i32>} : memref<100x16xf32, #tpu.memory_space<vmem>>, vector<8x16xf32>,
    %c16_640 = arith.constant 16 : index
    %c0_641 = arith.constant 0 : index
    %386 = vector.load %arg20[%c16_640, %c0_641] : memref<64x16xf32, #tpu.memory_space<vmem>>, vector<8x16xf32>
    %c31_642 = arith.constant 31 : index
    %c0_643 = arith.constant 0 : index
    %387 = vector.load %arg13[%c31_642, %c0_643] : memref<100x16xf32, #tpu.memory_space<vmem>>, vector<8x16xf32>
    tpu.vector_store %arg13[%c31_642, %c0_643], %386 {strides = array<i32>} : memref<100x16xf32, #tpu.memory_space<vmem>>, vector<8x16xf32>,
    %c24_644 = arith.constant 24 : index
    %c0_645 = arith.constant 0 : index
    %388 = vector.load %arg20[%c24_644, %c0_645] : memref<64x16xf32, #tpu.memory_space<vmem>>, vector<8x16xf32>
    %c41_646 = arith.constant 41 : index
    %c0_647 = arith.constant 0 : index
    %389 = vector.load %arg13[%c41_646, %c0_647] : memref<100x16xf32, #tpu.memory_space<vmem>>, vector<8x16xf32>
    tpu.vector_store %arg13[%c41_646, %c0_647], %388 {strides = array<i32>} : memref<100x16xf32, #tpu.memory_space<vmem>>, vector<8x16xf32>,
    %c32_648 = arith.constant 32 : index
    %c0_649 = arith.constant 0 : index
    %390 = vector.load %arg20[%c32_648, %c0_649] : memref<64x16xf32, #tpu.memory_space<vmem>>, vector<8x16xf32>
    %c51_650 = arith.constant 51 : index
    %c0_651 = arith.constant 0 : index
    %391 = vector.load %arg13[%c51_650, %c0_651] : memref<100x16xf32, #tpu.memory_space<vmem>>, vector<8x16xf32>
    tpu.vector_store %arg13[%c51_650, %c0_651], %390 {strides = array<i32>} : memref<100x16xf32, #tpu.memory_space<vmem>>, vector<8x16xf32>,
    %c40_652 = arith.constant 40 : index
    %c0_653 = arith.constant 0 : index
    %392 = vector.load %arg20[%c40_652, %c0_653] : memref<64x16xf32, #tpu.memory_space<vmem>>, vector<8x16xf32>
    %c61_654 = arith.constant 61 : index
    %c0_655 = arith.constant 0 : index
    %393 = vector.load %arg13[%c61_654, %c0_655] : memref<100x16xf32, #tpu.memory_space<vmem>>, vector<8x16xf32>
    tpu.vector_store %arg13[%c61_654, %c0_655], %392 {strides = array<i32>} : memref<100x16xf32, #tpu.memory_space<vmem>>, vector<8x16xf32>,
    %c48_656 = arith.constant 48 : index
    %c0_657 = arith.constant 0 : index
    %394 = vector.load %arg20[%c48_656, %c0_657] : memref<64x16xf32, #tpu.memory_space<vmem>>, vector<8x16xf32>
    %c71_658 = arith.constant 71 : index
    %c0_659 = arith.constant 0 : index
    %395 = vector.load %arg13[%c71_658, %c0_659] : memref<100x16xf32, #tpu.memory_space<vmem>>, vector<8x16xf32>
    tpu.vector_store %arg13[%c71_658, %c0_659], %394 {strides = array<i32>} : memref<100x16xf32, #tpu.memory_space<vmem>>, vector<8x16xf32>,
    %c56_660 = arith.constant 56 : index
    %c0_661 = arith.constant 0 : index
    %396 = vector.load %arg20[%c56_660, %c0_661] : memref<64x16xf32, #tpu.memory_space<vmem>>, vector<8x16xf32>
    %c81_662 = arith.constant 81 : index
    %c0_663 = arith.constant 0 : index
    %397 = vector.load %arg13[%c81_662, %c0_663] : memref<100x16xf32, #tpu.memory_space<vmem>>, vector<8x16xf32>
    tpu.vector_store %arg13[%c81_662, %c0_663], %396 {strides = array<i32>} : memref<100x16xf32, #tpu.memory_space<vmem>>, vector<8x16xf32>,
    %c0_664 = arith.constant 0 : index
    %c0_665 = arith.constant 0 : index
    %398 = tpu.strided_load %arg13[%c0_664, %c0_665] {strides = array<i32: 2, 1>} : memref<100x16xf32, #tpu.memory_space<vmem>>, vector<4x16xf32>
    %c0_666 = arith.constant 0 : index
    %c0_667 = arith.constant 0 : index
    %399 = vector.load %arg17[%c0_666, %c0_667] : memref<16x144xf32, #tpu.memory_space<vmem>>, vector<4x16xf32>
    tpu.vector_store %arg17[%c0_666, %c0_667], %398 {strides = array<i32>} : memref<16x144xf32, #tpu.memory_space<vmem>>, vector<4x16xf32>,
    %c1_668 = arith.constant 1 : index
    %c0_669 = arith.constant 0 : index
    %400 = tpu.strided_load %arg13[%c1_668, %c0_669] {strides = array<i32: 2, 1>} : memref<100x16xf32, #tpu.memory_space<vmem>>, vector<4x16xf32>
    %c0_670 = arith.constant 0 : index
    %c16_671 = arith.constant 16 : index
    %401 = vector.load %arg17[%c0_670, %c16_671] : memref<16x144xf32, #tpu.memory_space<vmem>>, vector<4x16xf32>
    tpu.vector_store %arg17[%c0_670, %c16_671], %400 {strides = array<i32>} : memref<16x144xf32, #tpu.memory_space<vmem>>, vector<4x16xf32>,
    %c2_672 = arith.constant 2 : index
    %c0_673 = arith.constant 0 : index
    %402 = tpu.strided_load %arg13[%c2_672, %c0_673] {strides = array<i32: 2, 1>} : memref<100x16xf32, #tpu.memory_space<vmem>>, vector<4x16xf32>
    %c0_674 = arith.constant 0 : index
    %c32_675 = arith.constant 32 : index
    %403 = vector.load %arg17[%c0_674, %c32_675] : memref<16x144xf32, #tpu.memory_space<vmem>>, vector<4x16xf32>
    tpu.vector_store %arg17[%c0_674, %c32_675], %402 {strides = array<i32>} : memref<16x144xf32, #tpu.memory_space<vmem>>, vector<4x16xf32>,
    %c10_676 = arith.constant 10 : index
    %c0_677 = arith.constant 0 : index
    %404 = tpu.strided_load %arg13[%c10_676, %c0_677] {strides = array<i32: 2, 1>} : memref<100x16xf32, #tpu.memory_space<vmem>>, vector<4x16xf32>
    %c0_678 = arith.constant 0 : index
    %c48_679 = arith.constant 48 : index
    %405 = vector.load %arg17[%c0_678, %c48_679] : memref<16x144xf32, #tpu.memory_space<vmem>>, vector<4x16xf32>
    tpu.vector_store %arg17[%c0_678, %c48_679], %404 {strides = array<i32>} : memref<16x144xf32, #tpu.memory_space<vmem>>, vector<4x16xf32>,
    %c11_680 = arith.constant 11 : index
    %c0_681 = arith.constant 0 : index
    %406 = tpu.strided_load %arg13[%c11_680, %c0_681] {strides = array<i32: 2, 1>} : memref<100x16xf32, #tpu.memory_space<vmem>>, vector<4x16xf32>
    %c0_682 = arith.constant 0 : index
    %c64_683 = arith.constant 64 : index
    %407 = vector.load %arg17[%c0_682, %c64_683] : memref<16x144xf32, #tpu.memory_space<vmem>>, vector<4x16xf32>
    tpu.vector_store %arg17[%c0_682, %c64_683], %406 {strides = array<i32>} : memref<16x144xf32, #tpu.memory_space<vmem>>, vector<4x16xf32>,
    %c12_684 = arith.constant 12 : index
    %c0_685 = arith.constant 0 : index
    %408 = tpu.strided_load %arg13[%c12_684, %c0_685] {strides = array<i32: 2, 1>} : memref<100x16xf32, #tpu.memory_space<vmem>>, vector<4x16xf32>
    %c0_686 = arith.constant 0 : index
    %c80_687 = arith.constant 80 : index
    %409 = vector.load %arg17[%c0_686, %c80_687] : memref<16x144xf32, #tpu.memory_space<vmem>>, vector<4x16xf32>
    tpu.vector_store %arg17[%c0_686, %c80_687], %408 {strides = array<i32>} : memref<16x144xf32, #tpu.memory_space<vmem>>, vector<4x16xf32>,
    %c20_688 = arith.constant 20 : index
    %c0_689 = arith.constant 0 : index
    %410 = tpu.strided_load %arg13[%c20_688, %c0_689] {strides = array<i32: 2, 1>} : memref<100x16xf32, #tpu.memory_space<vmem>>, vector<4x16xf32>
    %c0_690 = arith.constant 0 : index
    %c96_691 = arith.constant 96 : index
    %411 = vector.load %arg17[%c0_690, %c96_691] : memref<16x144xf32, #tpu.memory_space<vmem>>, vector<4x16xf32>
    tpu.vector_store %arg17[%c0_690, %c96_691], %410 {strides = array<i32>} : memref<16x144xf32, #tpu.memory_space<vmem>>, vector<4x16xf32>,
    %c21_692 = arith.constant 21 : index
    %c0_693 = arith.constant 0 : index
    %412 = tpu.strided_load %arg13[%c21_692, %c0_693] {strides = array<i32: 2, 1>} : memref<100x16xf32, #tpu.memory_space<vmem>>, vector<4x16xf32>
    %c0_694 = arith.constant 0 : index
    %c112_695 = arith.constant 112 : index
    %413 = vector.load %arg17[%c0_694, %c112_695] : memref<16x144xf32, #tpu.memory_space<vmem>>, vector<4x16xf32>
    tpu.vector_store %arg17[%c0_694, %c112_695], %412 {strides = array<i32>} : memref<16x144xf32, #tpu.memory_space<vmem>>, vector<4x16xf32>,
    %c22_696 = arith.constant 22 : index
    %c0_697 = arith.constant 0 : index
    %414 = tpu.strided_load %arg13[%c22_696, %c0_697] {strides = array<i32: 2, 1>} : memref<100x16xf32, #tpu.memory_space<vmem>>, vector<4x16xf32>
    %c0_698 = arith.constant 0 : index
    %c128_699 = arith.constant 128 : index
    %415 = vector.load %arg17[%c0_698, %c128_699] : memref<16x144xf32, #tpu.memory_space<vmem>>, vector<4x16xf32>
    tpu.vector_store %arg17[%c0_698, %c128_699], %414 {strides = array<i32>} : memref<16x144xf32, #tpu.memory_space<vmem>>, vector<4x16xf32>,
    %c20_700 = arith.constant 20 : index
    %c0_701 = arith.constant 0 : index
    %416 = tpu.strided_load %arg13[%c20_700, %c0_701] {strides = array<i32: 2, 1>} : memref<100x16xf32, #tpu.memory_space<vmem>>, vector<4x16xf32>
    %c4_702 = arith.constant 4 : index
    %c0_703 = arith.constant 0 : index
    %417 = vector.load %arg17[%c4_702, %c0_703] : memref<16x144xf32, #tpu.memory_space<vmem>>, vector<4x16xf32>
    tpu.vector_store %arg17[%c4_702, %c0_703], %416 {strides = array<i32>} : memref<16x144xf32, #tpu.memory_space<vmem>>, vector<4x16xf32>,
    %c21_704 = arith.constant 21 : index
    %c0_705 = arith.constant 0 : index
    %418 = tpu.strided_load %arg13[%c21_704, %c0_705] {strides = array<i32: 2, 1>} : memref<100x16xf32, #tpu.memory_space<vmem>>, vector<4x16xf32>
    %c4_706 = arith.constant 4 : index
    %c16_707 = arith.constant 16 : index
    %419 = vector.load %arg17[%c4_706, %c16_707] : memref<16x144xf32, #tpu.memory_space<vmem>>, vector<4x16xf32>
    tpu.vector_store %arg17[%c4_706, %c16_707], %418 {strides = array<i32>} : memref<16x144xf32, #tpu.memory_space<vmem>>, vector<4x16xf32>,
    %c22_708 = arith.constant 22 : index
    %c0_709 = arith.constant 0 : index
    %420 = tpu.strided_load %arg13[%c22_708, %c0_709] {strides = array<i32: 2, 1>} : memref<100x16xf32, #tpu.memory_space<vmem>>, vector<4x16xf32>
    %c4_710 = arith.constant 4 : index
    %c32_711 = arith.constant 32 : index
    %421 = vector.load %arg17[%c4_710, %c32_711] : memref<16x144xf32, #tpu.memory_space<vmem>>, vector<4x16xf32>
    tpu.vector_store %arg17[%c4_710, %c32_711], %420 {strides = array<i32>} : memref<16x144xf32, #tpu.memory_space<vmem>>, vector<4x16xf32>,
    %c30_712 = arith.constant 30 : index
    %c0_713 = arith.constant 0 : index
    %422 = tpu.strided_load %arg13[%c30_712, %c0_713] {strides = array<i32: 2, 1>} : memref<100x16xf32, #tpu.memory_space<vmem>>, vector<4x16xf32>
    %c4_714 = arith.constant 4 : index
    %c48_715 = arith.constant 48 : index
    %423 = vector.load %arg17[%c4_714, %c48_715] : memref<16x144xf32, #tpu.memory_space<vmem>>, vector<4x16xf32>
    tpu.vector_store %arg17[%c4_714, %c48_715], %422 {strides = array<i32>} : memref<16x144xf32, #tpu.memory_space<vmem>>, vector<4x16xf32>,
    %c31_716 = arith.constant 31 : index
    %c0_717 = arith.constant 0 : index
    %424 = tpu.strided_load %arg13[%c31_716, %c0_717] {strides = array<i32: 2, 1>} : memref<100x16xf32, #tpu.memory_space<vmem>>, vector<4x16xf32>
    %c4_718 = arith.constant 4 : index
    %c64_719 = arith.constant 64 : index
    %425 = vector.load %arg17[%c4_718, %c64_719] : memref<16x144xf32, #tpu.memory_space<vmem>>, vector<4x16xf32>
    tpu.vector_store %arg17[%c4_718, %c64_719], %424 {strides = array<i32>} : memref<16x144xf32, #tpu.memory_space<vmem>>, vector<4x16xf32>,
    %c32_720 = arith.constant 32 : index
    %c0_721 = arith.constant 0 : index
    %426 = tpu.strided_load %arg13[%c32_720, %c0_721] {strides = array<i32: 2, 1>} : memref<100x16xf32, #tpu.memory_space<vmem>>, vector<4x16xf32>
    %c4_722 = arith.constant 4 : index
    %c80_723 = arith.constant 80 : index
    %427 = vector.load %arg17[%c4_722, %c80_723] : memref<16x144xf32, #tpu.memory_space<vmem>>, vector<4x16xf32>
    tpu.vector_store %arg17[%c4_722, %c80_723], %426 {strides = array<i32>} : memref<16x144xf32, #tpu.memory_space<vmem>>, vector<4x16xf32>,
    %c40_724 = arith.constant 40 : index
    %c0_725 = arith.constant 0 : index
    %428 = tpu.strided_load %arg13[%c40_724, %c0_725] {strides = array<i32: 2, 1>} : memref<100x16xf32, #tpu.memory_space<vmem>>, vector<4x16xf32>
    %c4_726 = arith.constant 4 : index
    %c96_727 = arith.constant 96 : index
    %429 = vector.load %arg17[%c4_726, %c96_727] : memref<16x144xf32, #tpu.memory_space<vmem>>, vector<4x16xf32>
    tpu.vector_store %arg17[%c4_726, %c96_727], %428 {strides = array<i32>} : memref<16x144xf32, #tpu.memory_space<vmem>>, vector<4x16xf32>,
    %c41_728 = arith.constant 41 : index
    %c0_729 = arith.constant 0 : index
    %430 = tpu.strided_load %arg13[%c41_728, %c0_729] {strides = array<i32: 2, 1>} : memref<100x16xf32, #tpu.memory_space<vmem>>, vector<4x16xf32>
    %c4_730 = arith.constant 4 : index
    %c112_731 = arith.constant 112 : index
    %431 = vector.load %arg17[%c4_730, %c112_731] : memref<16x144xf32, #tpu.memory_space<vmem>>, vector<4x16xf32>
    tpu.vector_store %arg17[%c4_730, %c112_731], %430 {strides = array<i32>} : memref<16x144xf32, #tpu.memory_space<vmem>>, vector<4x16xf32>,
    %c42_732 = arith.constant 42 : index
    %c0_733 = arith.constant 0 : index
    %432 = tpu.strided_load %arg13[%c42_732, %c0_733] {strides = array<i32: 2, 1>} : memref<100x16xf32, #tpu.memory_space<vmem>>, vector<4x16xf32>
    %c4_734 = arith.constant 4 : index
    %c128_735 = arith.constant 128 : index
    %433 = vector.load %arg17[%c4_734, %c128_735] : memref<16x144xf32, #tpu.memory_space<vmem>>, vector<4x16xf32>
    tpu.vector_store %arg17[%c4_734, %c128_735], %432 {strides = array<i32>} : memref<16x144xf32, #tpu.memory_space<vmem>>, vector<4x16xf32>,
    %c40_736 = arith.constant 40 : index
    %c0_737 = arith.constant 0 : index
    %434 = tpu.strided_load %arg13[%c40_736, %c0_737] {strides = array<i32: 2, 1>} : memref<100x16xf32, #tpu.memory_space<vmem>>, vector<4x16xf32>
    %c8_738 = arith.constant 8 : index
    %c0_739 = arith.constant 0 : index
    %435 = vector.load %arg17[%c8_738, %c0_739] : memref<16x144xf32, #tpu.memory_space<vmem>>, vector<4x16xf32>
    tpu.vector_store %arg17[%c8_738, %c0_739], %434 {strides = array<i32>} : memref<16x144xf32, #tpu.memory_space<vmem>>, vector<4x16xf32>,
    %c41_740 = arith.constant 41 : index
    %c0_741 = arith.constant 0 : index
    %436 = tpu.strided_load %arg13[%c41_740, %c0_741] {strides = array<i32: 2, 1>} : memref<100x16xf32, #tpu.memory_space<vmem>>, vector<4x16xf32>
    %c8_742 = arith.constant 8 : index
    %c16_743 = arith.constant 16 : index
    %437 = vector.load %arg17[%c8_742, %c16_743] : memref<16x144xf32, #tpu.memory_space<vmem>>, vector<4x16xf32>
    tpu.vector_store %arg17[%c8_742, %c16_743], %436 {strides = array<i32>} : memref<16x144xf32, #tpu.memory_space<vmem>>, vector<4x16xf32>,
    %c42_744 = arith.constant 42 : index
    %c0_745 = arith.constant 0 : index
    %438 = tpu.strided_load %arg13[%c42_744, %c0_745] {strides = array<i32: 2, 1>} : memref<100x16xf32, #tpu.memory_space<vmem>>, vector<4x16xf32>
    %c8_746 = arith.constant 8 : index
    %c32_747 = arith.constant 32 : index
    %439 = vector.load %arg17[%c8_746, %c32_747] : memref<16x144xf32, #tpu.memory_space<vmem>>, vector<4x16xf32>
    tpu.vector_store %arg17[%c8_746, %c32_747], %438 {strides = array<i32>} : memref<16x144xf32, #tpu.memory_space<vmem>>, vector<4x16xf32>,
    %c50_748 = arith.constant 50 : index
    %c0_749 = arith.constant 0 : index
    %440 = tpu.strided_load %arg13[%c50_748, %c0_749] {strides = array<i32: 2, 1>} : memref<100x16xf32, #tpu.memory_space<vmem>>, vector<4x16xf32>
    %c8_750 = arith.constant 8 : index
    %c48_751 = arith.constant 48 : index
    %441 = vector.load %arg17[%c8_750, %c48_751] : memref<16x144xf32, #tpu.memory_space<vmem>>, vector<4x16xf32>
    tpu.vector_store %arg17[%c8_750, %c48_751], %440 {strides = array<i32>} : memref<16x144xf32, #tpu.memory_space<vmem>>, vector<4x16xf32>,
    %c51_752 = arith.constant 51 : index
    %c0_753 = arith.constant 0 : index
    %442 = tpu.strided_load %arg13[%c51_752, %c0_753] {strides = array<i32: 2, 1>} : memref<100x16xf32, #tpu.memory_space<vmem>>, vector<4x16xf32>
    %c8_754 = arith.constant 8 : index
    %c64_755 = arith.constant 64 : index
    %443 = vector.load %arg17[%c8_754, %c64_755] : memref<16x144xf32, #tpu.memory_space<vmem>>, vector<4x16xf32>
    tpu.vector_store %arg17[%c8_754, %c64_755], %442 {strides = array<i32>} : memref<16x144xf32, #tpu.memory_space<vmem>>, vector<4x16xf32>,
    %c52_756 = arith.constant 52 : index
    %c0_757 = arith.constant 0 : index
    %444 = tpu.strided_load %arg13[%c52_756, %c0_757] {strides = array<i32: 2, 1>} : memref<100x16xf32, #tpu.memory_space<vmem>>, vector<4x16xf32>
    %c8_758 = arith.constant 8 : index
    %c80_759 = arith.constant 80 : index
    %445 = vector.load %arg17[%c8_758, %c80_759] : memref<16x144xf32, #tpu.memory_space<vmem>>, vector<4x16xf32>
    tpu.vector_store %arg17[%c8_758, %c80_759], %444 {strides = array<i32>} : memref<16x144xf32, #tpu.memory_space<vmem>>, vector<4x16xf32>,
    %c60_760 = arith.constant 60 : index
    %c0_761 = arith.constant 0 : index
    %446 = tpu.strided_load %arg13[%c60_760, %c0_761] {strides = array<i32: 2, 1>} : memref<100x16xf32, #tpu.memory_space<vmem>>, vector<4x16xf32>
    %c8_762 = arith.constant 8 : index
    %c96_763 = arith.constant 96 : index
    %447 = vector.load %arg17[%c8_762, %c96_763] : memref<16x144xf32, #tpu.memory_space<vmem>>, vector<4x16xf32>
    tpu.vector_store %arg17[%c8_762, %c96_763], %446 {strides = array<i32>} : memref<16x144xf32, #tpu.memory_space<vmem>>, vector<4x16xf32>,
    %c61_764 = arith.constant 61 : index
    %c0_765 = arith.constant 0 : index
    %448 = tpu.strided_load %arg13[%c61_764, %c0_765] {strides = array<i32: 2, 1>} : memref<100x16xf32, #tpu.memory_space<vmem>>, vector<4x16xf32>
    %c8_766 = arith.constant 8 : index
    %c112_767 = arith.constant 112 : index
    %449 = vector.load %arg17[%c8_766, %c112_767] : memref<16x144xf32, #tpu.memory_space<vmem>>, vector<4x16xf32>
    tpu.vector_store %arg17[%c8_766, %c112_767], %448 {strides = array<i32>} : memref<16x144xf32, #tpu.memory_space<vmem>>, vector<4x16xf32>,
    %c62_768 = arith.constant 62 : index
    %c0_769 = arith.constant 0 : index
    %450 = tpu.strided_load %arg13[%c62_768, %c0_769] {strides = array<i32: 2, 1>} : memref<100x16xf32, #tpu.memory_space<vmem>>, vector<4x16xf32>
    %c8_770 = arith.constant 8 : index
    %c128_771 = arith.constant 128 : index
    %451 = vector.load %arg17[%c8_770, %c128_771] : memref<16x144xf32, #tpu.memory_space<vmem>>, vector<4x16xf32>
    tpu.vector_store %arg17[%c8_770, %c128_771], %450 {strides = array<i32>} : memref<16x144xf32, #tpu.memory_space<vmem>>, vector<4x16xf32>,
    %c60_772 = arith.constant 60 : index
    %c0_773 = arith.constant 0 : index
    %452 = tpu.strided_load %arg13[%c60_772, %c0_773] {strides = array<i32: 2, 1>} : memref<100x16xf32, #tpu.memory_space<vmem>>, vector<4x16xf32>
    %c12_774 = arith.constant 12 : index
    %c0_775 = arith.constant 0 : index
    %453 = vector.load %arg17[%c12_774, %c0_775] : memref<16x144xf32, #tpu.memory_space<vmem>>, vector<4x16xf32>
    tpu.vector_store %arg17[%c12_774, %c0_775], %452 {strides = array<i32>} : memref<16x144xf32, #tpu.memory_space<vmem>>, vector<4x16xf32>,
    %c61_776 = arith.constant 61 : index
    %c0_777 = arith.constant 0 : index
    %454 = tpu.strided_load %arg13[%c61_776, %c0_777] {strides = array<i32: 2, 1>} : memref<100x16xf32, #tpu.memory_space<vmem>>, vector<4x16xf32>
    %c12_778 = arith.constant 12 : index
    %c16_779 = arith.constant 16 : index
    %455 = vector.load %arg17[%c12_778, %c16_779] : memref<16x144xf32, #tpu.memory_space<vmem>>, vector<4x16xf32>
    tpu.vector_store %arg17[%c12_778, %c16_779], %454 {strides = array<i32>} : memref<16x144xf32, #tpu.memory_space<vmem>>, vector<4x16xf32>,
    %c62_780 = arith.constant 62 : index
    %c0_781 = arith.constant 0 : index
    %456 = tpu.strided_load %arg13[%c62_780, %c0_781] {strides = array<i32: 2, 1>} : memref<100x16xf32, #tpu.memory_space<vmem>>, vector<4x16xf32>
    %c12_782 = arith.constant 12 : index
    %c32_783 = arith.constant 32 : index
    %457 = vector.load %arg17[%c12_782, %c32_783] : memref<16x144xf32, #tpu.memory_space<vmem>>, vector<4x16xf32>
    tpu.vector_store %arg17[%c12_782, %c32_783], %456 {strides = array<i32>} : memref<16x144xf32, #tpu.memory_space<vmem>>, vector<4x16xf32>,
    %c70_784 = arith.constant 70 : index
    %c0_785 = arith.constant 0 : index
    %458 = tpu.strided_load %arg13[%c70_784, %c0_785] {strides = array<i32: 2, 1>} : memref<100x16xf32, #tpu.memory_space<vmem>>, vector<4x16xf32>
    %c12_786 = arith.constant 12 : index
    %c48_787 = arith.constant 48 : index
    %459 = vector.load %arg17[%c12_786, %c48_787] : memref<16x144xf32, #tpu.memory_space<vmem>>, vector<4x16xf32>
    tpu.vector_store %arg17[%c12_786, %c48_787], %458 {strides = array<i32>} : memref<16x144xf32, #tpu.memory_space<vmem>>, vector<4x16xf32>,
    %c71_788 = arith.constant 71 : index
    %c0_789 = arith.constant 0 : index
    %460 = tpu.strided_load %arg13[%c71_788, %c0_789] {strides = array<i32: 2, 1>} : memref<100x16xf32, #tpu.memory_space<vmem>>, vector<4x16xf32>
    %c12_790 = arith.constant 12 : index
    %c64_791 = arith.constant 64 : index
    %461 = vector.load %arg17[%c12_790, %c64_791] : memref<16x144xf32, #tpu.memory_space<vmem>>, vector<4x16xf32>
    tpu.vector_store %arg17[%c12_790, %c64_791], %460 {strides = array<i32>} : memref<16x144xf32, #tpu.memory_space<vmem>>, vector<4x16xf32>,
    %c72_792 = arith.constant 72 : index
    %c0_793 = arith.constant 0 : index
    %462 = tpu.strided_load %arg13[%c72_792, %c0_793] {strides = array<i32: 2, 1>} : memref<100x16xf32, #tpu.memory_space<vmem>>, vector<4x16xf32>
    %c12_794 = arith.constant 12 : index
    %c80_795 = arith.constant 80 : index
    %463 = vector.load %arg17[%c12_794, %c80_795] : memref<16x144xf32, #tpu.memory_space<vmem>>, vector<4x16xf32>
    tpu.vector_store %arg17[%c12_794, %c80_795], %462 {strides = array<i32>} : memref<16x144xf32, #tpu.memory_space<vmem>>, vector<4x16xf32>,
    %c80_796 = arith.constant 80 : index
    %c0_797 = arith.constant 0 : index
    %464 = tpu.strided_load %arg13[%c80_796, %c0_797] {strides = array<i32: 2, 1>} : memref<100x16xf32, #tpu.memory_space<vmem>>, vector<4x16xf32>
    %c12_798 = arith.constant 12 : index
    %c96_799 = arith.constant 96 : index
    %465 = vector.load %arg17[%c12_798, %c96_799] : memref<16x144xf32, #tpu.memory_space<vmem>>, vector<4x16xf32>
    tpu.vector_store %arg17[%c12_798, %c96_799], %464 {strides = array<i32>} : memref<16x144xf32, #tpu.memory_space<vmem>>, vector<4x16xf32>,
    %c81_800 = arith.constant 81 : index
    %c0_801 = arith.constant 0 : index
    %466 = tpu.strided_load %arg13[%c81_800, %c0_801] {strides = array<i32: 2, 1>} : memref<100x16xf32, #tpu.memory_space<vmem>>, vector<4x16xf32>
    %c12_802 = arith.constant 12 : index
    %c112_803 = arith.constant 112 : index
    %467 = vector.load %arg17[%c12_802, %c112_803] : memref<16x144xf32, #tpu.memory_space<vmem>>, vector<4x16xf32>
    tpu.vector_store %arg17[%c12_802, %c112_803], %466 {strides = array<i32>} : memref<16x144xf32, #tpu.memory_space<vmem>>, vector<4x16xf32>,
    %c82_804 = arith.constant 82 : index
    %c0_805 = arith.constant 0 : index
    %468 = tpu.strided_load %arg13[%c82_804, %c0_805] {strides = array<i32: 2, 1>} : memref<100x16xf32, #tpu.memory_space<vmem>>, vector<4x16xf32>
    %c12_806 = arith.constant 12 : index
    %c128_807 = arith.constant 128 : index
    %469 = vector.load %arg17[%c12_806, %c128_807] : memref<16x144xf32, #tpu.memory_space<vmem>>, vector<4x16xf32>
    tpu.vector_store %arg17[%c12_806, %c128_807], %468 {strides = array<i32>} : memref<16x144xf32, #tpu.memory_space<vmem>>, vector<4x16xf32>,
    %c0_808 = arith.constant 0 : index
    %c0_809 = arith.constant 0 : index
    %470 = vector.load %arg17[%c0_808, %c0_809] : memref<16x144xf32, #tpu.memory_space<vmem>>, vector<16x144xf32>
    %c0_810 = arith.constant 0 : index
    %c0_811 = arith.constant 0 : index
    %471 = vector.load %arg6[%c0_810, %c0_811] : memref<144x32xf32, #tpu.memory_space<vmem>>, vector<144x32xf32>
    %cst_812 = arith.constant dense<0.000000e+00> : vector<16x32xf32>
    %472 = tpu.matmul %470, %471, %cst_812 {dimension_numbers = #tpu.dot_dimension_numbers<[1], [0], [0], [1], [0, 0, 1, 1], [], []>} : vector<16x144xf32>, vector<144x32xf32>, vector<16x32xf32> -> vector<16x32xf32>
    %c0_813 = arith.constant 0 : index
    %c0_814 = arith.constant 0 : index
    %473 = vector.load %arg7[%c0_813, %c0_814] : memref<1x32xf32, #tpu.memory_space<vmem>>, vector<1x32xf32>
    %474 = vector.broadcast %473 : vector<1x32xf32> to vector<16x32xf32>
    %475 = arith.addf %472, %474 : vector<16x32xf32>
    %cst_815 = arith.constant 5.000000e-01 : f32
    %476 = vector.broadcast %cst_815 : f32 to vector<16x32xf32>
    %477 = arith.mulf %476, %475 : vector<16x32xf32>
    %cst_816 = arith.constant 0.707106769 : f32
    %478 = vector.broadcast %cst_816 : f32 to vector<16x32xf32>
    %479 = arith.mulf %475, %478 : vector<16x32xf32>
    %480 = math.erf %479 : vector<16x32xf32>
    %cst_817 = arith.constant 1.000000e+00 : f32
    %481 = vector.broadcast %cst_817 : f32 to vector<16x32xf32>
    %482 = arith.addf %481, %480 : vector<16x32xf32>
    %483 = arith.mulf %477, %482 : vector<16x32xf32>
    %c0_818 = arith.constant 0 : index
    %c0_819 = arith.constant 0 : index
    %484 = vector.load %arg21[%c0_818, %c0_819] : memref<16x32xf32, #tpu.memory_space<vmem>>, vector<16x32xf32>
    tpu.vector_store %arg21[%c0_818, %c0_819], %483 {strides = array<i32>} : memref<16x32xf32, #tpu.memory_space<vmem>>, vector<16x32xf32>,
    %c0_820 = arith.constant 0 : index
    %c0_821 = arith.constant 0 : index
    %485 = vector.load %arg21[%c0_820, %c0_821] : memref<16x32xf32, #tpu.memory_space<vmem>>, vector<4x32xf32>
    %c7 = arith.constant 7 : index
    %c0_822 = arith.constant 0 : index
    %486 = vector.load %arg14[%c7, %c0_822] : memref<36x32xf32, #tpu.memory_space<vmem>>, vector<4x32xf32>
    tpu.vector_store %arg14[%c7, %c0_822], %485 {strides = array<i32>} : memref<36x32xf32, #tpu.memory_space<vmem>>, vector<4x32xf32>,
    %c4_823 = arith.constant 4 : index
    %c0_824 = arith.constant 0 : index
    %487 = vector.load %arg21[%c4_823, %c0_824] : memref<16x32xf32, #tpu.memory_space<vmem>>, vector<4x32xf32>
    %c13 = arith.constant 13 : index
    %c0_825 = arith.constant 0 : index
    %488 = vector.load %arg14[%c13, %c0_825] : memref<36x32xf32, #tpu.memory_space<vmem>>, vector<4x32xf32>
    tpu.vector_store %arg14[%c13, %c0_825], %487 {strides = array<i32>} : memref<36x32xf32, #tpu.memory_space<vmem>>, vector<4x32xf32>,
    %c8_826 = arith.constant 8 : index
    %c0_827 = arith.constant 0 : index
    %489 = vector.load %arg21[%c8_826, %c0_827] : memref<16x32xf32, #tpu.memory_space<vmem>>, vector<4x32xf32>
    %c19_828 = arith.constant 19 : index
    %c0_829 = arith.constant 0 : index
    %490 = vector.load %arg14[%c19_828, %c0_829] : memref<36x32xf32, #tpu.memory_space<vmem>>, vector<4x32xf32>
    tpu.vector_store %arg14[%c19_828, %c0_829], %489 {strides = array<i32>} : memref<36x32xf32, #tpu.memory_space<vmem>>, vector<4x32xf32>,
    %c12_830 = arith.constant 12 : index
    %c0_831 = arith.constant 0 : index
    %491 = vector.load %arg21[%c12_830, %c0_831] : memref<16x32xf32, #tpu.memory_space<vmem>>, vector<4x32xf32>
    %c25 = arith.constant 25 : index
    %c0_832 = arith.constant 0 : index
    %492 = vector.load %arg14[%c25, %c0_832] : memref<36x32xf32, #tpu.memory_space<vmem>>, vector<4x32xf32>
    tpu.vector_store %arg14[%c25, %c0_832], %491 {strides = array<i32>} : memref<36x32xf32, #tpu.memory_space<vmem>>, vector<4x32xf32>,
    %c0_833 = arith.constant 0 : index
    %c0_834 = arith.constant 0 : index
    %493 = tpu.strided_load %arg14[%c0_833, %c0_834] {strides = array<i32: 2, 1>} : memref<36x32xf32, #tpu.memory_space<vmem>>, vector<2x32xf32>
    %c0_835 = arith.constant 0 : index
    %c0_836 = arith.constant 0 : index
    %494 = vector.load %arg18[%c0_835, %c0_836] : memref<4x288xf32, #tpu.memory_space<vmem>>, vector<2x32xf32>
    tpu.vector_store %arg18[%c0_835, %c0_836], %493 {strides = array<i32>} : memref<4x288xf32, #tpu.memory_space<vmem>>, vector<2x32xf32>,
    %c1_837 = arith.constant 1 : index
    %c0_838 = arith.constant 0 : index
    %495 = tpu.strided_load %arg14[%c1_837, %c0_838] {strides = array<i32: 2, 1>} : memref<36x32xf32, #tpu.memory_space<vmem>>, vector<2x32xf32>
    %c0_839 = arith.constant 0 : index
    %c32_840 = arith.constant 32 : index
    %496 = vector.load %arg18[%c0_839, %c32_840] : memref<4x288xf32, #tpu.memory_space<vmem>>, vector<2x32xf32>
    tpu.vector_store %arg18[%c0_839, %c32_840], %495 {strides = array<i32>} : memref<4x288xf32, #tpu.memory_space<vmem>>, vector<2x32xf32>,
    %c2_841 = arith.constant 2 : index
    %c0_842 = arith.constant 0 : index
    %497 = tpu.strided_load %arg14[%c2_841, %c0_842] {strides = array<i32: 2, 1>} : memref<36x32xf32, #tpu.memory_space<vmem>>, vector<2x32xf32>
    %c0_843 = arith.constant 0 : index
    %c64_844 = arith.constant 64 : index
    %498 = vector.load %arg18[%c0_843, %c64_844] : memref<4x288xf32, #tpu.memory_space<vmem>>, vector<2x32xf32>
    tpu.vector_store %arg18[%c0_843, %c64_844], %497 {strides = array<i32>} : memref<4x288xf32, #tpu.memory_space<vmem>>, vector<2x32xf32>,
    %c6 = arith.constant 6 : index
    %c0_845 = arith.constant 0 : index
    %499 = tpu.strided_load %arg14[%c6, %c0_845] {strides = array<i32: 2, 1>} : memref<36x32xf32, #tpu.memory_space<vmem>>, vector<2x32xf32>
    %c0_846 = arith.constant 0 : index
    %c96_847 = arith.constant 96 : index
    %500 = vector.load %arg18[%c0_846, %c96_847] : memref<4x288xf32, #tpu.memory_space<vmem>>, vector<2x32xf32>
    tpu.vector_store %arg18[%c0_846, %c96_847], %499 {strides = array<i32>} : memref<4x288xf32, #tpu.memory_space<vmem>>, vector<2x32xf32>,
    %c7_848 = arith.constant 7 : index
    %c0_849 = arith.constant 0 : index
    %501 = tpu.strided_load %arg14[%c7_848, %c0_849] {strides = array<i32: 2, 1>} : memref<36x32xf32, #tpu.memory_space<vmem>>, vector<2x32xf32>
    %c0_850 = arith.constant 0 : index
    %c128_851 = arith.constant 128 : index
    %502 = vector.load %arg18[%c0_850, %c128_851] : memref<4x288xf32, #tpu.memory_space<vmem>>, vector<2x32xf32>
    tpu.vector_store %arg18[%c0_850, %c128_851], %501 {strides = array<i32>} : memref<4x288xf32, #tpu.memory_space<vmem>>, vector<2x32xf32>,
    %c8_852 = arith.constant 8 : index
    %c0_853 = arith.constant 0 : index
    %503 = tpu.strided_load %arg14[%c8_852, %c0_853] {strides = array<i32: 2, 1>} : memref<36x32xf32, #tpu.memory_space<vmem>>, vector<2x32xf32>
    %c0_854 = arith.constant 0 : index
    %c160_855 = arith.constant 160 : index
    %504 = vector.load %arg18[%c0_854, %c160_855] : memref<4x288xf32, #tpu.memory_space<vmem>>, vector<2x32xf32>
    tpu.vector_store %arg18[%c0_854, %c160_855], %503 {strides = array<i32>} : memref<4x288xf32, #tpu.memory_space<vmem>>, vector<2x32xf32>,
    %c12_856 = arith.constant 12 : index
    %c0_857 = arith.constant 0 : index
    %505 = tpu.strided_load %arg14[%c12_856, %c0_857] {strides = array<i32: 2, 1>} : memref<36x32xf32, #tpu.memory_space<vmem>>, vector<2x32xf32>
    %c0_858 = arith.constant 0 : index
    %c192_859 = arith.constant 192 : index
    %506 = vector.load %arg18[%c0_858, %c192_859] : memref<4x288xf32, #tpu.memory_space<vmem>>, vector<2x32xf32>
    tpu.vector_store %arg18[%c0_858, %c192_859], %505 {strides = array<i32>} : memref<4x288xf32, #tpu.memory_space<vmem>>, vector<2x32xf32>,
    %c13_860 = arith.constant 13 : index
    %c0_861 = arith.constant 0 : index
    %507 = tpu.strided_load %arg14[%c13_860, %c0_861] {strides = array<i32: 2, 1>} : memref<36x32xf32, #tpu.memory_space<vmem>>, vector<2x32xf32>
    %c0_862 = arith.constant 0 : index
    %c224_863 = arith.constant 224 : index
    %508 = vector.load %arg18[%c0_862, %c224_863] : memref<4x288xf32, #tpu.memory_space<vmem>>, vector<2x32xf32>
    tpu.vector_store %arg18[%c0_862, %c224_863], %507 {strides = array<i32>} : memref<4x288xf32, #tpu.memory_space<vmem>>, vector<2x32xf32>,
    %c14 = arith.constant 14 : index
    %c0_864 = arith.constant 0 : index
    %509 = tpu.strided_load %arg14[%c14, %c0_864] {strides = array<i32: 2, 1>} : memref<36x32xf32, #tpu.memory_space<vmem>>, vector<2x32xf32>
    %c0_865 = arith.constant 0 : index
    %c256 = arith.constant 256 : index
    %510 = vector.load %arg18[%c0_865, %c256] : memref<4x288xf32, #tpu.memory_space<vmem>>, vector<2x32xf32>
    tpu.vector_store %arg18[%c0_865, %c256], %509 {strides = array<i32>} : memref<4x288xf32, #tpu.memory_space<vmem>>, vector<2x32xf32>,
    %c12_866 = arith.constant 12 : index
    %c0_867 = arith.constant 0 : index
    %511 = tpu.strided_load %arg14[%c12_866, %c0_867] {strides = array<i32: 2, 1>} : memref<36x32xf32, #tpu.memory_space<vmem>>, vector<2x32xf32>
    %c2_868 = arith.constant 2 : index
    %c0_869 = arith.constant 0 : index
    %512 = vector.load %arg18[%c2_868, %c0_869] : memref<4x288xf32, #tpu.memory_space<vmem>>, vector<2x32xf32>
    tpu.vector_store %arg18[%c2_868, %c0_869], %511 {strides = array<i32>} : memref<4x288xf32, #tpu.memory_space<vmem>>, vector<2x32xf32>,
    %c13_870 = arith.constant 13 : index
    %c0_871 = arith.constant 0 : index
    %513 = tpu.strided_load %arg14[%c13_870, %c0_871] {strides = array<i32: 2, 1>} : memref<36x32xf32, #tpu.memory_space<vmem>>, vector<2x32xf32>
    %c2_872 = arith.constant 2 : index
    %c32_873 = arith.constant 32 : index
    %514 = vector.load %arg18[%c2_872, %c32_873] : memref<4x288xf32, #tpu.memory_space<vmem>>, vector<2x32xf32>
    tpu.vector_store %arg18[%c2_872, %c32_873], %513 {strides = array<i32>} : memref<4x288xf32, #tpu.memory_space<vmem>>, vector<2x32xf32>,
    %c14_874 = arith.constant 14 : index
    %c0_875 = arith.constant 0 : index
    %515 = tpu.strided_load %arg14[%c14_874, %c0_875] {strides = array<i32: 2, 1>} : memref<36x32xf32, #tpu.memory_space<vmem>>, vector<2x32xf32>
    %c2_876 = arith.constant 2 : index
    %c64_877 = arith.constant 64 : index
    %516 = vector.load %arg18[%c2_876, %c64_877] : memref<4x288xf32, #tpu.memory_space<vmem>>, vector<2x32xf32>
    tpu.vector_store %arg18[%c2_876, %c64_877], %515 {strides = array<i32>} : memref<4x288xf32, #tpu.memory_space<vmem>>, vector<2x32xf32>,
    %c18_878 = arith.constant 18 : index
    %c0_879 = arith.constant 0 : index
    %517 = tpu.strided_load %arg14[%c18_878, %c0_879] {strides = array<i32: 2, 1>} : memref<36x32xf32, #tpu.memory_space<vmem>>, vector<2x32xf32>
    %c2_880 = arith.constant 2 : index
    %c96_881 = arith.constant 96 : index
    %518 = vector.load %arg18[%c2_880, %c96_881] : memref<4x288xf32, #tpu.memory_space<vmem>>, vector<2x32xf32>
    tpu.vector_store %arg18[%c2_880, %c96_881], %517 {strides = array<i32>} : memref<4x288xf32, #tpu.memory_space<vmem>>, vector<2x32xf32>,
    %c19_882 = arith.constant 19 : index
    %c0_883 = arith.constant 0 : index
    %519 = tpu.strided_load %arg14[%c19_882, %c0_883] {strides = array<i32: 2, 1>} : memref<36x32xf32, #tpu.memory_space<vmem>>, vector<2x32xf32>
    %c2_884 = arith.constant 2 : index
    %c128_885 = arith.constant 128 : index
    %520 = vector.load %arg18[%c2_884, %c128_885] : memref<4x288xf32, #tpu.memory_space<vmem>>, vector<2x32xf32>
    tpu.vector_store %arg18[%c2_884, %c128_885], %519 {strides = array<i32>} : memref<4x288xf32, #tpu.memory_space<vmem>>, vector<2x32xf32>,
    %c20_886 = arith.constant 20 : index
    %c0_887 = arith.constant 0 : index
    %521 = tpu.strided_load %arg14[%c20_886, %c0_887] {strides = array<i32: 2, 1>} : memref<36x32xf32, #tpu.memory_space<vmem>>, vector<2x32xf32>
    %c2_888 = arith.constant 2 : index
    %c160_889 = arith.constant 160 : index
    %522 = vector.load %arg18[%c2_888, %c160_889] : memref<4x288xf32, #tpu.memory_space<vmem>>, vector<2x32xf32>
    tpu.vector_store %arg18[%c2_888, %c160_889], %521 {strides = array<i32>} : memref<4x288xf32, #tpu.memory_space<vmem>>, vector<2x32xf32>,
    %c24_890 = arith.constant 24 : index
    %c0_891 = arith.constant 0 : index
    %523 = tpu.strided_load %arg14[%c24_890, %c0_891] {strides = array<i32: 2, 1>} : memref<36x32xf32, #tpu.memory_space<vmem>>, vector<2x32xf32>
    %c2_892 = arith.constant 2 : index
    %c192_893 = arith.constant 192 : index
    %524 = vector.load %arg18[%c2_892, %c192_893] : memref<4x288xf32, #tpu.memory_space<vmem>>, vector<2x32xf32>
    tpu.vector_store %arg18[%c2_892, %c192_893], %523 {strides = array<i32>} : memref<4x288xf32, #tpu.memory_space<vmem>>, vector<2x32xf32>,
    %c25_894 = arith.constant 25 : index
    %c0_895 = arith.constant 0 : index
    %525 = tpu.strided_load %arg14[%c25_894, %c0_895] {strides = array<i32: 2, 1>} : memref<36x32xf32, #tpu.memory_space<vmem>>, vector<2x32xf32>
    %c2_896 = arith.constant 2 : index
    %c224_897 = arith.constant 224 : index
    %526 = vector.load %arg18[%c2_896, %c224_897] : memref<4x288xf32, #tpu.memory_space<vmem>>, vector<2x32xf32>
    tpu.vector_store %arg18[%c2_896, %c224_897], %525 {strides = array<i32>} : memref<4x288xf32, #tpu.memory_space<vmem>>, vector<2x32xf32>,
    %c26 = arith.constant 26 : index
    %c0_898 = arith.constant 0 : index
    %527 = tpu.strided_load %arg14[%c26, %c0_898] {strides = array<i32: 2, 1>} : memref<36x32xf32, #tpu.memory_space<vmem>>, vector<2x32xf32>
    %c2_899 = arith.constant 2 : index
    %c256_900 = arith.constant 256 : index
    %528 = vector.load %arg18[%c2_899, %c256_900] : memref<4x288xf32, #tpu.memory_space<vmem>>, vector<2x32xf32>
    tpu.vector_store %arg18[%c2_899, %c256_900], %527 {strides = array<i32>} : memref<4x288xf32, #tpu.memory_space<vmem>>, vector<2x32xf32>,
    %c0_901 = arith.constant 0 : index
    %c0_902 = arith.constant 0 : index
    %529 = vector.load %arg18[%c0_901, %c0_902] : memref<4x288xf32, #tpu.memory_space<vmem>>, vector<4x288xf32>
    %c0_903 = arith.constant 0 : index
    %c0_904 = arith.constant 0 : index
    %530 = vector.load %arg8[%c0_903, %c0_904] : memref<288x32xf32, #tpu.memory_space<vmem>>, vector<288x32xf32>
    %cst_905 = arith.constant dense<0.000000e+00> : vector<4x32xf32>
    %531 = tpu.matmul %529, %530, %cst_905 {dimension_numbers = #tpu.dot_dimension_numbers<[1], [0], [0], [1], [0, 0, 1, 1], [], []>} : vector<4x288xf32>, vector<288x32xf32>, vector<4x32xf32> -> vector<4x32xf32>
    %c0_906 = arith.constant 0 : index
    %c0_907 = arith.constant 0 : index
    %532 = vector.load %arg9[%c0_906, %c0_907] : memref<1x32xf32, #tpu.memory_space<vmem>>, vector<1x32xf32>
    %533 = vector.broadcast %532 : vector<1x32xf32> to vector<4x32xf32>
    %534 = arith.addf %531, %533 : vector<4x32xf32>
    %cst_908 = arith.constant 5.000000e-01 : f32
    %535 = vector.broadcast %cst_908 : f32 to vector<4x32xf32>
    %536 = arith.mulf %535, %534 : vector<4x32xf32>
    %cst_909 = arith.constant 0.707106769 : f32
    %537 = vector.broadcast %cst_909 : f32 to vector<4x32xf32>
    %538 = arith.mulf %534, %537 : vector<4x32xf32>
    %539 = math.erf %538 : vector<4x32xf32>
    %cst_910 = arith.constant 1.000000e+00 : f32
    %540 = vector.broadcast %cst_910 : f32 to vector<4x32xf32>
    %541 = arith.addf %540, %539 : vector<4x32xf32>
    %542 = arith.mulf %536, %541 : vector<4x32xf32>
    %c0_911 = arith.constant 0 : index
    %c0_912 = arith.constant 0 : index
    %c0_913 = arith.constant 0 : index
    %543 = vector.load %arg10[%c0_911, %c0_912, %c0_913] : memref<1x4x32xf32, #tpu.memory_space<vmem>>, vector<1x4x32xf32>
    %544 = vector.shape_cast %543 : vector<1x4x32xf32> to vector<4x32xf32>
    %545 = vector.shape_cast %542 : vector<4x32xf32> to vector<1x4x32xf32>
    tpu.vector_store %arg10[%c0_911, %c0_912, %c0_913], %545 {strides = array<i32>} : memref<1x4x32xf32, #tpu.memory_space<vmem>>, vector<1x4x32xf32>,
    return
  }
  func.func @transform_0(%arg0: i32) -> (i32, i32, i32) {
    %c0_i32 = arith.constant 0 : i32
    %c0_i32_0 = arith.constant 0 : i32
    %c0_i32_1 = arith.constant 0 : i32
    return %arg0, %c0_i32, %c0_i32_0 : i32, i32, i32
  }
  func.func @transform_1(%arg0: i32) -> (i32, i32) {
    %c0_i32 = arith.constant 0 : i32
    %c0_i32_0 = arith.constant 0 : i32
    %c0_i32_1 = arith.constant 0 : i32
    return %c0_i32, %c0_i32_0 : i32, i32
  }
  func.func @transform_2(%arg0: i32) -> (i32, i32) {
    %c0_i32 = arith.constant 0 : i32
    %c0_i32_0 = arith.constant 0 : i32
    %c0_i32_1 = arith.constant 0 : i32
    return %c0_i32, %c0_i32_0 : i32, i32
  }
  func.func @transform_3(%arg0: i32) -> (i32, i32) {
    %c0_i32 = arith.constant 0 : i32
    %c0_i32_0 = arith.constant 0 : i32
    %c0_i32_1 = arith.constant 0 : i32
    return %c0_i32, %c0_i32_0 : i32, i32
  }
  func.func @transform_4(%arg0: i32) -> (i32, i32) {
    %c0_i32 = arith.constant 0 : i32
    %c0_i32_0 = arith.constant 0 : i32
    %c0_i32_1 = arith.constant 0 : i32
    return %c0_i32, %c0_i32_0 : i32, i32
  }
  func.func @transform_5(%arg0: i32) -> (i32, i32) {
    %c0_i32 = arith.constant 0 : i32
    %c0_i32_0 = arith.constant 0 : i32
    %c0_i32_1 = arith.constant 0 : i32
    return %c0_i32, %c0_i32_0 : i32, i32
  }
  func.func @transform_6(%arg0: i32) -> (i32, i32) {
    %c0_i32 = arith.constant 0 : i32
    %c0_i32_0 = arith.constant 0 : i32
    %c0_i32_1 = arith.constant 0 : i32
    return %c0_i32, %c0_i32_0 : i32, i32
  }
  func.func @transform_7(%arg0: i32) -> (i32, i32) {
    %c0_i32 = arith.constant 0 : i32
    %c0_i32_0 = arith.constant 0 : i32
    %c0_i32_1 = arith.constant 0 : i32
    return %c0_i32, %c0_i32_0 : i32, i32
  }
  func.func @transform_8(%arg0: i32) -> (i32, i32) {
    %c0_i32 = arith.constant 0 : i32
    %c0_i32_0 = arith.constant 0 : i32
    %c0_i32_1 = arith.constant 0 : i32
    return %c0_i32, %c0_i32_0 : i32, i32
  }
  func.func @transform_9(%arg0: i32) -> (i32, i32, i32) {
    %c0_i32 = arith.constant 0 : i32
    %c0_i32_0 = arith.constant 0 : i32
    %c0_i32_1 = arith.constant 0 : i32
    return %arg0, %c0_i32, %c0_i32_0 : i32, i32, i32
  }
}

</mosaic_0001>

<bundles_post_ra>
// kernel: encoder_forward.1
= control target key start
LH: loop header
LB: loop body
LE: loop exit
PB: predicated region body
PF: predicated region fallthrough
CT: control target
= control target key end

     0   :  { %s3919_s0 = inlined_call_operand.vmem [shape: f32[2,256,4], index: 0, kind: input, shape index: {}]   ;;  %s3920_s1 = inlined_call_operand.vmem [shape: f32[36,16], index: 1, kind: input, shape index: {}]   ;;  %s3921_s2 = inlined_call_operand.vmem [shape: f32[1,16], index: 2, kind: input, shape index: {}]   ;;  %s3922_s3 = inlined_call_operand.vmem [shape: f32[144,16], index: 3, kind: input, shape index: {}]   ;;  %s3923_s4 = inlined_call_operand.vmem [shape: f32[1,16], index: 4, kind: input, shape index: {}]   ;;  %s3924_s5 = inlined_call_operand.vmem [shape: f32[144,32], index: 5, kind: input, shape index: {}]   ;;  %s3925_s6 = inlined_call_operand.vmem [shape: f32[1,32], index: 6, kind: input, shape index: {}]   ;;  %s3926_s7 = inlined_call_operand.vmem [shape: f32[288,32], index: 7, kind: input, shape index: {}]   ;;  %s3927_s8 = inlined_call_operand.vmem [shape: f32[1,32], index: 8, kind: input, shape index: {}]   ;;  %s3928_s9 = inlined_call_operand.hbm [shape: f32[2,4,32], index: 9, kind: output, shape index: {}]  }
   0x1   :  { %3947 = sst [smem:[#allocation16_spill]] %s3919_s0 }
   0x2   :  { %3948 = sst [smem:[#allocation17_spill]] %s3920_s1 }
   0x3   :  { %14 = vsyncpa [#allocation14], 0 }
   0x4   :  { %16 = vsyncpa [#allocation14 + $0x1], 0  ;;  %s2921_s30 = smov 0   ;;  %s2923_s10 = smov 0  }
   0x5   :  { %s2925_s11 = smov 0   ;;  %s2927_s12 = smov 0  }
   0x6 LB: > { %s2942_s13 = sadd.s32 4294967295, %s2852_s12   ;;  %s2490_s14 = sadd.s32 4294967294, %s2852_s12   ;;  %s2852_s12 = sphi %s2927_s12, %s3970_s12   ;;  %s2848_s11 = sphi %s2925_s11, %s3969_s11   ;;  %s2844_s10 = sphi %s2923_s10, %s3968_s10   ;;  %s2840_s30 = sphi %s2921_s30, %s3967_s30  }
   0x7   : > { %s2946_s15 = sadd.s32 1, %s2852_s12   ;;  %s223_s16 = sadd.s32 1, %s2848_s11 }
   0x8   : > { %s220_s17 = ssub.s32 %s2852_s12, %s2946_s15  ;;  %p233_p0 = scmp.ne.s32.totalorder %s2848_s11, %s2844_s10 }
   0x9   : > { %p221_p1 = scmp.eq.s32.totalorder %s220_s17, 0  ;;  %p234_p2 = scmp.eq.s32.totalorder %s2942_s13, 1 }
   0xa   : > { %p239_p3 = scmp.ne.s32.totalorder %s2844_s10, %s2840_s30  ;;  %p240_p4 = scmp.eq.s32.totalorder %s2490_s14, 1 }
   0xb   : > { %s2957_s18 = scalar_select %p221_p1, %s2848_s11, %s223_s16  }
   0xc   : > { %p2959_p5 = por %p234_p2, %p233_p0  ;;  %p2963_p6 = por %p240_p4, %p239_p3 }
   0xd   : > { %p2493_p7 = scmp.ge.s32.totalorder %s2852_s12, 1  ;;  %p290_p8 = scmp.lt.s32.totalorder %s2852_s12, 3 }
   0xf   : > { %p291_p9 = pnand %p2493_p7, %p290_p8 }
  0x10   : > { %vm331_vm0 = vcmask (!%p291_p9), 31744   ;;  %v2854_v0 = vmov (!%p291_p9), 0.0   ;;  %p326_p10 = scmp.lt.s32.totalorder (!%p291_p9), %s2942_s13, 1  ;;  %s3951_s0 = sld [smem:[#allocation16_spill]] (!%p291_p9)  ;;  %vm976_vm1 = vcmask (!%p291_p9), 1043456   ;;  %vm481_vm2 = vcmask (!%p291_p9), 64544  }
  0x11   : > { %294 = sbr.rel (%p291_p9) target bundleno = 1683 (0x693), region = 56  ;;  %332 = vst.msk [vmem:[#allocation2] sm:$0xff] (!%p291_p9), %vm331_vm0, %v2854_v0  ;;  %333 = vst.msk [vmem:[#allocation2 + $0x8] sm:$0xff] (!%p291_p9), %vm331_vm0, %v2854_v0  ;;  %s2855_s26 = smov (!%p291_p9), 4   ;;  %vm489_vm3 = vcmask (!%p291_p9), 97344   ;;  %vm497_vm4 = vcmask (!%p291_p9), 130144  }
  0x12   : > { %334 = vst.msk [vmem:[#allocation2 + $0x10] sm:$0xff] (!%p291_p9), %vm331_vm0, %v2854_v0  ;;  %335 = vst.msk [vmem:[#allocation2 + $0x18] sm:$0xff] (!%p291_p9), %vm331_vm0, %v2854_v0  ;;  %s2856_s27 = smov (!%p291_p9), 8   ;;  %s2857_s28 = smov (!%p291_p9), 12   ;;  %vm374_vm5 = vcmask (!%p291_p9), 130048   ;;  %vm505_vm6 = vcmask (!%p291_p9), 162944  }
  0x13   : > { %336 = vst.msk [vmem:[#allocation2 + $0x20] sm:$0xff] (!%p291_p9), %vm331_vm0, %v2854_v0  ;;  %337 = vst.msk [vmem:[#allocation2 + $0x28] sm:$0xff] (!%p291_p9), %vm331_vm0, %v2854_v0  ;;  %s3945_s29 = smov (!%p291_p9), 16   ;;  %s3931_s14 = smov (!%p291_p9), 20   ;;  %vm513_vm7 = vcmask (!%p291_p9), 195744   ;;  %vm521_vm8 = vcmask (!%p291_p9), 228544  }
  0x14   : > { %338 = vst.msk [vmem:[#allocation2 + $0x30] sm:$0xff] (!%p291_p9), %vm331_vm0, %v2854_v0  ;;  %339 = vst.msk [vmem:[#allocation2 + $0x38] sm:$0xff] (!%p291_p9), %vm331_vm0, %v2854_v0  ;;  %s3929_s16 = smov (!%p291_p9), 24   ;;  %s3952_s1 = sld [smem:[#allocation17_spill]] (!%p291_p9)  ;;  %vm529_vm9 = vcmask (!%p291_p9), 261344   ;;  %vm537_vm10 = vcmask (!%p291_p9), 294144  }
  0x15   : > { %340 = vst.msk [vmem:[#allocation2 + $0x40] sm:$0xff] (!%p291_p9), %vm331_vm0, %v2854_v0  ;;  %341 = vst.msk [vmem:[#allocation2 + $0x48] sm:$0xff] (!%p291_p9), %vm331_vm0, %v2854_v0  ;;  %s2861_s17 = smov (!%p291_p9), 28   ;;  %s3954_s23 = smov (!%p291_p9), 24   ;;  %vm951_vm11 = vcmask (!%p291_p9), 293888   ;;  %vm1116_vm12 = vcmask (!%p291_p9), 261248  }
  0x16   : > { %342 = vst.msk [vmem:[#allocation2 + $0x50] sm:$0xff] (!%p291_p9), %vm331_vm0, %v2854_v0  ;;  %343 = vst.msk [vmem:[#allocation2 + $0x58] sm:$0xff] (!%p291_p9), %vm331_vm0, %v2854_v0  ;;  %vm1123_vm13 = vcmask (!%p291_p9), 392448   ;;  %vm387_vm14 = vcmask (!%p291_p9), 125952   ;;  %vm1130_vm15 = vcmask (!%p291_p9), 523648   ;;  %s3959_s24 = smov (!%p291_p9), 32  }
  0x17   : > { %344 = vst.msk [vmem:[#allocation2 + $0x60] sm:$0xff] (!%p291_p9), %vm331_vm0, %v2854_v0  ;;  %345 = vst.msk [vmem:[#allocation2 + $0x68] sm:$0xff] (!%p291_p9), %vm331_vm0, %v2854_v0 }
  0x18   : > { %346 = vst.msk [vmem:[#allocation2 + $0x70] sm:$0xff] %vm331_vm0, %v2854_v0  ;;  %347 = vst.msk [vmem:[#allocation2 + $0x78] sm:$0xff] %vm331_vm0, %v2854_v0  ;;  %s327_s21 = scalar_select %p326_p10, %s2942_s13, 1  ;;  %v476_v4 = vld [vmem:[#allocation2 + $0x1] ss:$2 sm:$0xff] }
  0x19   : > { %348 = vst.msk [vmem:[#allocation2 + $0x80] sm:$0xff] %vm331_vm0, %v2854_v0  ;;  %349 = vst.msk [vmem:[#allocation2 + $0x88] sm:$0xff] %vm331_vm0, %v2854_v0  ;;  %v484_v5 = vld [vmem:[#allocation2 + $0x2] ss:$2 sm:$0xff]  ;;  %478 = vrot.lane.b32.xlu0 %v476_v4, %s2855_s26 }
  0x1a   : > { %350 = vst.msk [vmem:[#allocation2 + $0x90] sm:$0xff] %vm331_vm0, %v2854_v0  ;;  %351 = vst.msk [vmem:[#allocation2 + $0x98] sm:$0xff] %vm331_vm0, %v2854_v0  ;;  %s2525_s22 = sshll.u32 %s327_s21, 8  ;;  %v473_v45 = vld [vmem:[#allocation2] ss:$2 sm:$0xff]  ;;  %v941_v53 = vld [vmem:[%s3952_s1 + $0x10] sm:$0xff] }
  0x1b   : > { %352 = vst.msk [vmem:[#allocation2 + $0xa0] sm:$0xff] %vm331_vm0, %v2854_v0  ;;  %353 = vst.msk [vmem:[#allocation2 + $0xa8] sm:$0xff] %vm331_vm0, %v2854_v0  ;;  %s3052_s25 = scalar_lea.vmem %s3951_s0, %s2525_s22  ;;  %v939_v49 = vld [vmem:[%s3952_s1] sm:$0xff]  ;;  %v940_v50 = vld [vmem:[%s3952_s1 + $0x8] sm:$0xff]  ;;  %s3953_s22 = smov 20  }
  0x1c   : > { %354 = vst.msk [vmem:[#allocation2 + $0xb0] sm:$0xff] %vm331_vm0, %v2854_v0  ;;  %355 = vst.msk [vmem:[#allocation2 + $0xb8] sm:$0xff] %vm331_vm0, %v2854_v0  ;;  %v413_v1 = vld [vmem:[%s3052_s25 + $0x10] sm:$0xff]  ;;  %v414_v2 = vld [vmem:[%s3052_s25 + $0x18] sm:$0xff]  ;;  %v2612_v51 = vpack.c.bf16 %v940_v50, %v939_v49  ;;  %s3960_s21 = smov 80  }
  0x1d   : > { %356 = vst.msk [vmem:[#allocation2 + $0xc0] sm:$0xff] %vm331_vm0, %v2854_v0  ;;  %357 = vst.msk [vmem:[#allocation2 + $0xc8] sm:$0xff] %vm331_vm0, %v2854_v0  ;;  %v409_v3 = vld [vmem:[%s3052_s25] sm:$0xff]  ;;  %v410_v6 = vld [vmem:[%s3052_s25 + $0x8] sm:$0xff]  ;;  %486 = vrot.lane.b32.xlu0 %v484_v5, %s2856_s27 }
  0x1e   : > { %358 = vst.msk [vmem:[#allocation2 + $0xd0] sm:$0xff] %vm331_vm0, %v2854_v0  ;;  %359 = vst.msk [vmem:[#allocation2 + $0xd8] sm:$0xff] %vm331_vm0, %v2854_v0  ;;  %v417_v7 = vld [vmem:[%s3052_s25 + $0x20] sm:$0xff]  ;;  %v418_v8 = vld [vmem:[%s3052_s25 + $0x28] sm:$0xff]  ;;  %2613 = vmatprep.subr.bf16.mxu0 %v2612_v51 }
  0x1f   : > { %360 = vst.msk [vmem:[#allocation2 + $0xe0] sm:$0xff] %vm331_vm0, %v2854_v0  ;;  %361 = vst.msk [vmem:[#allocation2 + $0xe8] sm:$0xff] %vm331_vm0, %v2854_v0  ;;  %v421_v9 = vld [vmem:[%s3052_s25 + $0x30] sm:$0xff]  ;;  %v422_v10 = vld [vmem:[%s3052_s25 + $0x38] sm:$0xff]  ;;  %2615 = vmatpush3.bf16.msra.mxu0 %v2612_v51 }
  0x20   : > { %362 = vst.msk [vmem:[#allocation2 + $0xf0] sm:$0xff] %vm331_vm0, %v2854_v0  ;;  %363 = vst.msk [vmem:[#allocation2 + $0xf8] sm:$0xff] %vm331_vm0, %v2854_v0  ;;  %v429_v11 = vld [vmem:[%s3052_s25 + $0x50] sm:$0xff]  ;;  %v430_v12 = vld [vmem:[%s3052_s25 + $0x58] sm:$0xff] }
  0x21   : > { %364 = vst.msk [vmem:[#allocation2 + $0x100] sm:$0xff] %vm331_vm0, %v2854_v0  ;;  %365 = vst.msk [vmem:[#allocation2 + $0x108] sm:$0xff] %vm331_vm0, %v2854_v0  ;;  %v425_v13 = vld [vmem:[%s3052_s25 + $0x40] sm:$0xff]  ;;  %v426_v14 = vld [vmem:[%s3052_s25 + $0x48] sm:$0xff] }
  0x22   : > { %366 = vst.msk [vmem:[#allocation2 + $0x110] sm:$0xff] %vm331_vm0, %v2854_v0  ;;  %367 = vst.msk [vmem:[#allocation2 + $0x118] sm:$0xff] %vm331_vm0, %v2854_v0  ;;  %v433_v15 = vld [vmem:[%s3052_s25 + $0x60] sm:$0xff]  ;;  %v434_v16 = vld [vmem:[%s3052_s25 + $0x68] sm:$0xff] }
  0x23   : > { %368 = vst.msk [vmem:[#allocation2 + $0x120] sm:$0xff] %vm331_vm0, %v2854_v0  ;;  %369 = vst.msk [vmem:[#allocation2 + $0x128] sm:$0xff] %vm331_vm0, %v2854_v0  ;;  %v437_v17 = vld [vmem:[%s3052_s25 + $0x70] sm:$0xff]  ;;  %v438_v18 = vld [vmem:[%s3052_s25 + $0x78] sm:$0xff] }
  0x24   : > { %370 = vst.msk [vmem:[#allocation2 + $0x130] sm:$0xff] %vm331_vm0, %v2854_v0  ;;  %415 = vst.msk [vmem:[#allocation2 + $0x25] sm:$0xff] %vm331_vm0, %v413_v1  ;;  %v445_v19 = vld [vmem:[%s3052_s25 + $0x90] sm:$0xff]  ;;  %v446_v20 = vld [vmem:[%s3052_s25 + $0x98] sm:$0xff] }
  0x25   : > { %416 = vst.msk [vmem:[#allocation2 + $0x2d] sm:$0xff] %vm331_vm0, %v414_v2  ;;  %411 = vst.msk [vmem:[#allocation2 + $0x13] sm:$0xff] %vm331_vm0, %v409_v3  ;;  %v441_v21 = vld [vmem:[%s3052_s25 + $0x80] sm:$0xff]  ;;  %v442_v22 = vld [vmem:[%s3052_s25 + $0x88] sm:$0xff] }
  0x26   : > { %412 = vst.msk [vmem:[#allocation2 + $0x1b] sm:$0xff] %vm331_vm0, %v410_v6  ;;  %419 = vst.msk [vmem:[#allocation2 + $0x37] sm:$0xff] %vm331_vm0, %v417_v7  ;;  %v449_v23 = vld [vmem:[%s3052_s25 + $0xa0] sm:$0xff]  ;;  %v450_v24 = vld [vmem:[%s3052_s25 + $0xa8] sm:$0xff] }
  0x27   : > { %420 = vst.msk [vmem:[#allocation2 + $0x3f] sm:$0xff] %vm331_vm0, %v418_v8  ;;  %423 = vst.msk [vmem:[#allocation2 + $0x49] sm:$0xff] %vm331_vm0, %v421_v9  ;;  %v453_v35 = vld [vmem:[%s3052_s25 + $0xb0] sm:$0xff]  ;;  %v454_v36 = vld [vmem:[%s3052_s25 + $0xb8] sm:$0xff] }
  0x28   : > { %424 = vst.msk [vmem:[#allocation2 + $0x51] sm:$0xff] %vm331_vm0, %v422_v10  ;;  %431 = vst.msk [vmem:[#allocation2 + $0x6d] sm:$0xff] %vm331_vm0, %v429_v11  ;;  %v461_v37 = vld [vmem:[%s3052_s25 + $0xd0] sm:$0xff]  ;;  %v462_v38 = vld [vmem:[%s3052_s25 + $0xd8] sm:$0xff] }
  0x29   : > { %432 = vst.msk [vmem:[#allocation2 + $0x75] sm:$0xff] %vm331_vm0, %v430_v12  ;;  %427 = vst.msk [vmem:[#allocation2 + $0x5b] sm:$0xff] %vm331_vm0, %v425_v13  ;;  %v457_v39 = vld [vmem:[%s3052_s25 + $0xc0] sm:$0xff]  ;;  %v458_v41 = vld [vmem:[%s3052_s25 + $0xc8] sm:$0xff] }
  0x2a   : > { %428 = vst.msk [vmem:[#allocation2 + $0x63] sm:$0xff] %vm331_vm0, %v426_v14  ;;  %435 = vst.msk [vmem:[#allocation2 + $0x7f] sm:$0xff] %vm331_vm0, %v433_v15  ;;  %v465_v42 = vld [vmem:[%s3052_s25 + $0xe0] sm:$0xff]  ;;  %v466_v43 = vld [vmem:[%s3052_s25 + $0xe8] sm:$0xff] }
  0x2b   : > { %436 = vst.msk [vmem:[#allocation2 + $0x87] sm:$0xff] %vm331_vm0, %v434_v16  ;;  %439 = vst.msk [vmem:[#allocation2 + $0x91] sm:$0xff] %vm331_vm0, %v437_v17  ;;  %v469_v47 = vld [vmem:[%s3052_s25 + $0xf0] sm:$0xff]  ;;  %v470_v48 = vld [vmem:[%s3052_s25 + $0xf8] sm:$0xff]  ;;  %s3941_s25 = smov 80  }
  0x2c   : > { %440 = vst.msk [vmem:[#allocation2 + $0x99] sm:$0xff] %vm331_vm0, %v438_v18  ;;  %447 = vst.msk [vmem:[#allocation2 + $0xb5] sm:$0xff] %vm331_vm0, %v445_v19  ;;  %v541_v25 = vld [vmem:[#allocation2 + $0x25] ss:$2 sm:$0xff]  ;;  %v547_v26 = vld [vmem:[#allocation2 + $0x26] ss:$2 sm:$0xff] }
  0x2d   : > { %448 = vst.msk [vmem:[#allocation2 + $0xbd] sm:$0xff] %vm331_vm0, %v446_v20  ;;  %443 = vst.msk [vmem:[#allocation2 + $0xa3] sm:$0xff] %vm331_vm0, %v441_v21  ;;  %543 = vrot.lane.b32.xlu1 %v541_v25, %s2855_s26  ;;  %549 = vrot.lane.b32.xlu0 %v547_v26, %s2856_s27  ;;  %v492_v27 = vld [vmem:[#allocation2 + $0x12] ss:$2 sm:$0xff]  ;;  %v500_v29 = vld [vmem:[#allocation2 + $0x13] ss:$2 sm:$0xff] }
  0x2e   : > { %444 = vst.msk [vmem:[#allocation2 + $0xab] sm:$0xff] %vm331_vm0, %v442_v22  ;;  %451 = vst.msk [vmem:[#allocation2 + $0xc7] sm:$0xff] %vm331_vm0, %v449_v23  ;;  %v554_v28 = vld [vmem:[#allocation2 + $0x36] ss:$2 sm:$0xff]  ;;  %v561_v30 = vld [vmem:[#allocation2 + $0x37] ss:$2 sm:$0xff] }
  0x2f   : > { %452 = vst.msk [vmem:[#allocation2 + $0xcf] sm:$0xff] %vm331_vm0, %v450_v24  ;;  %v508_v31 = vld [vmem:[#allocation2 + $0x14] ss:$2 sm:$0xff]  ;;  %v516_v33 = vld [vmem:[#allocation2 + $0x24] ss:$2 sm:$0xff]  ;;  %455 = vst.msk [vmem:[#allocation2 + $0xd9] sm:$0xff] %vm331_vm0, %v453_v35 }
  0x30   : > { %v568_v32 = vld [vmem:[#allocation2 + $0x38] ss:$2 sm:$0xff]  ;;  %v575_v34 = vld [vmem:[#allocation2 + $0x48] ss:$2 sm:$0xff]  ;;  %456 = vst.msk [vmem:[#allocation2 + $0xe1] sm:$0xff] %vm331_vm0, %v454_v36  ;;  %463 = vst.msk [vmem:[#allocation2 + $0xfd] sm:$0xff] %vm331_vm0, %v461_v37 }
  0x31   : > { %494 = vrot.lane.b32.xlu1 %v492_v27, %s2857_s28  ;;  %556 = vrot.lane.b32.xlu0 %v554_v28, %s2857_s28  ;;  %v524_v40 = vld [vmem:[#allocation2 + $0x25] ss:$2 sm:$0xff]  ;;  %464 = vst.msk [vmem:[#allocation2 + $0x105] sm:$0xff] %vm331_vm0, %v462_v38  ;;  %459 = vst.msk [vmem:[#allocation2 + $0xeb] sm:$0xff] %vm331_vm0, %v457_v39  ;;  %v539_v46 = vld [vmem:[#allocation2 + $0x24] ss:$2 sm:$0xff] }
  0x32   : > { %v582_v44 = vld [vmem:[#allocation2 + $0x49] ss:$2 sm:$0xff]  ;;  %460 = vst.msk [vmem:[#allocation2 + $0xf3] sm:$0xff] %vm331_vm0, %v458_v41  ;;  %467 = vst.msk [vmem:[#allocation2 + $0x10f] sm:$0xff] %vm331_vm0, %v465_v42  ;;  %v595_v52 = vld [vmem:[#allocation2 + $0x48] ss:$2 sm:$0xff] }
  0x33   : > { %468 = vst.msk [vmem:[#allocation2 + $0x117] sm:$0xff] %vm331_vm0, %v466_v43  ;;  %474 = vst.msk [vmem:[#allocation6] sm:$0xff] %vm331_vm0, %v473_v45  ;;  %v942_v54 = vld [vmem:[%s3952_s1 + $0x18] sm:$0xff]  ;;  %v532_v57 = vld [vmem:[#allocation2 + $0x26] ss:$2 sm:$0xff] }
  0x34   : > { %540 = vst.msk [vmem:[#allocation6 + $0x8] sm:$0xff] %vm331_vm0, %v539_v46  ;;  %471 = vst.msk [vmem:[#allocation2 + $0x121] sm:$0xff] %vm331_vm0, %v469_v47  ;;  %v2616_v55 = vpack.c.bf16 %v942_v54, %v941_v53  ;;  %v651_v56 = vld [vmem:[#allocation2 + $0x6c] ss:$2 sm:$0xff]  ;;  %v943_v59 = vld [vmem:[%s3952_s1 + $0x20] sm:$0xf] }
  0x35   : > { %502 = vrot.lane.b32.xlu1 %v500_v29, %s3945_s29  ;;  %563 = vrot.lane.b32.xlu0 %v561_v30, %s3945_s29  ;;  %472 = vst.msk [vmem:[#allocation2 + $0x129] sm:$0xff] %vm331_vm0, %v470_v48  ;;  %596 = vst.msk [vmem:[#allocation6 + $0x10] sm:$0xff] %vm331_vm0, %v595_v52  ;;  %v589_v58 = vld [vmem:[#allocation2 + $0x4a] ss:$2 sm:$0xff]  ;;  %v597_v60 = vld [vmem:[#allocation2 + $0x49] ss:$2 sm:$0xff] }
  0x36   : > { %652 = vst.msk [vmem:[#allocation6 + $0x18] sm:$0xff] %vm331_vm0, %v651_v56  ;;  %2617 = vmatprep.subr.bf16.mxu0 %v2616_v55  ;;  %v653_v61 = vld [vmem:[#allocation2 + $0x6d] ss:$2 sm:$0xff]  ;;  %v603_v62 = vld [vmem:[#allocation2 + $0x4a] ss:$2 sm:$0xff] }
  0x37   : > { %2619 = vmatpush3.bf16.msra.mxu0 %v2616_v55  ;;  %v659_v63 = vld [vmem:[#allocation2 + $0x6e] ss:$2 sm:$0xff]  ;;  %v666_v2 = vld [vmem:[#allocation2 + $0x7e] ss:$2 sm:$0xff]  ;;  %v617_v3 = vld [vmem:[#allocation2 + $0x5b] ss:$2 sm:$0xff] }
  0x38   : > { %2587 = vmatprep.subr.msk.mxu0 %vm976_vm1, %v943_v59  ;;  %v610_v1 = vld [vmem:[#allocation2 + $0x5a] ss:$2 sm:$0xff]  ;;  %v673_v4 = vld [vmem:[#allocation2 + $0x7f] ss:$2 sm:$0xff]  ;;  %375 = vst.msk [vmem:[#allocation3] sm:$0xff] %vm374_vm5, %v2854_v0  ;;  %376 = vst.msk [vmem:[#allocation3 + $0x8] sm:$0xff] %vm374_vm5, %v2854_v0 }
  0x39   : > { %510 = vrot.lane.b32.xlu1 %v508_v31, %s3931_s14  ;;  %570 = vrot.lane.b32.xlu0 %v568_v32, %s3931_s14  ;;  %s3939_s14 = smov 32   ;;  %v624_v5 = vld [vmem:[#allocation2 + $0x5c] ss:$2 sm:$0xff]  ;;  %v631_v7 = vld [vmem:[#allocation2 + $0x6c] ss:$2 sm:$0xff]  ;;  %377 = vst.msk [vmem:[#allocation3 + $0x10] sm:$0xff] %vm374_vm5, %v2854_v0 }
  0x3a   : > { %v680_v6 = vld [vmem:[#allocation2 + $0x80] ss:$2 sm:$0xff]  ;;  %v687_v8 = vld [vmem:[#allocation2 + $0x90] ss:$2 sm:$0xff]  ;;  %v638_v10 = vld [vmem:[#allocation2 + $0x6d] ss:$2 sm:$0xff] }
  0x3b   : > { %2588 = vmatpush3.msk.msra.mxu0 %vm976_vm1, %v943_v59  ;;  %v707_v9 = vld [vmem:[#allocation2 + $0x90] ss:$2 sm:$0xff]  ;;  %v694_v11 = vld [vmem:[#allocation2 + $0x91] ss:$2 sm:$0xff]  ;;  %378 = vst.msk [vmem:[#allocation3 + $0x18] sm:$0xff] %vm374_vm5, %v2854_v0  ;;  %379 = vst.msk [vmem:[#allocation3 + $0x20] sm:$0xff] %vm374_vm5, %v2854_v0 }
  0x3c   : > { %708 = vst.msk [vmem:[#allocation6 + $0x20] sm:$0xff] %vm331_vm0, %v707_v9  ;;  %v763_v12 = vld [vmem:[#allocation2 + $0xb4] ss:$2 sm:$0xff]  ;;  %v709_v14 = vld [vmem:[#allocation2 + $0x91] ss:$2 sm:$0xff]  ;;  %vm1144_vm1 = vcmask 786048  }
  0x3d   : > { %518 = vrot.lane.b32.xlu1 %v516_v33, %s3929_s16  ;;  %577 = vrot.lane.b32.xlu0 %v575_v34, %s3929_s16  ;;  %764 = vst.msk [vmem:[#allocation6 + $0x28] sm:$0xff] %vm331_vm0, %v763_v12  ;;  %v645_v13 = vld [vmem:[#allocation2 + $0x6e] ss:$2 sm:$0xff]  ;;  %v765_v16 = vld [vmem:[#allocation2 + $0xb5] ss:$2 sm:$0xff]  ;;  %s3937_s16 = smov 64  }
  0x3e   : > { %v701_v15 = vld [vmem:[#allocation2 + $0x92] ss:$2 sm:$0xff]  ;;  %v722_v19 = vld [vmem:[#allocation2 + $0xa2] ss:$2 sm:$0xff]  ;;  %v729_v21 = vld [vmem:[#allocation2 + $0xa3] ss:$2 sm:$0xff] }
  0x3f   : > { %v715_v17 = vld [vmem:[#allocation2 + $0x92] ss:$2 sm:$0xff]  ;;  %v785_v22 = vld [vmem:[#allocation2 + $0xc7] ss:$2 sm:$0xff]  ;;  %380 = vst.msk [vmem:[#allocation3 + $0x28] sm:$0xff] %vm374_vm5, %v2854_v0  ;;  %381 = vst.msk [vmem:[#allocation3 + $0x30] sm:$0xff] %vm374_vm5, %v2854_v0 }
  0x40   : > { %v771_v18 = vld [vmem:[#allocation2 + $0xb6] ss:$2 sm:$0xff]  ;;  %v778_v20 = vld [vmem:[#allocation2 + $0xc6] ss:$2 sm:$0xff]  ;;  %v750_v28 = vld [vmem:[#allocation2 + $0xb5] ss:$2 sm:$0xff] }
  0x41   : > { %526 = vrot.lane.b32.xlu1 %v524_v40, %s2861_s17  ;;  %584 = vrot.lane.b32.xlu0 %v582_v44, %s2861_s17  ;;  %v736_v23 = vld [vmem:[#allocation2 + $0xa4] ss:$2 sm:$0xff]  ;;  %v743_v25 = vld [vmem:[#allocation2 + $0xb4] ss:$2 sm:$0xff]  ;;  %v806_v29 = vld [vmem:[#allocation2 + $0xd9] ss:$2 sm:$0xff] }
  0x42   : > { %v792_v24 = vld [vmem:[#allocation2 + $0xc8] ss:$2 sm:$0xff]  ;;  %v799_v26 = vld [vmem:[#allocation2 + $0xd8] ss:$2 sm:$0xff]  ;;  %v821_v32 = vld [vmem:[#allocation2 + $0xd9] ss:$2 sm:$0xff] }
  0x43   : > { %v819_v27 = vld [vmem:[#allocation2 + $0xd8] ss:$2 sm:$0xff]  ;;  %v877_v34 = vld [vmem:[#allocation2 + $0xfd] ss:$2 sm:$0xff]  ;;  %382 = vst.msk [vmem:[#allocation3 + $0x38] sm:$0xff] %vm374_vm5, %v2854_v0  ;;  %383 = vst.msk [vmem:[#allocation3 + $0x40] sm:$0xff] %vm374_vm5, %v2854_v0 }
  0x44   : > { %820 = vst.msk [vmem:[#allocation6 + $0x30] sm:$0xff] %vm331_vm0, %v819_v27  ;;  %v875_v30 = vld [vmem:[#allocation2 + $0xfc] ss:$2 sm:$0xff]  ;;  %v841_v39 = vld [vmem:[#allocation2 + $0xeb] ss:$2 sm:$0xff] }
  0x45   : > { %534 = vrot.lane.b32.xlu1 %v532_v57, %s3939_s14  ;;  %591 = vrot.lane.b32.xlu0 %v589_v58, %s3939_s14  ;;  %876 = vst.msk [vmem:[#allocation6 + $0x38] sm:$0xff] %vm331_vm0, %v875_v30  ;;  %v757_v31 = vld [vmem:[#allocation2 + $0xb6] ss:$2 sm:$0xff]  ;;  %v897_v40 = vld [vmem:[#allocation2 + $0x10f] ss:$2 sm:$0xff]  ;;  %vm1137_vm0 = vcmask 654848  }
  0x46   : > { %v813_v33 = vld [vmem:[#allocation2 + $0xda] ss:$2 sm:$0xff]  ;;  %v834_v37 = vld [vmem:[#allocation2 + $0xea] ss:$2 sm:$0xff]  ;;  %v862_v47 = vld [vmem:[#allocation2 + $0xfd] ss:$2 sm:$0xff] }
  0x47   : > { %v827_v35 = vld [vmem:[#allocation2 + $0xda] ss:$2 sm:$0xff]  ;;  %v918_v49 = vld [vmem:[#allocation2 + $0x121] ss:$2 sm:$0xff]  ;;  %384 = vst.msk [vmem:[#allocation3 + $0x48] sm:$0xff] %vm374_vm5, %v2854_v0  ;;  %385 = vst.msk [vmem:[#allocation3 + $0x50] sm:$0xff] %vm374_vm5, %v2854_v0 }
  0x48   : > { %v883_v36 = vld [vmem:[#allocation2 + $0xfe] ss:$2 sm:$0xff]  ;;  %v890_v38 = vld [vmem:[#allocation2 + $0x10e] ss:$2 sm:$0xff]  ;;  %386 = vst.msk [vmem:[#allocation3 + $0x58] sm:$0xff] %vm374_vm5, %v2854_v0  ;;  %389 = vst.msk [vmem:[#allocation4] sm:$0xff] %vm374_vm5, %v2854_v0 }
  0x49   : > { %599 = vrot.lane.b32.xlu1 %v597_v60, %s2855_s26  ;;  %655 = vrot.lane.b32.xlu0 %v653_v61, %s2855_s26  ;;  %v848_v41 = vld [vmem:[#allocation2 + $0xec] ss:$2 sm:$0xff]  ;;  %v855_v44 = vld [vmem:[#allocation2 + $0xfc] ss:$2 sm:$0xff]  ;;  %390 = vst.msk [vmem:[#allocation4 + $0x8] sm:$0xff] %vm374_vm5, %v2854_v0  ;;  %391 = vst.msk [vmem:[#allocation4 + $0x10] sm:$0xff] %vm374_vm5, %v2854_v0 }
  0x4a   : > { %v904_v42 = vld [vmem:[#allocation2 + $0x110] ss:$2 sm:$0xff]  ;;  %v911_v45 = vld [vmem:[#allocation2 + $0x120] ss:$2 sm:$0xff]  ;;  %392 = vst.msk [vmem:[#allocation4 + $0x18] sm:$0xff] %vm374_vm5, %v2854_v0  ;;  %393 = vst.msk [vmem:[#allocation4 + $0x20] sm:$0xff] %vm374_vm5, %v2854_v0 }
  0x4b   : > { %v869_v51 = vld [vmem:[#allocation2 + $0xfe] ss:$2 sm:$0xff]  ;;  %394 = vst.msk [vmem:[#allocation4 + $0x28] sm:$0xff] %vm374_vm5, %v2854_v0  ;;  %395 = vst.msk [vmem:[#allocation4 + $0x30] sm:$0xff] %vm374_vm5, %v2854_v0 }
  0x4c   : > { %396 = vst.msk [vmem:[#allocation4 + $0x38] sm:$0xff] %vm374_vm5, %v2854_v0  ;;  %397 = vst.msk [vmem:[#allocation4 + $0x40] sm:$0xff] %vm374_vm5, %v2854_v0  ;;  %v925_v54 = vld [vmem:[#allocation2 + $0x122] ss:$2 sm:$0xff] }
  0x4d   : > { %605 = vrot.lane.b32.xlu1 %v603_v62, %s2856_s27  ;;  %661 = vrot.lane.b32.xlu0 %v659_v63, %s2856_s27  ;;  %398 = vst.msk [vmem:[#allocation4 + $0x48] sm:$0xff] %vm374_vm5, %v2854_v0  ;;  %399 = vst.msk [vmem:[#allocation4 + $0x50] sm:$0xff] %vm374_vm5, %v2854_v0 }
  0x4e   : > { %400 = vst.msk [vmem:[#allocation4 + $0x58] sm:$0xff] %vm374_vm5, %v2854_v0 }
  0x4f   : > { %388 = vst.msk [vmem:[#allocation3 + $0x60] sm:$0xf] %vm387_vm14, %v2854_v0 }
  0x51   : > { %612 = vrot.lane.b32.xlu1 %v610_v1, %s2857_s28  ;;  %668 = vrot.lane.b32.xlu0 %v666_v2, %s2857_s28 }
  0x55   : > { %619 = vrot.lane.b32.xlu1 %v617_v3, %s3945_s29  ;;  %675 = vrot.lane.b32.xlu0 %v673_v4, %s3945_s29 }
  0x59   : > { %626 = vrot.lane.b32.xlu1 %v624_v5, %s3953_s22  ;;  %682 = vrot.lane.b32.xlu0 %v680_v6, %s3953_s22 }
  0x5d   : > { %633 = vrot.lane.b32.xlu1 %v631_v7, %s3954_s23  ;;  %689 = vrot.lane.b32.xlu0 %v687_v8, %s3954_s23 }
  0x61   : > { %640 = vrot.lane.b32.xlu1 %v638_v10, %s2861_s17  ;;  %696 = vrot.lane.b32.xlu0 %v694_v11, %s2861_s17 }
  0x65   : > { %647 = vrot.lane.b32.xlu1 %v645_v13, %s3939_s14  ;;  %711 = vrot.lane.b32.xlu0 %v709_v14, %s2855_s26 }
  0x69   : > { %703 = vrot.lane.b32.xlu1 %v701_v15, %s3939_s14  ;;  %767 = vrot.lane.b32.xlu0 %v765_v16, %s2855_s26 }
  0x6d   : > { %717 = vrot.lane.b32.xlu1 %v715_v17, %s2856_s27  ;;  %773 = vrot.lane.b32.xlu0 %v771_v18, %s2856_s27 }
  0x71   : > { %724 = vrot.lane.b32.xlu1 %v722_v19, %s2857_s28  ;;  %780 = vrot.lane.b32.xlu0 %v778_v20, %s2857_s28 }
  0x75   : > { %731 = vrot.lane.b32.xlu1 %v729_v21, %s3945_s29  ;;  %787 = vrot.lane.b32.xlu0 %v785_v22, %s3945_s29 }
  0x79   : > { %738 = vrot.lane.b32.xlu1 %v736_v23, %s3953_s22  ;;  %794 = vrot.lane.b32.xlu0 %v792_v24, %s3953_s22 }
  0x7d   : > { %745 = vrot.lane.b32.xlu1 %v743_v25, %s3954_s23  ;;  %801 = vrot.lane.b32.xlu0 %v799_v26, %s3954_s23 }
  0x81   : > { %752 = vrot.lane.b32.xlu1 %v750_v28, %s2861_s17  ;;  %808 = vrot.lane.b32.xlu0 %v806_v29, %s2861_s17 }
  0x85   : > { %759 = vrot.lane.b32.xlu1 %v757_v31, %s3939_s14  ;;  %823 = vrot.lane.b32.xlu0 %v821_v32, %s2855_s26 }
  0x89   : > { %815 = vrot.lane.b32.xlu1 %v813_v33, %s3939_s14  ;;  %879 = vrot.lane.b32.xlu0 %v877_v34, %s2855_s26  ;;  %s3961_s26 = smov 16  }
  0x8b   : > { %v479_v43 = vpop.permute.xlu0 %478 }
  0x8c   : > { %482 = vst.msk [vmem:[#allocation6] sm:$0xff] %vm481_vm2, %v479_v43 }
  0x8d   : > { %829 = vrot.lane.b32.xlu1 %v827_v35, %s2856_s27  ;;  %885 = vrot.lane.b32.xlu0 %v883_v36, %s2856_s27  ;;  %s2522_s27 = sshll.u32 %s2942_s13, 6  ;;  %s2870_s13 = smov [#allocation13]  }
  0x8e   : > { %s2794_s0 = sshll.u32 %s2870_s13, 4  ;;  %s2795_s0 = int_to_ptr.vmem [resolvable:$false] %s2794_s0 }
  0x8f   : > { %v487_v46 = vpop.permute.xlu0 %486 }
  0x90   : > { %490 = vst.msk [vmem:[#allocation6] sm:$0xff] %vm489_vm3, %v487_v46 }
  0x91   : > { %836 = vrot.lane.b32.xlu1 %v834_v37, %s2857_s28  ;;  %892 = vrot.lane.b32.xlu0 %v890_v38, %s2857_s28  ;;  %s3958_s28 = smov 112  }
  0x95   : > { %843 = vrot.lane.b32.xlu1 %v841_v39, %s3945_s29  ;;  %899 = vrot.lane.b32.xlu0 %v897_v40, %s3945_s29 }
  0x99   : > { %850 = vrot.lane.b32.xlu1 %v848_v41, %s3953_s22  ;;  %906 = vrot.lane.b32.xlu0 %v904_v42, %s3953_s22  ;;  %s3935_s22 = smov 48  }
  0x9d   : > { %857 = vrot.lane.b32.xlu1 %v855_v44, %s3954_s23  ;;  %913 = vrot.lane.b32.xlu0 %v911_v45, %s3954_s23  ;;  %s3933_s23 = smov 96  }
  0x9f   : > { %v544_v48 = vpop.permute.xlu1 %543  ;;  %v550_v50 = vpop.permute.xlu0 %549 }
  0xa0   : > { %546 = vst.msk [vmem:[#allocation6 + $0x8] sm:$0xff] %vm481_vm2, %v544_v48 }
  0xa1   : > { %552 = vst.msk [vmem:[#allocation6 + $0x8] sm:$0xff] %vm489_vm3, %v550_v50  ;;  %864 = vrot.lane.b32.xlu1 %v862_v47, %s2861_s17  ;;  %920 = vrot.lane.b32.xlu0 %v918_v49, %s2861_s17  ;;  %s3943_s17 = smov 112  }
  0xa3   : > { %v495_v52 = vpop.permute.xlu1 %494  ;;  %v557_v53 = vpop.permute.xlu0 %556 }
  0xa4   : > { %498 = vst.msk [vmem:[#allocation6] sm:$0xff] %vm497_vm4, %v495_v52  ;;  %559 = vst.msk [vmem:[#allocation6 + $0x8] sm:$0xff] %vm497_vm4, %v557_v53 }
  0xa5   : > { %871 = vrot.lane.b32.xlu1 %v869_v51, %s3939_s14 }
  0xa7   : > { %v503_v55 = vpop.permute.xlu1 %502  ;;  %v564_v56 = vpop.permute.xlu0 %563 }
  0xa8   : > { %506 = vst.msk [vmem:[#allocation6] sm:$0xff] %vm505_vm6, %v503_v55  ;;  %566 = vst.msk [vmem:[#allocation6 + $0x8] sm:$0xff] %vm505_vm6, %v564_v56 }
  0xa9   : > { %927 = vrot.lane.b32.xlu1 %v925_v54, %s3939_s14 }
  0xab   : > { %v511_v57 = vpop.permute.xlu1 %510  ;;  %v571_v58 = vpop.permute.xlu0 %570 }
  0xac   : > { %514 = vst.msk [vmem:[#allocation6] sm:$0xff] %vm513_vm7, %v511_v57  ;;  %573 = vst.msk [vmem:[#allocation6 + $0x8] sm:$0xff] %vm513_vm7, %v571_v58  ;;  %v1111_v57 = vld [vmem:[#allocation3 + $0x1] sm:$0xff] }
  0xad   : > { %v1118_v58 = vld [vmem:[#allocation3 + $0x2] sm:$0xff]  ;;  %1113 = vrot.lane.b32.xlu0 %v1111_v57, %s3945_s29 }
  0xae   : > { %1120 = vrot.lane.b32.xlu1 %v1118_v58, %s3939_s14 }
  0xaf   : > { %v519_v59 = vpop.permute.xlu1 %518  ;;  %v578_v60 = vpop.permute.xlu0 %577 }
  0xb0   : > { %522 = vst.msk [vmem:[#allocation6] sm:$0xff] %vm521_vm8, %v519_v59  ;;  %580 = vst.msk [vmem:[#allocation6 + $0x8] sm:$0xff] %vm521_vm8, %v578_v60  ;;  %v3330_v60 = vld [vmem:[%s3921_s2] ss:$0 sm:$0xff] }
  0xb3   : > { %v527_v61 = vpop.permute.xlu1 %526  ;;  %v585_v62 = vpop.permute.xlu0 %584 }
  0xb4   : > { %530 = vst.msk [vmem:[#allocation6] sm:$0xff] %vm529_vm9, %v527_v61  ;;  %587 = vst.msk [vmem:[#allocation6 + $0x8] sm:$0xff] %vm529_vm9, %v585_v62  ;;  %v1109_v61 = vld [vmem:[#allocation3] sm:$0xff] }
  0xb5   : > { %1110 = vst.msk [vmem:[#allocation7] sm:$0xff] %vm374_vm5, %v1109_v61 }
  0xb7   : > { %v535_v63 = vpop.permute.xlu1 %534  ;;  %v592_v1 = vpop.permute.xlu0 %591 }
  0xb8   : > { %538 = vst.msk [vmem:[#allocation6] sm:$0xff] %vm537_vm10, %v535_v63  ;;  %594 = vst.msk [vmem:[#allocation6 + $0x8] sm:$0xff] %vm537_vm10, %v592_v1 }
  0xbb   : > { %v600_v2 = vpop.permute.xlu1 %599  ;;  %v656_v3 = vpop.permute.xlu0 %655 }
  0xbc   : > { %602 = vst.msk [vmem:[#allocation6 + $0x10] sm:$0xff] %vm481_vm2, %v600_v2  ;;  %658 = vst.msk [vmem:[#allocation6 + $0x18] sm:$0xff] %vm481_vm2, %v656_v3 }
  0xbf   : > { %v606_v4 = vpop.permute.xlu1 %605  ;;  %v931_v5 = vld [vmem:[#allocation6] sm:$0xff]  ;;  %v932_v6 = vld [vmem:[#allocation6 + $0x8] sm:$0xff]  ;;  %v662_v7 = vpop.permute.xlu0 %661 }
  0xc0   : > { %608 = vst.msk [vmem:[#allocation6 + $0x10] sm:$0xff] %vm489_vm3, %v606_v4  ;;  %2589 = vmatprep.mubr.msk.f32.mxu0 %vm951_vm11, %v931_v5  ;;  %664 = vst.msk [vmem:[#allocation6 + $0x18] sm:$0xff] %vm489_vm3, %v662_v7  ;;  %v1500_v5 = vld [vmem:[%s3922_s3] sm:$0xff]  ;;  %v2863_v7 = vmov 0.0|0.0  }
  0xc1   : > { %2590 = vmatmul.mubr.msk.f32.vlgmr.msra.gmra.mrb[0].mxu0 %vm951_vm11, %v932_v6  ;;  %v1501_v6 = vld [vmem:[%s3922_s3 + $0x8] sm:$0xff]  ;;  %2620 = vmatprep.subr.bf16.mxu1 %v2863_v7 }
  0xc2   : > { %2647 = vmatprep.subr.bf16.mxu0 %v2863_v7 }
  0xc3   : > { %v613_v8 = vpop.permute.xlu1 %612  ;;  %v669_v9 = vpop.permute.xlu0 %668 }
  0xc4   : > { %615 = vst.msk [vmem:[#allocation6 + $0x10] sm:$0xff] %vm497_vm4, %v613_v8  ;;  %671 = vst.msk [vmem:[#allocation6 + $0x18] sm:$0xff] %vm497_vm4, %v669_v9  ;;  %v2621_v8 = vpack.c.bf16 %v1501_v6, %v1500_v5  ;;  %v1502_v9 = vld [vmem:[%s3922_s3 + $0x10] sm:$0xff] }
  0xc6   : > { %2622 = vmatpush1.bf16.msra.mxu1 %v2621_v8 }
  0xc7   : > { %v620_v10 = vpop.permute.xlu1 %619  ;;  %v676_v11 = vpop.permute.xlu0 %675  ;;  %2623 = vmatprep.subr.bf16.mxu1 %v2863_v7 }
  0xc8   : > { %622 = vst.msk [vmem:[#allocation6 + $0x10] sm:$0xff] %vm505_vm6, %v620_v10  ;;  %678 = vst.msk [vmem:[#allocation6 + $0x18] sm:$0xff] %vm505_vm6, %v676_v11  ;;  %v1503_v10 = vld [vmem:[%s3922_s3 + $0x18] sm:$0xff] }
  0xc9   : > { %v2624_v11 = vpack.c.bf16 %v1503_v10, %v1502_v9 }
  0xcb   : > { %v627_v12 = vpop.permute.xlu1 %626  ;;  %v683_v13 = vpop.permute.xlu0 %682  ;;  %2625 = vmatpush1.bf16.msra.mxu1 %v2624_v11 }
  0xcc   : > { %629 = vst.msk [vmem:[#allocation6 + $0x10] sm:$0xff] %vm513_vm7, %v627_v12  ;;  %685 = vst.msk [vmem:[#allocation6 + $0x18] sm:$0xff] %vm513_vm7, %v683_v13  ;;  %2626 = vmatprep.subr.bf16.mxu1 %v2863_v7  ;;  %v1504_v13 = vld [vmem:[%s3922_s3 + $0x20] sm:$0xff] }
  0xcf   : > { %v634_v14 = vpop.permute.xlu1 %633  ;;  %v690_v15 = vpop.permute.xlu0 %689 }
  0xd0   : > { %636 = vst.msk [vmem:[#allocation6 + $0x10] sm:$0xff] %vm521_vm8, %v634_v14  ;;  %692 = vst.msk [vmem:[#allocation6 + $0x18] sm:$0xff] %vm521_vm8, %v690_v15  ;;  %v1505_v14 = vld [vmem:[%s3922_s3 + $0x28] sm:$0xff] }
  0xd3   : > { %v641_v16 = vpop.permute.xlu1 %640  ;;  %v697_v17 = vpop.permute.xlu0 %696 }
  0xd4   : > { %643 = vst.msk [vmem:[#allocation6 + $0x10] sm:$0xff] %vm529_vm9, %v641_v16  ;;  %699 = vst.msk [vmem:[#allocation6 + $0x18] sm:$0xff] %vm529_vm9, %v697_v17  ;;  %v2627_v16 = vpack.c.bf16 %v1505_v14, %v1504_v13  ;;  %v1506_v17 = vld [vmem:[%s3922_s3 + $0x30] sm:$0xff] }
  0xd6   : > { %2628 = vmatpush1.bf16.msra.mxu1 %v2627_v16  ;;  %v1482_v16 = vld [vmem:[#allocation3 + $0x5c] sm:$0xff] }
  0xd7   : > { %v648_v18 = vpop.permute.xlu1 %647  ;;  %v712_v19 = vpop.permute.xlu0 %711  ;;  %2629 = vmatprep.subr.bf16.mxu1 %v2863_v7  ;;  %1483 = vst.msk [vmem:[#allocation7 + $0x78] sm:$0xff] %vm374_vm5, %v1482_v16 }
  0xd8   : > { %650 = vst.msk [vmem:[#allocation6 + $0x10] sm:$0xff] %vm537_vm10, %v648_v18  ;;  %v1507_v18 = vld [vmem:[%s3922_s3 + $0x38] sm:$0xff] }
  0xd9   : > { %714 = vst.msk [vmem:[#allocation6 + $0x20] sm:$0xff] %vm481_vm2, %v712_v19  ;;  %v2630_v19 = vpack.c.bf16 %v1507_v18, %v1506_v17 }
  0xdb   : > { %v704_v20 = vpop.permute.xlu1 %703  ;;  %v768_v21 = vpop.permute.xlu0 %767  ;;  %2631 = vmatpush1.bf16.msra.mxu1 %v2630_v19  ;;  %v1470_v19 = vld [vmem:[#allocation3 + $0x5a] sm:$0xff] }
  0xdc   : > { %706 = vst.msk [vmem:[#allocation6 + $0x18] sm:$0xff] %vm537_vm10, %v704_v20  ;;  %2632 = vmatprep.subr.bf16.mxu1 %v2863_v7 }
  0xdd   : > { %770 = vst.msk [vmem:[#allocation6 + $0x28] sm:$0xff] %vm481_vm2, %v768_v21 }
  0xdf   : > { %v718_v22 = vpop.permute.xlu1 %717  ;;  %v933_v23 = vld [vmem:[#allocation6 + $0x10] sm:$0xff]  ;;  %v774_v24 = vpop.permute.xlu0 %773 }
  0xe0   : > { %720 = vst.msk [vmem:[#allocation6 + $0x20] sm:$0xff] %vm489_vm3, %v718_v22  ;;  %2592 = vmatprep.mubr.msk.f32.mxu0 %vm951_vm11, %v933_v23  ;;  %776 = vst.msk [vmem:[#allocation6 + $0x28] sm:$0xff] %vm489_vm3, %v774_v24  ;;  %v1508_v24 = vld [vmem:[%s3922_s3 + $0x40] sm:$0xff] }
  0xe3   : > { %v725_v25 = vpop.permute.xlu1 %724  ;;  %v934_v26 = vld [vmem:[#allocation6 + $0x18] sm:$0xff]  ;;  %v781_v27 = vpop.permute.xlu0 %780 }
  0xe4   : > { %727 = vst.msk [vmem:[#allocation6 + $0x20] sm:$0xff] %vm497_vm4, %v725_v25  ;;  %2593 = vmatmul.mubr.msk.f32.gmra.mrb[2].mxu0 %vm951_vm11, %v934_v26  ;;  %783 = vst.msk [vmem:[#allocation6 + $0x28] sm:$0xff] %vm497_vm4, %v781_v27  ;;  %v1509_v25 = vld [vmem:[%s3922_s3 + $0x48] sm:$0xff]  ;;  %v1510_v27 = vld [vmem:[%s3922_s3 + $0x50] sm:$0xff] }
  0xe5   : > { %v2633_v26 = vpack.c.bf16 %v1509_v25, %v1508_v24  ;;  %v1476_v24 = vld [vmem:[#allocation3 + $0x5b] sm:$0xff] }
  0xe7   : > { %v732_v28 = vpop.permute.xlu1 %731  ;;  %v788_v29 = vpop.permute.xlu0 %787  ;;  %2634 = vmatpush1.bf16.msra.mxu1 %v2633_v26 }
  0xe8   : > { %734 = vst.msk [vmem:[#allocation6 + $0x20] sm:$0xff] %vm505_vm6, %v732_v28  ;;  %790 = vst.msk [vmem:[#allocation6 + $0x28] sm:$0xff] %vm505_vm6, %v788_v29  ;;  %v1511_v28 = vld [vmem:[%s3922_s3 + $0x58] sm:$0xff]  ;;  %2635 = vmatprep.subr.bf16.mxu1 %v2863_v7 }
  0xe9   : > { %v2636_v29 = vpack.c.bf16 %v1511_v28, %v1510_v27 }
  0xeb   : > { %v739_v30 = vpop.permute.xlu1 %738  ;;  %v795_v31 = vpop.permute.xlu0 %794  ;;  %2637 = vmatpush1.bf16.msra.mxu1 %v2636_v29 }
  0xec   : > { %741 = vst.msk [vmem:[#allocation6 + $0x20] sm:$0xff] %vm513_vm7, %v739_v30  ;;  %797 = vst.msk [vmem:[#allocation6 + $0x28] sm:$0xff] %vm513_vm7, %v795_v31  ;;  %2638 = vmatprep.subr.bf16.mxu1 %v2863_v7 }
  0xef   : > { %v746_v32 = vpop.permute.xlu1 %745  ;;  %v802_v33 = vpop.permute.xlu0 %801 }
  0xf0   : > { %748 = vst.msk [vmem:[#allocation6 + $0x20] sm:$0xff] %vm521_vm8, %v746_v32  ;;  %804 = vst.msk [vmem:[#allocation6 + $0x28] sm:$0xff] %vm521_vm8, %v802_v33  ;;  %v1512_v32 = vld [vmem:[%s3922_s3 + $0x60] sm:$0xff]  ;;  %v1513_v33 = vld [vmem:[%s3922_s3 + $0x68] sm:$0xff] }
  0xf3   : > { %v753_v34 = vpop.permute.xlu1 %752  ;;  %v809_v35 = vpop.permute.xlu0 %808 }
  0xf4   : > { %755 = vst.msk [vmem:[#allocation6 + $0x20] sm:$0xff] %vm529_vm9, %v753_v34  ;;  %811 = vst.msk [vmem:[#allocation6 + $0x28] sm:$0xff] %vm529_vm9, %v809_v35  ;;  %v2639_v34 = vpack.c.bf16 %v1513_v33, %v1512_v32  ;;  %v1514_v35 = vld [vmem:[%s3922_s3 + $0x70] sm:$0xff] }
  0xf6   : > { %2640 = vmatpush1.bf16.msra.mxu1 %v2639_v34 }
  0xf7   : > { %v760_v36 = vpop.permute.xlu1 %759  ;;  %v824_v37 = vpop.permute.xlu0 %823  ;;  %2641 = vmatprep.subr.bf16.mxu1 %v2863_v7 }
  0xf8   : > { %762 = vst.msk [vmem:[#allocation6 + $0x20] sm:$0xff] %vm537_vm10, %v760_v36  ;;  %v1515_v36 = vld [vmem:[%s3922_s3 + $0x78] sm:$0xff] }
  0xf9   : > { %826 = vst.msk [vmem:[#allocation6 + $0x30] sm:$0xff] %vm481_vm2, %v824_v37  ;;  %v2642_v37 = vpack.c.bf16 %v1515_v36, %v1514_v35 }
  0xfb   : > { %v816_v38 = vpop.permute.xlu1 %815  ;;  %v880_v39 = vpop.permute.xlu0 %879  ;;  %2643 = vmatpush1.bf16.msra.mxu1 %v2642_v37 }
  0xfc   : > { %818 = vst.msk [vmem:[#allocation6 + $0x28] sm:$0xff] %vm537_vm10, %v816_v38  ;;  %v1516_v38 = vld [vmem:[%s3922_s3 + $0x80] sm:$0xff]  ;;  %2644 = vmatprep.subr.bf16.mxu1 %v2863_v7 }
  0xfd   : > { %882 = vst.msk [vmem:[#allocation6 + $0x38] sm:$0xff] %vm481_vm2, %v880_v39  ;;  %v1517_v39 = vld [vmem:[%s3922_s3 + $0x88] sm:$0xff]  ;;  %vm1151_vm2 = vcmask 917248  }
  0xff   : > { %v830_v40 = vpop.permute.xlu1 %829  ;;  %v935_v41 = vld [vmem:[#allocation6 + $0x20] sm:$0xff]  ;;  %v886_v42 = vpop.permute.xlu0 %885 }
 0x100   : > { %832 = vst.msk [vmem:[#allocation6 + $0x30] sm:$0xff] %vm489_vm3, %v830_v40  ;;  %2595 = vmatprep.mubr.msk.f32.mxu0 %vm951_vm11, %v935_v41  ;;  %888 = vst.msk [vmem:[#allocation6 + $0x38] sm:$0xff] %vm489_vm3, %v886_v42  ;;  %vm1158_vm3 = vcmask 1048448  }
 0x103   : > { %v837_v43 = vpop.permute.xlu1 %836  ;;  %v936_v44 = vld [vmem:[#allocation6 + $0x28] sm:$0xff]  ;;  %v893_v45 = vpop.permute.xlu0 %892 }
 0x104   : > { %839 = vst.msk [vmem:[#allocation6 + $0x30] sm:$0xff] %vm497_vm4, %v837_v43  ;;  %2596 = vmatmul.mubr.msk.f32.gmra.mrb[4].mxu0 %vm951_vm11, %v936_v44  ;;  %895 = vst.msk [vmem:[#allocation6 + $0x38] sm:$0xff] %vm497_vm4, %v893_v45  ;;  %v2645_v44 = vpack.c.bf16 %v1517_v39, %v1516_v38  ;;  %vm1726_vm4 = vcmask 257152  }
 0x106   : > { %2646 = vmatpush1.bf16.msra.mxu1 %v2645_v44 }
 0x107   : > { %v844_v46 = vpop.permute.xlu1 %843  ;;  %v900_v47 = vpop.permute.xlu0 %899 }
 0x108   : > { %846 = vst.msk [vmem:[#allocation6 + $0x30] sm:$0xff] %vm505_vm6, %v844_v46  ;;  %902 = vst.msk [vmem:[#allocation6 + $0x38] sm:$0xff] %vm505_vm6, %v900_v47  ;;  %vm1734_vm6 = vcmask 388352  }
 0x10b   : > { %v851_v48 = vpop.permute.xlu1 %850  ;;  %v907_v49 = vpop.permute.xlu0 %906 }
 0x10c   : > { %853 = vst.msk [vmem:[#allocation6 + $0x30] sm:$0xff] %vm513_vm7, %v851_v48  ;;  %909 = vst.msk [vmem:[#allocation6 + $0x38] sm:$0xff] %vm513_vm7, %v907_v49  ;;  %vm1783_vm7 = vcmask 130052  }
 0x10f   : > { %v858_v50 = vpop.permute.xlu1 %857  ;;  %v914_v51 = vpop.permute.xlu0 %913 }
 0x110   : > { %860 = vst.msk [vmem:[#allocation6 + $0x30] sm:$0xff] %vm521_vm8, %v858_v50  ;;  %916 = vst.msk [vmem:[#allocation6 + $0x38] sm:$0xff] %vm521_vm8, %v914_v51  ;;  %vm402_vm8 = vcmask 261120  }
 0x111   : > { %403 = vst.msk [vmem:[#allocation5] sm:$0xff] %vm402_vm8, %v2854_v0  ;;  %404 = vst.msk [vmem:[#allocation5 + $0x8] sm:$0xff] %vm402_vm8, %v2854_v0 }
 0x112   : > { %405 = vst.msk [vmem:[#allocation5 + $0x10] sm:$0xff] %vm402_vm8, %v2854_v0  ;;  %406 = vst.msk [vmem:[#allocation5 + $0x18] sm:$0xff] %vm402_vm8, %v2854_v0 }
 0x113   : > { %v865_v52 = vpop.permute.xlu1 %864  ;;  %v921_v53 = vpop.permute.xlu0 %920 }
 0x114   : > { %867 = vst.msk [vmem:[#allocation6 + $0x30] sm:$0xff] %vm529_vm9, %v865_v52  ;;  %923 = vst.msk [vmem:[#allocation6 + $0x38] sm:$0xff] %vm529_vm9, %v921_v53  ;;  %vm1844_vm9 = vcmask 1048452  }
 0x117   : > { %v872_v54 = vpop.permute.xlu1 %871 }
 0x118   : > { %874 = vst.msk [vmem:[#allocation6 + $0x30] sm:$0xff] %vm537_vm10, %v872_v54 }
 0x11b   : > { %v928_v55 = vpop.permute.xlu1 %927 }
 0x11c   : > { %930 = vst.msk [vmem:[#allocation6 + $0x38] sm:$0xff] %vm537_vm10, %v928_v55  ;;  %vm1742_vm10 = vcmask 519552  }
 0x11f   : > { %v937_v56 = vld [vmem:[#allocation6 + $0x30] sm:$0xff]  ;;  %v1114_v62 = vpop.permute.xlu0 %1113 }
 0x120   : > { %2598 = vmatprep.mubr.msk.f32.mxu0 %vm951_vm11, %v937_v56  ;;  %1117 = vst.msk [vmem:[#allocation7] sm:$0xff] %vm1116_vm12, %v1114_v62  ;;  %v1121_v4 = vpop.permute.xlu1 %1120 }
 0x121   : > { %1124 = vst.msk [vmem:[#allocation7] sm:$0xff] %vm1123_vm13, %v1121_v4 }
 0x123   : > { %v938_v59 = vld [vmem:[#allocation6 + $0x38] sm:$0xff] }
 0x124   : > { %2599 = vmatmul.mubr.msk.f32.gmra.mrb[6].mxu0 %vm951_vm11, %v938_v59  ;;  %vm1750_vm11 = vcmask 650752  }
 0x194   : > { %v2591_v63 = vpop.f32.mrb[0].mxu0 }
 0x195   : > { %v1052_v1 = vadd.f32 %v2591_v63, %v3330_v60  ;;  %v1046_v2 = vpop.f32.mrb[1].mxu0 }
 0x196   : > { %v1047_v3 = vadd.f32 %v3330_v60, %v1046_v2 }
 0x197   : > { %1086 = vst.msk [vmem:[#allocation10 + $0x8] sm:$0xff] %vm374_vm5, %v1052_v1 }
 0x198   : > { %1085 = vst.msk [vmem:[#allocation10] sm:$0xff] %vm374_vm5, %v1047_v3 }
 0x19e   : > { %v1095_v12 = vld [vmem:[#allocation10 + $0x8] sm:$0xff] }
 0x19f   : > { %v1093_v15 = vld [vmem:[#allocation10] sm:$0xff]  ;;  %1096 = vst.msk [vmem:[#allocation3 + $0x15] sm:$0xff] %vm374_vm5, %v1095_v12 }
 0x1a0   : > { %1094 = vst.msk [vmem:[#allocation3 + $0xb] sm:$0xff] %vm374_vm5, %v1093_v15 }
 0x1a6   : > { %v1176_v20 = vld [vmem:[#allocation3 + $0x14] sm:$0xff] }
 0x1a7   : > { %v1188_v21 = vld [vmem:[#allocation3 + $0x16] sm:$0xff]  ;;  %1178 = vrot.lane.b32.xlu1 %v1176_v20, %s3935_s22  ;;  %1148 = vrot.lane.b32.xlu0 %v1176_v20, %s3933_s23  ;;  %v1125_v22 = vld [vmem:[#allocation3 + $0xa] sm:$0xff]  ;;  %1209 = vst.msk [vmem:[#allocation7 + $0x20] sm:$0xff] %vm374_vm5, %v1176_v20  ;;  %s3956_s22 = smov 96   ;;  %s3957_s23 = smov 64  }
 0x1a8   : > { %1161 = vst.msk [vmem:[#allocation7 + $0x8] sm:$0xff] %vm374_vm5, %v1188_v21  ;;  %v1153_v23 = vld [vmem:[#allocation3 + $0x15] sm:$0xff]  ;;  %1163 = vst.msk [vmem:[#allocation7 + $0x10] sm:$0xff] %vm374_vm5, %v1125_v22  ;;  %v1132_v30 = vld [vmem:[#allocation3 + $0xb] sm:$0xff] }
 0x1a9   : > { %v1170_v40 = vld [vmem:[#allocation3 + $0xc] sm:$0xff] }
 0x1ab   : > { %1190 = vrot.lane.b32.xlu1 %v1188_v21, %s3941_s25  ;;  %1155 = vrot.lane.b32.xlu0 %v1153_v23, %s3943_s17 }
 0x1af   : > { %v1485_v31 = vld [vmem:[#allocation7 + $0x8] sm:$0xff]  ;;  %1184 = vrot.lane.b32.xlu0 %v1153_v23, %s3937_s16  ;;  %1134 = vrot.lane.b32.xlu1 %v1132_v30, %s3937_s16  ;;  %s3955_s16 = smov 48  }
 0x1b0   : > { %2508 = vmatprep.mubr.msk.f32.mxu1 %vm374_vm5, %v1485_v31 }
 0x1b3   : > { %1212 = vrot.lane.b32.xlu0 %v1153_v23, %s3945_s29  ;;  %1166 = vrot.lane.b32.xlu1 %v1132_v30, %s3945_s29 }
 0x1b7   : > { %v2594_v41 = vpop.f32.mrb[2].mxu0  ;;  %1218 = vrot.lane.b32.xlu0 %v1188_v21, %s3939_s14  ;;  %1172 = vrot.lane.b32.xlu1 %v1170_v40, %s3939_s14 }
 0x1b8   : > { %v1062_v42 = vadd.f32 %v2594_v41, %v3330_v60  ;;  %v1056_v43 = vpop.f32.mrb[3].mxu0 }
 0x1b9   : > { %v1057_v45 = vadd.f32 %v3330_v60, %v1056_v43 }
 0x1ba   : > { %1088 = vst.msk [vmem:[#allocation10 + $0x18] sm:$0xff] %vm374_vm5, %v1062_v42 }
 0x1bb   : > { %1087 = vst.msk [vmem:[#allocation10 + $0x10] sm:$0xff] %vm374_vm5, %v1057_v45  ;;  %1127 = vrot.lane.b32.xlu0 %v1125_v22, %s3955_s16 }
 0x1bf   : > { %1141 = vrot.lane.b32.xlu0 %v1170_v40, %s3941_s25 }
 0x1c1   : > { %v1099_v46 = vld [vmem:[#allocation10 + $0x18] sm:$0xff] }
 0x1c2   : > { %1100 = vst.msk [vmem:[#allocation3 + $0x29] sm:$0xff] %vm374_vm5, %v1099_v46  ;;  %v1097_v47 = vld [vmem:[#allocation10 + $0x10] sm:$0xff] }
 0x1c3   : > { %1098 = vst.msk [vmem:[#allocation3 + $0x1f] sm:$0xff] %vm374_vm5, %v1097_v47 }
 0x1c9   : > { %v1268_v48 = vld [vmem:[#allocation3 + $0x28] sm:$0xff] }
 0x1ca   : > { %v1280_v49 = vld [vmem:[#allocation3 + $0x2a] sm:$0xff]  ;;  %1270 = vrot.lane.b32.xlu1 %v1268_v48, %s3955_s16  ;;  %1242 = vrot.lane.b32.xlu0 %v1268_v48, %s3956_s22  ;;  %v1194_v50 = vld [vmem:[#allocation3 + $0x1e] sm:$0xff]  ;;  %1301 = vst.msk [vmem:[#allocation7 + $0x40] sm:$0xff] %vm374_vm5, %v1268_v48 }
 0x1cb   : > { %v1234_v51 = vld [vmem:[#allocation3 + $0x20] sm:$0xff]  ;;  %1253 = vst.msk [vmem:[#allocation7 + $0x28] sm:$0xff] %vm374_vm5, %v1280_v49  ;;  %1255 = vst.msk [vmem:[#allocation7 + $0x30] sm:$0xff] %vm374_vm5, %v1194_v50  ;;  %v1246_v52 = vld [vmem:[#allocation3 + $0x29] sm:$0xff] }
 0x1cc   : > { %1207 = vst.msk [vmem:[#allocation7 + $0x18] sm:$0xff] %vm374_vm5, %v1234_v51  ;;  %v1200_v53 = vld [vmem:[#allocation3 + $0x1f] sm:$0xff] }
 0x1ce   : > { %1282 = vrot.lane.b32.xlu1 %v1280_v49, %s3941_s25  ;;  %1248 = vrot.lane.b32.xlu0 %v1246_v52, %s3943_s17 }
 0x1d2   : > { %1276 = vrot.lane.b32.xlu0 %v1246_v52, %s3957_s23  ;;  %1196 = vrot.lane.b32.xlu1 %v1194_v50, %s3956_s22  ;;  %v1489_v46 = vld [vmem:[#allocation7 + $0x28] sm:$0xff] }
 0x1d3   : > { %v1487_v34 = vld [vmem:[#allocation7 + $0x18] sm:$0xff] }
 0x1d6   : > { %1304 = vrot.lane.b32.xlu0 %v1246_v52, %s3945_s29  ;;  %1202 = vrot.lane.b32.xlu1 %v1200_v53, %s3943_s17 }
 0x1d7   : > { %v2597_v54 = vpop.f32.mrb[4].mxu0 }
 0x1d8   : > { %v1072_v55 = vadd.f32 %v2597_v54, %v3330_v60  ;;  %v1066_v56 = vpop.f32.mrb[5].mxu0 }
 0x1d9   : > { %v1067_v57 = vadd.f32 %v3330_v60, %v1066_v56 }
 0x1da   : > { %1090 = vst.msk [vmem:[#allocation10 + $0x28] sm:$0xff] %vm374_vm5, %v1072_v55  ;;  %1310 = vrot.lane.b32.xlu0 %v1280_v49, %s3939_s14  ;;  %1230 = vrot.lane.b32.xlu1 %v1200_v53, %s3957_s23 }
 0x1db   : > { %1089 = vst.msk [vmem:[#allocation10 + $0x20] sm:$0xff] %vm374_vm5, %v1067_v57 }
 0x1de   : > { %1224 = vrot.lane.b32.xlu0 %v1194_v50, %s3955_s16  ;;  %1258 = vrot.lane.b32.xlu1 %v1200_v53, %s3945_s29 }
 0x1e1   : > { %v1103_v58 = vld [vmem:[#allocation10 + $0x28] sm:$0xff] }
 0x1e2   : > { %1104 = vst.msk [vmem:[#allocation3 + $0x3d] sm:$0xff] %vm374_vm5, %v1103_v58  ;;  %v1101_v59 = vld [vmem:[#allocation10 + $0x20] sm:$0xff]  ;;  %1236 = vrot.lane.b32.xlu0 %v1234_v51, %s3941_s25  ;;  %1264 = vrot.lane.b32.xlu1 %v1234_v51, %s3939_s14 }
 0x1e3   : > { %1102 = vst.msk [vmem:[#allocation3 + $0x33] sm:$0xff] %vm374_vm5, %v1101_v59 }
 0x1e9   : > { %v1360_v61 = vld [vmem:[#allocation3 + $0x3c] sm:$0xff] }
 0x1ea   : > { %v1372_v62 = vld [vmem:[#allocation3 + $0x3e] sm:$0xff]  ;;  %1362 = vrot.lane.b32.xlu1 %v1360_v61, %s3955_s16  ;;  %1334 = vrot.lane.b32.xlu0 %v1360_v61, %s3956_s22  ;;  %v1286_v63 = vld [vmem:[#allocation3 + $0x32] sm:$0xff]  ;;  %1393 = vst.msk [vmem:[#allocation7 + $0x60] sm:$0xff] %vm374_vm5, %v1360_v61 }
 0x1eb   : > { %v1326_v1 = vld [vmem:[#allocation3 + $0x34] sm:$0xff]  ;;  %1345 = vst.msk [vmem:[#allocation7 + $0x48] sm:$0xff] %vm374_vm5, %v1372_v62  ;;  %1347 = vst.msk [vmem:[#allocation7 + $0x50] sm:$0xff] %vm374_vm5, %v1286_v63  ;;  %v1338_v2 = vld [vmem:[#allocation3 + $0x3d] sm:$0xff] }
 0x1ec   : > { %1299 = vst.msk [vmem:[#allocation7 + $0x38] sm:$0xff] %vm374_vm5, %v1326_v1  ;;  %v1292_v3 = vld [vmem:[#allocation3 + $0x33] sm:$0xff] }
 0x1ee   : > { %1374 = vrot.lane.b32.xlu1 %v1372_v62, %s3941_s25  ;;  %1340 = vrot.lane.b32.xlu0 %v1338_v2, %s3943_s17 }
 0x1f2   : > { %1368 = vrot.lane.b32.xlu0 %v1338_v2, %s3957_s23  ;;  %1288 = vrot.lane.b32.xlu1 %v1286_v63, %s3956_s22 }
 0x1f3   : > { %v1491_v52 = vld [vmem:[#allocation7 + $0x38] sm:$0xff] }
 0x1f6   : > { %1396 = vrot.lane.b32.xlu0 %v1338_v2, %s3945_s29  ;;  %1294 = vrot.lane.b32.xlu1 %v1292_v3, %s3943_s17  ;;  %v1493_v2 = vld [vmem:[#allocation7 + $0x48] sm:$0xff] }
 0x1f7   : > { %v2600_v4 = vpop.f32.mrb[6].mxu0 }
 0x1f8   : > { %v1082_v5 = vadd.f32 %v2600_v4, %v3330_v60  ;;  %v1076_v6 = vpop.f32.mrb[7].mxu0 }
 0x1f9   : > { %v1077_v8 = vadd.f32 %v3330_v60, %v1076_v6 }
 0x1fa   : > { %1092 = vst.msk [vmem:[#allocation10 + $0x38] sm:$0xff] %vm374_vm5, %v1082_v5  ;;  %1402 = vrot.lane.b32.xlu0 %v1372_v62, %s3939_s14  ;;  %1322 = vrot.lane.b32.xlu1 %v1292_v3, %s3957_s23 }
 0x1fb   : > { %1091 = vst.msk [vmem:[#allocation10 + $0x30] sm:$0xff] %vm374_vm5, %v1077_v8 }
 0x1fe   : > { %1316 = vrot.lane.b32.xlu0 %v1286_v63, %s3955_s16  ;;  %1350 = vrot.lane.b32.xlu1 %v1292_v3, %s3945_s29 }
 0x201   : > { %v1107_v9 = vld [vmem:[#allocation10 + $0x38] sm:$0xff] }
 0x202   : > { %1108 = vst.msk [vmem:[#allocation3 + $0x51] sm:$0xff] %vm374_vm5, %v1107_v9  ;;  %v1105_v10 = vld [vmem:[#allocation10 + $0x30] sm:$0xff]  ;;  %1328 = vrot.lane.b32.xlu0 %v1326_v1, %s3941_s25  ;;  %1356 = vrot.lane.b32.xlu1 %v1326_v1, %s3939_s14 }
 0x203   : > { %1106 = vst.msk [vmem:[#allocation3 + $0x47] sm:$0xff] %vm374_vm5, %v1105_v10 }
 0x209   : > { %v1452_v60 = vld [vmem:[#allocation3 + $0x50] sm:$0xff] }
 0x20a   : > { %v1464_v11 = vld [vmem:[#allocation3 + $0x52] sm:$0xff]  ;;  %1454 = vrot.lane.b32.xlu1 %v1452_v60, %s3955_s16  ;;  %1426 = vrot.lane.b32.xlu0 %v1452_v60, %s3956_s22  ;;  %v1378_v12 = vld [vmem:[#allocation3 + $0x46] sm:$0xff] }
 0x20b   : > { %v1418_v13 = vld [vmem:[#allocation3 + $0x48] sm:$0xff]  ;;  %1437 = vst.msk [vmem:[#allocation7 + $0x68] sm:$0xff] %vm374_vm5, %v1464_v11  ;;  %1439 = vst.msk [vmem:[#allocation7 + $0x70] sm:$0xff] %vm374_vm5, %v1378_v12  ;;  %v1430_v14 = vld [vmem:[#allocation3 + $0x51] sm:$0xff] }
 0x20c   : > { %1391 = vst.msk [vmem:[#allocation7 + $0x58] sm:$0xff] %vm374_vm5, %v1418_v13  ;;  %v1384_v15 = vld [vmem:[#allocation3 + $0x47] sm:$0xff] }
 0x20e   : > { %1432 = vrot.lane.b32.xlu0 %v1430_v14, %s3943_s17  ;;  %1380 = vrot.lane.b32.xlu1 %v1378_v12, %s3956_s22 }
 0x212   : > { %1408 = vrot.lane.b32.xlu0 %v1378_v12, %s3955_s16  ;;  %1386 = vrot.lane.b32.xlu1 %v1384_v15, %s3943_s17 }
 0x213   : > { %v1495_v9 = vld [vmem:[#allocation7 + $0x58] sm:$0xff] }
 0x216   : > { %1420 = vrot.lane.b32.xlu0 %v1418_v13, %s3941_s25  ;;  %1414 = vrot.lane.b32.xlu1 %v1384_v15, %s3957_s23 }
 0x219   : > { %v1149_v17 = vpop.permute.xlu0 %1148  ;;  %v1179_v18 = vpop.permute.xlu1 %1178 }
 0x21a   : > { %1460 = vrot.lane.b32.xlu0 %v1430_v14, %s3957_s23  ;;  %1442 = vrot.lane.b32.xlu1 %v1384_v15, %s3945_s29 }
 0x21d   : > { %v1156_v20 = vpop.permute.xlu0 %1155  ;;  %v1191_v21 = vpop.permute.xlu1 %1190 }
 0x21e   : > { %1448 = vrot.lane.b32.xlu1 %v1418_v13, %s3939_s14  ;;  %1472 = vrot.lane.b32.xlu0 %v1470_v19, %s3956_s22 }
 0x221   : > { %v1185_v22 = vpop.permute.xlu0 %1184  ;;  %v1135_v23 = vpop.permute.xlu1 %1134 }
 0x222   : > { %1466 = vrot.lane.b32.xlu1 %v1464_v11, %s3941_s25 }
 0x225   : > { %v1213_v25 = vpop.permute.xlu0 %1212  ;;  %v1167_v26 = vpop.permute.xlu1 %1166 }
 0x226   : > { %1215 = vst.msk [vmem:[#allocation7 + $0x20] sm:$0xff] %vm1116_vm12, %v1213_v25  ;;  %1478 = vrot.lane.b32.xlu1 %v1476_v24, %s3943_s17  ;;  %1169 = vst.msk [vmem:[#allocation7 + $0x10] sm:$0xff] %vm1116_vm12, %v1167_v26  ;;  %v1721_v26 = vld [vmem:[#allocation4 + $0x1] ss:$2 sm:$0xf] }
 0x227   : > { %1723 = vrot.lane.b32.xlu0 %v1721_v26, %s3945_s29 }
 0x229   : > { %v1219_v27 = vpop.permute.xlu0 %1218  ;;  %v1173_v28 = vpop.permute.xlu1 %1172 }
 0x22a   : > { %1221 = vst.msk [vmem:[#allocation7 + $0x20] sm:$0xff] %vm1123_vm13, %v1219_v27  ;;  %1175 = vst.msk [vmem:[#allocation7 + $0x10] sm:$0xff] %vm1123_vm13, %v1173_v28  ;;  %v1729_v27 = vld [vmem:[#allocation4 + $0x2] ss:$2 sm:$0xf] }
 0x22b   : > { %1181 = vst.msk [vmem:[#allocation7 + $0x10] sm:$0xff] %vm1130_vm15, %v1179_v18  ;;  %1731 = vrot.lane.b32.xlu0 %v1729_v27, %s3939_s14  ;;  %v3561_v28 = vld [vmem:[%s3923_s4] ss:$0 sm:$0xff] }
 0x22c   : > { %1187 = vst.msk [vmem:[#allocation7 + $0x10] sm:$0xff] %vm1137_vm0, %v1185_v22 }
 0x22d   : > { %v1128_v29 = vpop.permute.xlu0 %1127  ;;  %1193 = vst.msk [vmem:[#allocation7 + $0x10] sm:$0xff] %vm1144_vm1, %v1191_v21 }
 0x22e   : > { %1131 = vst.msk [vmem:[#allocation7] sm:$0xff] %vm1130_vm15, %v1128_v29 }
 0x22f   : > { %1138 = vst.msk [vmem:[#allocation7] sm:$0xff] %vm1137_vm0, %v1135_v23 }
 0x231   : > { %v1142_v30 = vpop.permute.xlu0 %1141 }
 0x232   : > { %1145 = vst.msk [vmem:[#allocation7] sm:$0xff] %vm1144_vm1, %v1142_v30 }
 0x233   : > { %1152 = vst.msk [vmem:[#allocation7] sm:$0xff] %vm1151_vm2, %v1149_v17  ;;  %v1497_v17 = vld [vmem:[#allocation7 + $0x68] sm:$0xff] }
 0x234   : > { %1159 = vst.msk [vmem:[#allocation7] sm:$0xff] %vm1158_vm3, %v1156_v20  ;;  %v1499_v20 = vld [vmem:[#allocation7 + $0x78] sm:$0xff] }
 0x23b   : > { %v1484_v31 = vld [vmem:[#allocation7] sm:$0xff] }
 0x23c   : > { %v1243_v32 = vpop.permute.xlu0 %1242  ;;  %v1271_v33 = vpop.permute.xlu1 %1270  ;;  %1614 = vmatmul.mubr.f32.vlgmr.msra.gmra.mrb[0].mxu1 %v1484_v31 }
 0x23d   : > { %2509 = vmatprep.mubr.msk.f32.mxu1 %vm374_vm5, %v1487_v34 }
 0x240   : > { %v1249_v35 = vpop.permute.xlu0 %1248  ;;  %v1283_v36 = vpop.permute.xlu1 %1282 }
 0x244   : > { %v1277_v37 = vpop.permute.xlu0 %1276  ;;  %v1197_v38 = vpop.permute.xlu1 %1196 }
 0x245   : > { %1199 = vst.msk [vmem:[#allocation7 + $0x10] sm:$0xff] %vm1151_vm2, %v1197_v38 }
 0x248   : > { %v1305_v39 = vpop.permute.xlu0 %1304  ;;  %v1203_v40 = vpop.permute.xlu1 %1202 }
 0x249   : > { %1307 = vst.msk [vmem:[#allocation7 + $0x40] sm:$0xff] %vm1116_vm12, %v1305_v39 }
 0x24a   : > { %1205 = vst.msk [vmem:[#allocation7 + $0x10] sm:$0xff] %vm1158_vm3, %v1203_v40 }
 0x24c   : > { %v1311_v41 = vpop.permute.xlu0 %1310  ;;  %v1231_v42 = vpop.permute.xlu1 %1230 }
 0x24d   : > { %1313 = vst.msk [vmem:[#allocation7 + $0x40] sm:$0xff] %vm1123_vm13, %v1311_v41 }
 0x250   : > { %v1225_v43 = vpop.permute.xlu0 %1224  ;;  %v1259_v44 = vpop.permute.xlu1 %1258 }
 0x251   : > { %v1486_v45 = vld [vmem:[#allocation7 + $0x10] sm:$0xff]  ;;  %1227 = vst.msk [vmem:[#allocation7 + $0x20] sm:$0xff] %vm1130_vm15, %v1225_v43 }
 0x252   : > { %1261 = vst.msk [vmem:[#allocation7 + $0x30] sm:$0xff] %vm1116_vm12, %v1259_v44  ;;  %1619 = vmatmul.mubr.f32.gmra.mrb[2].mxu1 %v1486_v45 }
 0x253   : > { %1233 = vst.msk [vmem:[#allocation7 + $0x20] sm:$0xff] %vm1137_vm0, %v1231_v42  ;;  %2510 = vmatprep.mubr.msk.f32.mxu1 %vm374_vm5, %v1489_v46 }
 0x254   : > { %v1237_v47 = vpop.permute.xlu0 %1236  ;;  %v1265_v48 = vpop.permute.xlu1 %1264 }
 0x255   : > { %1239 = vst.msk [vmem:[#allocation7 + $0x20] sm:$0xff] %vm1144_vm1, %v1237_v47 }
 0x256   : > { %1267 = vst.msk [vmem:[#allocation7 + $0x30] sm:$0xff] %vm1123_vm13, %v1265_v48 }
 0x257   : > { %1245 = vst.msk [vmem:[#allocation7 + $0x20] sm:$0xff] %vm1151_vm2, %v1243_v32 }
 0x258   : > { %1273 = vst.msk [vmem:[#allocation7 + $0x30] sm:$0xff] %vm1130_vm15, %v1271_v33  ;;  %v1718_v33 = vld [vmem:[#allocation4] ss:$2 sm:$0xf] }
 0x259   : > { %1251 = vst.msk [vmem:[#allocation7 + $0x20] sm:$0xff] %vm1158_vm3, %v1249_v35 }
 0x25a   : > { %1279 = vst.msk [vmem:[#allocation7 + $0x30] sm:$0xff] %vm1137_vm0, %v1277_v37 }
 0x25b   : > { %1285 = vst.msk [vmem:[#allocation7 + $0x30] sm:$0xff] %vm1144_vm1, %v1283_v36 }
 0x25c   : > { %v1335_v49 = vpop.permute.xlu0 %1334  ;;  %v1363_v50 = vpop.permute.xlu1 %1362  ;;  %1719 = vst.msk [vmem:[#allocation8] sm:$0xf] %vm387_vm14, %v1718_v33 }
 0x260   : > { %v1488_v51 = vld [vmem:[#allocation7 + $0x20] sm:$0xff]  ;;  %v1341_v53 = vpop.permute.xlu0 %1340  ;;  %v1375_v54 = vpop.permute.xlu1 %1374 }
 0x261   : > { %1624 = vmatmul.mubr.f32.gmra.mrb[4].mxu1 %v1488_v51 }
 0x262   : > { %2511 = vmatprep.mubr.msk.f32.mxu1 %vm374_vm5, %v1491_v52 }
 0x264   : > { %v1369_v55 = vpop.permute.xlu0 %1368  ;;  %v1289_v56 = vpop.permute.xlu1 %1288 }
 0x265   : > { %1291 = vst.msk [vmem:[#allocation7 + $0x30] sm:$0xff] %vm1151_vm2, %v1289_v56 }
 0x268   : > { %v1397_v57 = vpop.permute.xlu0 %1396  ;;  %v1295_v58 = vpop.permute.xlu1 %1294 }
 0x269   : > { %1399 = vst.msk [vmem:[#allocation7 + $0x60] sm:$0xff] %vm1116_vm12, %v1397_v57 }
 0x26a   : > { %1297 = vst.msk [vmem:[#allocation7 + $0x30] sm:$0xff] %vm1158_vm3, %v1295_v58 }
 0x26c   : > { %v1403_v59 = vpop.permute.xlu0 %1402  ;;  %v1323_v61 = vpop.permute.xlu1 %1322 }
 0x26d   : > { %1405 = vst.msk [vmem:[#allocation7 + $0x60] sm:$0xff] %vm1123_vm13, %v1403_v59 }
 0x270   : > { %v1317_v62 = vpop.permute.xlu0 %1316  ;;  %v1351_v63 = vpop.permute.xlu1 %1350 }
 0x271   : > { %v1490_v1 = vld [vmem:[#allocation7 + $0x30] sm:$0xff]  ;;  %1319 = vst.msk [vmem:[#allocation7 + $0x40] sm:$0xff] %vm1130_vm15, %v1317_v62  ;;  %v1974_v62 = vld [vmem:[%s3924_s5 + $0x8] sm:$0xff] }
 0x272   : > { %1353 = vst.msk [vmem:[#allocation7 + $0x50] sm:$0xff] %vm1116_vm12, %v1351_v63  ;;  %1629 = vmatmul.mubr.f32.gmra.mrb[6].mxu1 %v1490_v1  ;;  %v1975_v63 = vld [vmem:[%s3924_s5 + $0x10] sm:$0xff] }
 0x273   : > { %1325 = vst.msk [vmem:[#allocation7 + $0x40] sm:$0xff] %vm1137_vm0, %v1323_v61  ;;  %2512 = vmatprep.mubr.msk.f32.mxu1 %vm374_vm5, %v1493_v2  ;;  %v1973_v61 = vld [vmem:[%s3924_s5] sm:$0xff]  ;;  %v1976_v2 = vld [vmem:[%s3924_s5 + $0x18] sm:$0xff] }
 0x274   : > { %v1329_v3 = vpop.permute.xlu0 %1328  ;;  %v1357_v4 = vpop.permute.xlu1 %1356  ;;  %v2648_v1 = vpack.c.bf16 %v1974_v62, %v1973_v61  ;;  %v1990_v62 = vld [vmem:[%s3924_s5 + $0x88] sm:$0xff] }
 0x275   : > { %1331 = vst.msk [vmem:[#allocation7 + $0x40] sm:$0xff] %vm1144_vm1, %v1329_v3 }
 0x276   : > { %1359 = vst.msk [vmem:[#allocation7 + $0x50] sm:$0xff] %vm1123_vm13, %v1357_v4  ;;  %2649 = vmatpush1.bf16.msra.mxu0 %v2648_v1 }
 0x277   : > { %1337 = vst.msk [vmem:[#allocation7 + $0x40] sm:$0xff] %vm1151_vm2, %v1335_v49  ;;  %2650 = vmatprep.subr.bf16.mxu0 %v2863_v7 }
 0x278   : > { %1365 = vst.msk [vmem:[#allocation7 + $0x50] sm:$0xff] %vm1130_vm15, %v1363_v50 }
 0x279   : > { %1343 = vst.msk [vmem:[#allocation7 + $0x40] sm:$0xff] %vm1158_vm3, %v1341_v53 }
 0x27a   : > { %1371 = vst.msk [vmem:[#allocation7 + $0x50] sm:$0xff] %vm1137_vm0, %v1369_v55 }
 0x27b   : > { %1377 = vst.msk [vmem:[#allocation7 + $0x50] sm:$0xff] %vm1144_vm1, %v1375_v54 }
 0x27c   : > { %v1427_v5 = vpop.permute.xlu0 %1426  ;;  %v1455_v6 = vpop.permute.xlu1 %1454 }
 0x280   : > { %v1492_v8 = vld [vmem:[#allocation7 + $0x40] sm:$0xff]  ;;  %v1433_v10 = vpop.permute.xlu0 %1432  ;;  %v1381_v60 = vpop.permute.xlu1 %1380 }
 0x281   : > { %1634 = vmatmul.mubr.f32.gmra.mrb[8].mxu1 %v1492_v8  ;;  %1383 = vst.msk [vmem:[#allocation7 + $0x50] sm:$0xff] %vm1151_vm2, %v1381_v60  ;;  %v2651_v8 = vpack.c.bf16 %v1976_v2, %v1975_v63 }
 0x282   : > { %2513 = vmatprep.mubr.msk.f32.mxu1 %vm374_vm5, %v1495_v9 }
 0x283   : > { %2652 = vmatpush1.bf16.msra.mxu0 %v2651_v8 }
 0x284   : > { %v1409_v11 = vpop.permute.xlu0 %1408  ;;  %v1387_v12 = vpop.permute.xlu1 %1386  ;;  %2653 = vmatprep.subr.bf16.mxu0 %v2863_v7 }
 0x285   : > { %1411 = vst.msk [vmem:[#allocation7 + $0x60] sm:$0xff] %vm1130_vm15, %v1409_v11 }
 0x286   : > { %1389 = vst.msk [vmem:[#allocation7 + $0x50] sm:$0xff] %vm1158_vm3, %v1387_v12 }
 0x288   : > { %v1421_v13 = vpop.permute.xlu0 %1420  ;;  %v1415_v14 = vpop.permute.xlu1 %1414 }
 0x289   : > { %1417 = vst.msk [vmem:[#allocation7 + $0x60] sm:$0xff] %vm1137_vm0, %v1415_v14 }
 0x28a   : > { %1423 = vst.msk [vmem:[#allocation7 + $0x60] sm:$0xff] %vm1144_vm1, %v1421_v13 }
 0x28b   : > { %1429 = vst.msk [vmem:[#allocation7 + $0x60] sm:$0xff] %vm1151_vm2, %v1427_v5 }
 0x28c   : > { %1435 = vst.msk [vmem:[#allocation7 + $0x60] sm:$0xff] %vm1158_vm3, %v1433_v10  ;;  %v1443_v15 = vpop.permute.xlu1 %1442  ;;  %v1461_v18 = vpop.permute.xlu0 %1460 }
 0x28d   : > { %v1494_v16 = vld [vmem:[#allocation7 + $0x50] sm:$0xff]  ;;  %1445 = vst.msk [vmem:[#allocation7 + $0x70] sm:$0xff] %vm1116_vm12, %v1443_v15  ;;  %vm1758_vm12 = vcmask 781952  }
 0x28e   : > { %1639 = vmatmul.mubr.f32.gmra.mrb[10].mxu1 %v1494_v16  ;;  %v1977_v16 = vld [vmem:[%s3924_s5 + $0x20] sm:$0xff] }
 0x28f   : > { %2514 = vmatprep.mubr.msk.f32.mxu1 %vm374_vm5, %v1497_v17  ;;  %v1978_v17 = vld [vmem:[%s3924_s5 + $0x28] sm:$0xff] }
 0x290   : > { %v1449_v19 = vpop.permute.xlu1 %1448  ;;  %v1473_v22 = vpop.permute.xlu0 %1472 }
 0x291   : > { %1451 = vst.msk [vmem:[#allocation7 + $0x70] sm:$0xff] %vm1123_vm13, %v1449_v19  ;;  %v2654_v19 = vpack.c.bf16 %v1978_v17, %v1977_v16  ;;  %vm1766_vm13 = vcmask 913152  }
 0x292   : > { %1457 = vst.msk [vmem:[#allocation7 + $0x70] sm:$0xff] %vm1130_vm15, %v1455_v6  ;;  %vm1774_vm15 = vcmask 1044352  }
 0x293   : > { %1463 = vst.msk [vmem:[#allocation7 + $0x70] sm:$0xff] %vm1137_vm0, %v1461_v18  ;;  %v1496_v21 = vld [vmem:[#allocation7 + $0x60] sm:$0xff]  ;;  %2655 = vmatpush1.bf16.msra.mxu0 %v2654_v19  ;;  %vm1799_vm0 = vcmask 392452  }
 0x294   : > { %1644 = vmatmul.mubr.f32.gmra.mrb[12].mxu1 %v1496_v21  ;;  %v1467_v23 = vpop.permute.xlu1 %1466  ;;  %2656 = vmatprep.subr.bf16.mxu0 %v2863_v7 }
 0x295   : > { %1469 = vst.msk [vmem:[#allocation7 + $0x70] sm:$0xff] %vm1144_vm1, %v1467_v23  ;;  %2515 = vmatprep.mubr.msk.f32.mxu1 %vm374_vm5, %v1499_v20  ;;  %v1980_v23 = vld [vmem:[%s3924_s5 + $0x38] sm:$0xff]  ;;  %vm1808_vm1 = vcmask 523652  }
 0x296   : > { %1475 = vst.msk [vmem:[#allocation7 + $0x70] sm:$0xff] %vm1151_vm2, %v1473_v22  ;;  %v1979_v22 = vld [vmem:[%s3924_s5 + $0x30] sm:$0xff]  ;;  %vm1817_vm2 = vcmask 654852  }
 0x298   : > { %v1479_v24 = vpop.permute.xlu1 %1478 }
 0x299   : > { %1481 = vst.msk [vmem:[#allocation7 + $0x70] sm:$0xff] %vm1158_vm3, %v1479_v24  ;;  %v1724_v35 = vpop.permute.xlu0 %1723  ;;  %v2657_v24 = vpack.c.bf16 %v1980_v23, %v1979_v22  ;;  %vm1826_vm3 = vcmask 786052  }
 0x29a   : > { %1727 = vst.msk [vmem:[#allocation8] sm:$0xf] %vm1726_vm4, %v1724_v35 }
 0x29b   : > { %2658 = vmatpush1.bf16.msra.mxu0 %v2657_v24 }
 0x29c   : > { %2659 = vmatprep.subr.bf16.mxu0 %v2863_v7 }
 0x29d   : > { %v1732_v39 = vpop.permute.xlu0 %1731 }
 0x29e   : > { %1735 = vst.msk [vmem:[#allocation8] sm:$0xf] %vm1734_vm6, %v1732_v39 }
 0x2a0   : > { %v1498_v25 = vld [vmem:[#allocation7 + $0x70] sm:$0xff] }
 0x2a1   : > { %1649 = vmatmul.mubr.f32.gmra.mrb[14].mxu1 %v1498_v25 }
 0x30f   : > { %v1615_v29 = vpop.f32.mrb[0].mxu1 }
 0x310   : > { %v1616_v30 = vadd.f32 %v3561_v28, %v1615_v29  ;;  %v1617_v31 = vpop.f32.mrb[1].mxu1 }
 0x311   : > { %v1982_v31 = vld [vmem:[%s3924_s5 + $0x48] sm:$0xff] }
 0x312   : > { %v1662_v32 = vmul.f32 0.70710677, %v1616_v30  ;;  %v1654_v36 = vmul.f32 0.5, %v1616_v30  ;;  %v1981_v30 = vld [vmem:[%s3924_s5 + $0x40] sm:$0xff] }
 0x313   : > { %v2660_v35 = vpack.c.bf16 %v1982_v31, %v1981_v30 }
 0x314   : > { %2768 = verf.f32 %v1662_v32  ;;  %v1983_v32 = vld [vmem:[%s3924_s5 + $0x50] sm:$0xff] }
 0x315   : > { %2661 = vmatpush1.bf16.msra.mxu0 %v2660_v35 }
 0x316   : > { %2662 = vmatprep.subr.bf16.mxu0 %v2863_v7 }
 0x31e   : > { %v2769_v34 = vpop.eup %2768 }
 0x31f   : > { %v1678_v37 = vadd.f32 1.0, %v2769_v34 }
 0x321   : > { %v1686_v38 = vmul.f32 %v1678_v37, %v1654_v36  ;;  %v1984_v36 = vld [vmem:[%s3924_s5 + $0x58] sm:$0xff] }
 0x323   : > { %1694 = vst.msk [vmem:[#allocation11] sm:$0xff] %vm374_vm5, %v1686_v38 }
 0x325   : > { %v1620_v40 = vpop.f32.mrb[2].mxu1 }
 0x326   : > { %v1621_v41 = vadd.f32 %v3561_v28, %v1620_v40  ;;  %v1622_v42 = vpop.f32.mrb[3].mxu1 }
 0x328   : > { %v1663_v43 = vmul.f32 0.70710677, %v1621_v41  ;;  %v1655_v50 = vmul.f32 0.5, %v1621_v41  ;;  %v2663_v41 = vpack.c.bf16 %v1984_v36, %v1983_v32 }
 0x32a   : > { %2770 = verf.f32 %v1663_v43  ;;  %v1702_v44 = vld [vmem:[#allocation11] sm:$0xff]  ;;  %2664 = vmatpush1.bf16.msra.mxu0 %v2663_v41 }
 0x32b   : > { %1703 = vst.msk [vmem:[#allocation4 + $0xb] sm:$0xff] %vm374_vm5, %v1702_v44  ;;  %2665 = vmatprep.subr.bf16.mxu0 %v2863_v7 }
 0x332   : > { %v1737_v46 = vld [vmem:[#allocation4 + $0xa] ss:$2 sm:$0xf]  ;;  %v1745_v54 = vld [vmem:[#allocation4 + $0xb] ss:$2 sm:$0xf] }
 0x333   : > { %1739 = vrot.lane.b32.xlu0 %v1737_v46, %s3955_s16  ;;  %v1753_v55 = vld [vmem:[#allocation4 + $0xc] ss:$2 sm:$0xf] }
 0x334   : > { %v1625_v45 = vpop.f32.mrb[4].mxu1  ;;  %v2771_v47 = vpop.eup %2770  ;;  %v1985_v46 = vld [vmem:[%s3924_s5 + $0x60] sm:$0xff] }
 0x335   : > { %v1626_v48 = vadd.f32 %v3561_v28, %v1625_v45  ;;  %v1627_v49 = vpop.f32.mrb[5].mxu1  ;;  %v1679_v51 = vadd.f32 1.0, %v2771_v47  ;;  %v1986_v47 = vld [vmem:[%s3924_s5 + $0x68] sm:$0xff] }
 0x336   : > { %v2666_v49 = vpack.c.bf16 %v1986_v47, %v1985_v46 }
 0x337   : > { %v1664_v52 = vmul.f32 0.70710677, %v1626_v48  ;;  %v1687_v53 = vmul.f32 %v1679_v51, %v1655_v50  ;;  %1747 = vrot.lane.b32.xlu0 %v1745_v54, %s3957_s23  ;;  %v1656_v58 = vmul.f32 0.5, %v1626_v48 }
 0x338   : > { %2667 = vmatpush1.bf16.msra.mxu0 %v2666_v49 }
 0x339   : > { %2772 = verf.f32 %v1664_v52  ;;  %1695 = vst.msk [vmem:[#allocation11 + $0x8] sm:$0xff] %vm374_vm5, %v1687_v53  ;;  %2668 = vmatprep.subr.bf16.mxu0 %v2863_v7 }
 0x33b   : > { %1755 = vrot.lane.b32.xlu0 %v1753_v55, %s3941_s25 }
 0x340   : > { %v1704_v56 = vld [vmem:[#allocation11 + $0x8] sm:$0xff] }
 0x341   : > { %1705 = vst.msk [vmem:[#allocation4 + $0x15] sm:$0xff] %vm374_vm5, %v1704_v56  ;;  %v1987_v56 = vld [vmem:[%s3924_s5 + $0x70] sm:$0xff] }
 0x343   : > { %v2773_v57 = vpop.eup %2772 }
 0x344   : > { %v1680_v59 = vadd.f32 1.0, %v2773_v57  ;;  %v1988_v57 = vld [vmem:[%s3924_s5 + $0x78] sm:$0xff] }
 0x345   : > { %v1630_v4 = vpop.f32.mrb[6].mxu1  ;;  %v2669_v61 = vpack.c.bf16 %v1988_v57, %v1987_v56 }
 0x346   : > { %v1688_v3 = vmul.f32 %v1680_v59, %v1656_v58  ;;  %v1631_v5 = vadd.f32 %v3561_v28, %v1630_v4  ;;  %v1632_v6 = vpop.f32.mrb[7].mxu1  ;;  %v1989_v58 = vld [vmem:[%s3924_s5 + $0x80] sm:$0xff] }
 0x347   : > { %2670 = vmatpush1.bf16.msra.mxu0 %v2669_v61  ;;  %v2672_v1 = vpack.c.bf16 %v1990_v62, %v1989_v58 }
 0x348   : > { %1696 = vst.msk [vmem:[#allocation11 + $0x10] sm:$0xff] %vm374_vm5, %v1688_v3  ;;  %v1665_v9 = vmul.f32 0.70710677, %v1631_v5  ;;  %v1761_v10 = vld [vmem:[#allocation4 + $0x14] ss:$2 sm:$0xf]  ;;  %2671 = vmatprep.subr.bf16.mxu0 %v2863_v7 }
 0x349   : > { %1763 = vrot.lane.b32.xlu0 %v1761_v10, %s3956_s22  ;;  %v1785_v60 = vld [vmem:[#allocation4 + $0x15] ss:$2 sm:$0xf]  ;;  %v1793_v13 = vld [vmem:[#allocation4 + $0x16] ss:$2 sm:$0xf] }
 0x34a   : > { %2774 = verf.f32 %v1665_v9  ;;  %v1787_v11 = vrot.slane %v1785_v60, 4  ;;  %v1769_v12 = vld [vmem:[#allocation4 + $0x15] ss:$2 sm:$0xf]  ;;  %v1795_v21 = vrot.slane %v1793_v13, 4  ;;  %v1657_v33 = vmul.f32 0.5, %v1631_v5 }
 0x34b   : > { %v1777_v14 = vld [vmem:[#allocation4 + $0x16] ss:$2 sm:$0xf]  ;;  %2673 = vmatpush1.bf16.msra.mxu0 %v2672_v1 }
 0x34c   : > { %1788 = vrot.lane.b32.xlu1 %v1787_v11, %s3945_s29  ;;  %1778 = vst.msk [vmem:[#allocation8 + $0x8] sm:$0xf] %vm387_vm14, %v1777_v14  ;;  %v1779_v15 = vld [vmem:[#allocation4 + $0x14] ss:$2 sm:$0xf]  ;;  %2706 = vmatprep.subr.bf16.mxu0 %v2863_v7  ;;  %s2796_s29 = scalar_lea.vmem %s2795_s0, 128 }
 0x34d   : > { %1771 = vrot.lane.b32.xlu0 %v1769_v12, %s3958_s28  ;;  %v1781_v18 = vrot.slane %v1779_v15, 4 }
 0x34f   : > { %v1706_v20 = vld [vmem:[#allocation11 + $0x10] sm:$0xff]  ;;  %1784 = vst.msk [vmem:[#allocation8] sm:$0xf0] %vm1783_vm7, %v1781_v18 }
 0x350   : > { %1707 = vst.msk [vmem:[#allocation4 + $0x1f] sm:$0xff] %vm374_vm5, %v1706_v20  ;;  %1796 = vrot.lane.b32.xlu1 %v1795_v21, %s3959_s24 }
 0x354   : > { %v1635_v25 = vpop.f32.mrb[8].mxu1  ;;  %v2775_v26 = vpop.eup %2774 }
 0x355   : > { %v1636_v27 = vadd.f32 %v3561_v28, %v1635_v25  ;;  %v1637_v29 = vpop.f32.mrb[9].mxu1  ;;  %v1681_v34 = vadd.f32 1.0, %v2775_v26 }
 0x357   : > { %v1666_v37 = vmul.f32 0.70710677, %v1636_v27  ;;  %v1802_v38 = vld [vmem:[#allocation4 + $0x1e] ss:$2 sm:$0xf]  ;;  %v1689_v39 = vmul.f32 %v1681_v34, %v1657_v33  ;;  %v1658_v54 = vmul.f32 0.5, %v1636_v27 }
 0x358   : > { %v1804_v40 = vrot.slane %v1802_v38, 4  ;;  %v1811_v42 = vld [vmem:[#allocation4 + $0x1f] ss:$2 sm:$0xf] }
 0x359   : > { %2776 = verf.f32 %v1666_v37  ;;  %1697 = vst.msk [vmem:[#allocation11 + $0x18] sm:$0xff] %vm374_vm5, %v1689_v39  ;;  %v1813_v43 = vrot.slane %v1811_v42, 4  ;;  %v1820_v44 = vld [vmem:[#allocation4 + $0x20] ss:$2 sm:$0xf] }
 0x35a   : > { %1805 = vrot.lane.b32.xlu1 %v1804_v40, %s3955_s16  ;;  %v1822_v45 = vrot.slane %v1820_v44, 4 }
 0x35e   : > { %1814 = vrot.lane.b32.xlu1 %v1813_v43, %s3957_s23 }
 0x360   : > { %v1708_v48 = vld [vmem:[#allocation11 + $0x18] sm:$0xff] }
 0x361   : > { %1709 = vst.msk [vmem:[#allocation4 + $0x29] sm:$0xff] %vm374_vm5, %v1708_v48  ;;  %v1640_v50 = vpop.f32.mrb[10].mxu1 }
 0x362   : > { %1823 = vrot.lane.b32.xlu1 %v1822_v45, %s3960_s21  ;;  %v1641_v52 = vadd.f32 %v3561_v28, %v1640_v50  ;;  %v1642_v53 = vpop.f32.mrb[11].mxu1 }
 0x363   : > { %v2777_v51 = vpop.eup %2776 }
 0x364   : > { %v1682_v55 = vadd.f32 1.0, %v2777_v51  ;;  %v1667_v59 = vmul.f32 0.70710677, %v1641_v52  ;;  %v1659_v17 = vmul.f32 0.5, %v1641_v52 }
 0x366   : > { %v1690_v63 = vmul.f32 %v1682_v55, %v1658_v54  ;;  %2778 = verf.f32 %v1667_v59 }
 0x367   : > { %v1645_v2 = vpop.f32.mrb[12].mxu1 }
 0x368   : > { %1698 = vst.msk [vmem:[#allocation11 + $0x20] sm:$0xff] %vm374_vm5, %v1690_v63  ;;  %v1854_v3 = vld [vmem:[#allocation4 + $0x29] ss:$2 sm:$0xf]  ;;  %v1646_v4 = vadd.f32 %v3561_v28, %v1645_v2  ;;  %v1647_v5 = vpop.f32.mrb[13].mxu1 }
 0x369   : > { %1856 = vrot.lane.b32.xlu0 %v1854_v3, %s3961_s26  ;;  %v1829_v6 = vld [vmem:[#allocation4 + $0x28] ss:$2 sm:$0xf]  ;;  %v1838_v10 = vld [vmem:[#allocation4 + $0x29] ss:$2 sm:$0xf] }
 0x36a   : > { %v1831_v8 = vrot.slane %v1829_v6, 4  ;;  %v1668_v9 = vmul.f32 0.70710677, %v1646_v4  ;;  %v1860_v60 = vld [vmem:[#allocation4 + $0x2a] ss:$2 sm:$0xf] }
 0x36b   : > { %v1847_v11 = vld [vmem:[#allocation4 + $0x2a] ss:$2 sm:$0xf]  ;;  %v1840_v15 = vrot.slane %v1838_v10, 4  ;;  %v1660_v26 = vmul.f32 0.5, %v1646_v4 }
 0x36c   : > { %1832 = vrot.lane.b32.xlu1 %v1831_v8, %s3956_s22  ;;  %2780 = verf.f32 %v1668_v9  ;;  %v1849_v12 = vrot.slane %v1847_v11, 4  ;;  %v1852_v13 = vld [vmem:[#allocation4 + $0x28] ss:$2 sm:$0xf] }
 0x36d   : > { %1862 = vrot.lane.b32.xlu0 %v1860_v60, %s3959_s24  ;;  %1853 = vst.msk [vmem:[#allocation8 + $0x10] sm:$0xf] %vm387_vm14, %v1852_v13 }
 0x36e   : > { %1851 = vst.msk [vmem:[#allocation8 + $0x8] sm:$0xf0] %vm1783_vm7, %v1849_v12 }
 0x36f   : > { %v1710_v14 = vld [vmem:[#allocation11 + $0x20] sm:$0xff] }
 0x370   : > { %1711 = vst.msk [vmem:[#allocation4 + $0x33] sm:$0xff] %vm374_vm5, %v1710_v14  ;;  %v2779_v16 = vpop.eup %2778  ;;  %1841 = vrot.lane.b32.xlu1 %v1840_v15, %s3958_s28 }
 0x371   : > { %v1683_v18 = vadd.f32 1.0, %v2779_v16 }
 0x373   : > { %v1691_v19 = vmul.f32 %v1683_v18, %v1659_v17 }
 0x374   : > { %v1650_v20 = vpop.f32.mrb[14].mxu1 }
 0x375   : > { %1699 = vst.msk [vmem:[#allocation11 + $0x28] sm:$0xff] %vm374_vm5, %v1691_v19  ;;  %v1970_v21 = vld [vmem:[#allocation8 + $0x8] sm:$0xff]  ;;  %v1651_v22 = vadd.f32 %v3561_v28, %v1650_v20  ;;  %v1652_v23 = vpop.f32.mrb[15].mxu1 }
 0x376   : > { %v2781_v25 = vpop.eup %2780  ;;  %2517 = vmatprep.mubr.msk.f32.mxu0 %vm374_vm5, %v1970_v21 }
 0x377   : > { %v1867_v24 = vld [vmem:[#allocation4 + $0x32] ss:$2 sm:$0xf]  ;;  %v1684_v27 = vadd.f32 1.0, %v2781_v25  ;;  %v1669_v29 = vmul.f32 0.70710677, %v1651_v22 }
 0x378   : > { %1869 = vrot.lane.b32.xlu0 %v1867_v24, %s3955_s16  ;;  %v1874_v31 = vld [vmem:[#allocation4 + $0x33] ss:$2 sm:$0xf]  ;;  %v1881_v28 = vld [vmem:[#allocation4 + $0x34] ss:$2 sm:$0xf] }
 0x379   : > { %v1692_v30 = vmul.f32 %v1684_v27, %v1660_v26  ;;  %2782 = verf.f32 %v1669_v29  ;;  %v1661_v37 = vmul.f32 0.5, %v1651_v22  ;;  %v2103_v27 = vld [vmem:[#allocation5 + $0x1] ss:$2 sm:$0x3] }
 0x37a   : > { %v2111_v29 = vld [vmem:[#allocation5 + $0x2] ss:$2 sm:$0x3] }
 0x37b   : > { %1700 = vst.msk [vmem:[#allocation11 + $0x30] sm:$0xff] %vm374_vm5, %v1692_v30  ;;  %v2254_v30 = vld [vmem:[%s3926_s7 + $0x100] sm:$0xff] }
 0x37c   : > { %1876 = vrot.lane.b32.xlu0 %v1874_v31, %s3957_s23  ;;  %v1712_v32 = vld [vmem:[#allocation11 + $0x28] sm:$0xff]  ;;  %v2255_v31 = vld [vmem:[%s3926_s7 + $0x108] sm:$0xff] }
 0x37d   : > { %1713 = vst.msk [vmem:[#allocation4 + $0x3d] sm:$0xff] %vm374_vm5, %v1712_v32  ;;  %v2707_v32 = vpack.c.bf16 %v2255_v31, %v2254_v30  ;;  %v2246_v30 = vld [vmem:[%s3926_s7 + $0xc0] sm:$0xff]  ;;  %v2247_v31 = vld [vmem:[%s3926_s7 + $0xc8] sm:$0xff] }
 0x380   : > { %1883 = vrot.lane.b32.xlu0 %v1881_v28, %s3960_s21  ;;  %v2256_v28 = vld [vmem:[%s3926_s7 + $0x110] sm:$0xff] }
 0x382   : > { %v1714_v33 = vld [vmem:[#allocation11 + $0x30] sm:$0xff] }
 0x383   : > { %v2783_v34 = vpop.eup %2782  ;;  %1715 = vst.msk [vmem:[#allocation4 + $0x47] sm:$0xff] %vm374_vm5, %v1714_v33  ;;  %v2257_v33 = vld [vmem:[%s3926_s7 + $0x118] sm:$0xff] }
 0x384   : > { %v1888_v35 = vld [vmem:[#allocation4 + $0x3c] ss:$2 sm:$0xf]  ;;  %v1909_v36 = vld [vmem:[#allocation4 + $0x3d] ss:$2 sm:$0xf] }
 0x385   : > { %v1685_v38 = vadd.f32 1.0, %v2783_v34  ;;  %1890 = vrot.lane.b32.xlu0 %v1888_v35, %s3956_s22  ;;  %v1911_v39 = vrot.slane %v1909_v36, 4  ;;  %v1916_v40 = vld [vmem:[#allocation4 + $0x3e] ss:$2 sm:$0xf]  ;;  %v2710_v34 = vpack.c.bf16 %v2257_v33, %v2256_v28  ;;  %v2690_v28 = vpack.c.bf16 %v2247_v31, %v2246_v30 }
 0x386   : > { %v1902_v41 = vld [vmem:[#allocation4 + $0x3e] ss:$2 sm:$0xf]  ;;  %v1895_v44 = vld [vmem:[#allocation4 + $0x3d] ss:$2 sm:$0xf] }
 0x387   : > { %v1693_v42 = vmul.f32 %v1685_v38, %v1661_v37  ;;  %1912 = vrot.lane.b32.xlu1 %v1911_v39, %s3961_s26  ;;  %1903 = vst.msk [vmem:[#allocation8 + $0x18] sm:$0xf] %vm387_vm14, %v1902_v41  ;;  %v1904_v43 = vld [vmem:[#allocation4 + $0x3c] ss:$2 sm:$0xf]  ;;  %v1918_v46 = vrot.slane %v1916_v40, 4 }
 0x388   : > { %v1906_v45 = vrot.slane %v1904_v43, 4  ;;  %vm1791_vm14 = vcmask 261252   ;;  %v2099_v35 = vld [vmem:[#allocation5] ss:$2 sm:$0x3]  ;;  %v2231_v33 = vld [vmem:[%s3926_s7 + $0x48] sm:$0xff] }
 0x389   : > { %1701 = vst.msk [vmem:[#allocation11 + $0x38] sm:$0xff] %vm374_vm5, %v1693_v42  ;;  %1897 = vrot.lane.b32.xlu0 %v1895_v44, %s3958_s28 }
 0x38a   : > { %1908 = vst.msk [vmem:[#allocation8 + $0x10] sm:$0xf0] %vm1783_vm7, %v1906_v45  ;;  %v1924_v47 = vld [vmem:[#allocation4 + $0x46] ss:$2 sm:$0xf] }
 0x38b   : > { %1919 = vrot.lane.b32.xlu1 %v1918_v46, %s3959_s24  ;;  %v1926_v48 = vrot.slane %v1924_v47, 4  ;;  %v1932_v49 = vld [vmem:[#allocation4 + $0x47] ss:$2 sm:$0xf]  ;;  %v2238_v47 = vld [vmem:[%s3926_s7 + $0x80] sm:$0xff] }
 0x38c   : > { %v1934_v51 = vrot.slane %v1932_v49, 4  ;;  %v1940_v52 = vld [vmem:[#allocation4 + $0x48] ss:$2 sm:$0xf]  ;;  %v2222_v49 = vld [vmem:[%s3926_s7] sm:$0xff] }
 0x38d   : > { %v1942_v53 = vrot.slane %v1940_v52, 4  ;;  %2105 = vrot.lane.b32.xlu0 %v2103_v27, %s3959_s24  ;;  %v2240_v52 = vld [vmem:[%s3926_s7 + $0x90] sm:$0xff] }
 0x38f   : > { %1927 = vrot.lane.b32.xlu1 %v1926_v48, %s3955_s16  ;;  %v2239_v48 = vld [vmem:[%s3926_s7 + $0x88] sm:$0xff] }
 0x390   : > { %v1716_v50 = vld [vmem:[#allocation11 + $0x38] sm:$0xff] }
 0x391   : > { %1717 = vst.msk [vmem:[#allocation4 + $0x51] sm:$0xff] %vm374_vm5, %v1716_v50  ;;  %2113 = vrot.lane.b32.xlu0 %v2111_v29, %s3957_s23  ;;  %v2674_v50 = vpack.c.bf16 %v2239_v48, %v2238_v47  ;;  %v2253_v47 = vld [vmem:[%s3926_s7 + $0xf8] sm:$0xff] }
 0x393   : > { %1935 = vrot.lane.b32.xlu1 %v1934_v51, %s3957_s23  ;;  %v2223_v51 = vld [vmem:[%s3926_s7 + $0x8] sm:$0xff]  ;;  %2675 = vmatprep.subr.bf16.mxu1 %v2674_v50 }
 0x397   : > { %1943 = vrot.lane.b32.xlu1 %v1942_v53, %s3960_s21  ;;  %v2241_v53 = vld [vmem:[%s3926_s7 + $0x98] sm:$0xff]  ;;  %s3876_s21 = scalar_lea.hbm %s3928_s9, %s2522_s27 }
 0x398   : > { %v1948_v54 = vld [vmem:[#allocation4 + $0x50] ss:$2 sm:$0xf]  ;;  %v1956_v57 = vld [vmem:[#allocation4 + $0x51] ss:$2 sm:$0xf] }
 0x399   : > { %v1950_v55 = vrot.slane %v1948_v54, 4  ;;  %v1964_v56 = vld [vmem:[#allocation4 + $0x52] ss:$2 sm:$0xf]  ;;  %v1958_v59 = vrot.slane %v1956_v57, 4  ;;  %v2676_v54 = vpack.c.bf16 %v2223_v51, %v2222_v49  ;;  %v2225_v57 = vld [vmem:[%s3926_s7 + $0x18] sm:$0xff] }
 0x39a   : > { %v1966_v58 = vrot.slane %v1964_v56, 4  ;;  %v2224_v56 = vld [vmem:[%s3926_s7 + $0x10] sm:$0xff] }
 0x39b   : > { %1951 = vrot.lane.b32.xlu1 %v1950_v55, %s3956_s22  ;;  %v2678_v55 = vpack.c.bf16 %v2241_v53, %v2240_v52  ;;  %2677 = vmatpush3.bf16.msra.mxu1 %v2676_v54 }
 0x39c   : > { %1968 = vst.msk [vmem:[#allocation8 + $0x18] sm:$0xf0] %vm1783_vm7, %v1966_v58  ;;  %vm1835_vm7 = vcmask 917252   ;;  %v2242_v58 = vld [vmem:[%s3926_s7 + $0xa0] sm:$0xff] }
 0x39d   : > { %2679 = vmatprep.subr.bf16.mxu1 %v2678_v55  ;;  %v2236_v55 = vld [vmem:[%s3926_s7 + $0x70] sm:$0xff] }
 0x39f   : > { %1959 = vrot.lane.b32.xlu1 %v1958_v59, %s3958_s28  ;;  %v2243_v59 = vld [vmem:[%s3926_s7 + $0xa8] sm:$0xff] }
 0x3a3   : > { %v1972_v14 = vld [vmem:[#allocation8 + $0x18] sm:$0xff] }
 0x3a5   : > { %v1740_v61 = vpop.permute.xlu0 %1739 }
 0x3a6   : > { %1743 = vst.msk [vmem:[#allocation8] sm:$0xf] %vm1742_vm10, %v1740_v61 }
 0x3a9   : > { %v1748_v62 = vpop.permute.xlu0 %1747 }
 0x3aa   : > { %1751 = vst.msk [vmem:[#allocation8] sm:$0xf] %vm1750_vm11, %v1748_v62 }
 0x3ad   : > { %v1756_v63 = vpop.permute.xlu0 %1755 }
 0x3ae   : > { %1759 = vst.msk [vmem:[#allocation8] sm:$0xf] %vm1758_vm12, %v1756_v63  ;;  %v2680_v63 = vpack.c.bf16 %v2225_v57, %v2224_v56  ;;  %v2237_v57 = vld [vmem:[%s3926_s7 + $0x78] sm:$0xff] }
 0x3b0   : > { %2681 = vmatpush3.bf16.msra.mxu1 %v2680_v63 }
 0x3bb   : > { %v1764_v1 = vpop.permute.xlu0 %1763 }
 0x3bc   : > { %1767 = vst.msk [vmem:[#allocation8] sm:$0xf] %vm1766_vm13, %v1764_v1 }
 0x3be   : > { %v1789_v2 = vpop.permute.xlu1 %1788 }
 0x3bf   : > { %1792 = vst.msk [vmem:[#allocation8] sm:$0xf0] %vm1791_vm14, %v1789_v2  ;;  %v1772_v3 = vpop.permute.xlu0 %1771  ;;  %v2226_v2 = vld [vmem:[%s3926_s7 + $0x20] sm:$0xff] }
 0x3c0   : > { %1775 = vst.msk [vmem:[#allocation8] sm:$0xf] %vm1774_vm15, %v1772_v3  ;;  %v2227_v3 = vld [vmem:[%s3926_s7 + $0x28] sm:$0xff] }
 0x3c2   : > { %v1797_v4 = vpop.permute.xlu1 %1796 }
 0x3c3   : > { %1800 = vst.msk [vmem:[#allocation8] sm:$0xf0] %vm1799_vm0, %v1797_v4 }
 0x3cc   : > { %v1806_v5 = vpop.permute.xlu1 %1805 }
 0x3cd   : > { %1809 = vst.msk [vmem:[#allocation8] sm:$0xf0] %vm1808_vm1, %v1806_v5  ;;  %v2682_v5 = vpack.c.bf16 %v2243_v59, %v2242_v58  ;;  %v2704_v59 = vpack.c.bf16 %v2237_v57, %v2236_v55 }
 0x3cf   : > { %2683 = vmatprep.subr.bf16.mxu1 %v2682_v5 }
 0x3d0   : > { %v1815_v6 = vpop.permute.xlu1 %1814 }
 0x3d1   : > { %1818 = vst.msk [vmem:[#allocation8] sm:$0xf0] %vm1817_vm2, %v1815_v6 }
 0x3d4   : > { %v1824_v8 = vpop.permute.xlu1 %1823 }
 0x3d5   : > { %1827 = vst.msk [vmem:[#allocation8] sm:$0xf0] %vm1826_vm3, %v1824_v8 }
 0x3db   : > { %v1857_v9 = vpop.permute.xlu0 %1856 }
 0x3dc   : > { %1859 = vst.msk [vmem:[#allocation8 + $0x10] sm:$0xf] %vm1726_vm4, %v1857_v9  ;;  %vm2100_vm4 = vcmask 254976   ;;  %v2244_v9 = vld [vmem:[%s3926_s7 + $0xb0] sm:$0xff] }
 0x3dd   : > { %2101 = vst.msk [vmem:[#allocation9] sm:$0x3] %vm2100_vm4, %v2099_v35 }
 0x3de   : > { %v1833_v10 = vpop.permute.xlu1 %1832 }
 0x3df   : > { %1836 = vst.msk [vmem:[#allocation8] sm:$0xf0] %vm1835_vm7, %v1833_v10  ;;  %v1863_v60 = vpop.permute.xlu0 %1862  ;;  %v2245_v10 = vld [vmem:[%s3926_s7 + $0xb8] sm:$0xff] }
 0x3e0   : > { %1865 = vst.msk [vmem:[#allocation8 + $0x10] sm:$0xf] %vm1734_vm6, %v1863_v60  ;;  %vm2108_vm6 = vcmask 517376  }
 0x3e2   : > { %v1842_v11 = vpop.permute.xlu1 %1841 }
 0x3e3   : > { %1845 = vst.msk [vmem:[#allocation8] sm:$0xf0] %vm1844_vm9, %v1842_v11 }
 0x3ea   : > { %v1870_v12 = vpop.permute.xlu0 %1869  ;;  %v1969_v13 = vld [vmem:[#allocation8] sm:$0xff] }
 0x3eb   : > { %1872 = vst.msk [vmem:[#allocation8 + $0x10] sm:$0xf] %vm1742_vm10, %v1870_v12  ;;  %2069 = vmatmul.mubr.f32.vlgmr.msra.gmra.mrb[8].mxu0 %v1969_v13  ;;  %vm3962_vm10 = vcmask 257024   ;;  %v2684_v12 = vpack.c.bf16 %v2227_v3, %v2226_v2 }
 0x3ec   : > { %2518 = vmatprep.mubr.msk.f32.mxu0 %vm374_vm5, %v1972_v14  ;;  %2708 = vmatpush3.bf16.msra.mxu0 %v2707_v32  ;;  %vm2869_vm5 = vmmov 0   ;;  %v2228_v14 = vld [vmem:[%s3926_s7 + $0x30] sm:$0xff]  ;;  %v2230_v32 = vld [vmem:[%s3926_s7 + $0x40] sm:$0xff] }
 0x3ed   : > { %2709 = vmatprep.subr.bf16.mxu0 %v2863_v7  ;;  %v3742_v7 = vld [vmem:[%s3925_s6] ss:$0 sm:$0xff]  ;;  %2685 = vmatpush3.bf16.msra.mxu1 %v2684_v12 }
 0x3ee   : > { %v1877_v15 = vpop.permute.xlu0 %1876 }
 0x3ef   : > { %1879 = vst.msk [vmem:[#allocation8 + $0x10] sm:$0xf] %vm1750_vm11, %v1877_v15  ;;  %vm3963_vm11 = vmmov %vm3962_vm10  ;;  %v2229_v15 = vld [vmem:[%s3926_s7 + $0x38] sm:$0xff] }
 0x3f0   : > { %2711 = vmatpush3.bf16.msra.mxu0 %v2710_v34 }
 0x3f2   : > { %v1884_v16 = vpop.permute.xlu0 %1883 }
 0x3f3   : > { %1886 = vst.msk [vmem:[#allocation8 + $0x10] sm:$0xf] %vm1758_vm12, %v1884_v16  ;;  %vm2157_vm12 = vcmask 257026  }
 0x3f7   : > { %v1891_v17 = vpop.permute.xlu0 %1890 }
 0x3f8   : > { %1893 = vst.msk [vmem:[#allocation8 + $0x10] sm:$0xf] %vm1766_vm13, %v1891_v17  ;;  %v2686_v17 = vpack.c.bf16 %v2245_v10, %v2244_v9  ;;  %vm3964_vm13 = vmmov %vm3962_vm10 }
 0x3f9   : > { %v1913_v18 = vpop.permute.xlu1 %1912 }
 0x3fa   : > { %1915 = vst.msk [vmem:[#allocation8 + $0x10] sm:$0xf0] %vm1791_vm14, %v1913_v18  ;;  %2687 = vmatprep.subr.bf16.mxu1 %v2686_v17  ;;  %vm3965_vm14 = vmmov %vm3962_vm10 }
 0x3fb   : > { %v1898_v19 = vpop.permute.xlu0 %1897 }
 0x3fc   : > { %1900 = vst.msk [vmem:[#allocation8 + $0x10] sm:$0xf] %vm1774_vm15, %v1898_v19  ;;  %vm2124_vm15 = vcmask 1042176  }
 0x3fd   : > { %v1920_v20 = vpop.permute.xlu1 %1919 }
 0x3fe   : > { %1922 = vst.msk [vmem:[#allocation8 + $0x10] sm:$0xf0] %vm1799_vm0, %v1920_v20  ;;  %v2688_v20 = vpack.c.bf16 %v2229_v15, %v2228_v14  ;;  %vm2165_vm0 = vcmask 519426  }
 0x3ff   : > { %v2106_v41 = vpop.permute.xlu0 %2105 }
 0x400   : > { %2109 = vst.msk [vmem:[#allocation9] sm:$0x3] %vm2108_vm6, %v2106_v41  ;;  %2689 = vmatpush3.bf16.msra.mxu1 %v2688_v20 }
 0x401   : > { %v1928_v21 = vpop.permute.xlu1 %1927  ;;  %2691 = vmatprep.subr.bf16.mxu1 %v2690_v28 }
 0x402   : > { %1930 = vst.msk [vmem:[#allocation8 + $0x10] sm:$0xf0] %vm1808_vm1, %v1928_v21  ;;  %vm2173_vm1 = vcmask 781826  }
 0x403   : > { %v2114_v44 = vpop.permute.xlu0 %2113 }
 0x405   : > { %v1936_v22 = vpop.permute.xlu1 %1935 }
 0x406   : > { %1938 = vst.msk [vmem:[#allocation8 + $0x10] sm:$0xf0] %vm1817_vm2, %v1936_v22  ;;  %vm2182_vm2 = vcmask 1044226  }
 0x409   : > { %v1944_v23 = vpop.permute.xlu1 %1943 }
 0x40a   : > { %1946 = vst.msk [vmem:[#allocation8 + $0x10] sm:$0xf0] %vm1826_vm3, %v1944_v23 }
 0x40d   : > { %v1952_v24 = vpop.permute.xlu1 %1951 }
 0x40e   : > { %1954 = vst.msk [vmem:[#allocation8 + $0x10] sm:$0xf0] %vm1835_vm7, %v1952_v24 }
 0x411   : > { %v1960_v25 = vpop.permute.xlu1 %1959 }
 0x412   : > { %1962 = vst.msk [vmem:[#allocation8 + $0x10] sm:$0xf0] %vm1844_vm9, %v1960_v25  ;;  %vm2116_vm9 = vcmask 779776  }
 0x413   : > { %2117 = vst.msk [vmem:[#allocation9] sm:$0x3] %vm2116_vm9, %v2114_v44 }
 0x419   : > { %v1971_v26 = vld [vmem:[#allocation8 + $0x10] sm:$0xff] }
 0x41a   : > { %2074 = vmatmul.mubr.f32.gmra.mrb[10].mxu0 %v1971_v26 }
 0x41b   : > { %2609 = vmatprep.mubr.msk.f32.mxu0 %vm2869_vm5, %v2854_v0 }
 0x4be   : > { %v2070_v36 = vpop.f32.mrb[8].mxu0 }
 0x4bf   : > { %v2071_v37 = vadd.f32 %v3742_v7, %v2070_v36  ;;  %v2072_v38 = vpop.f32.mrb[9].mxu0  ;;  %v2248_v36 = vld [vmem:[%s3926_s7 + $0xd0] sm:$0xff] }
 0x4c0   : > { %v2232_v38 = vld [vmem:[%s3926_s7 + $0x50] sm:$0xff] }
 0x4c1   : > { %v2081_v39 = vmul.f32 0.70710677, %v2071_v37  ;;  %v2079_v0 = vmul.f32 0.5, %v2071_v37  ;;  %v2249_v37 = vld [vmem:[%s3926_s7 + $0xd8] sm:$0xff] }
 0x4c3   : > { %2784 = verf.f32 %v2081_v39  ;;  %v2694_v39 = vpack.c.bf16 %v2249_v37, %v2248_v36 }
 0x4cd   : > { %v2785_v40 = vpop.eup %2784 }
 0x4ce   : > { %v2085_v42 = vadd.f32 1.0, %v2785_v40  ;;  %v2233_v40 = vld [vmem:[%s3926_s7 + $0x58] sm:$0xff] }
 0x4cf   : > { %v2696_v41 = vpack.c.bf16 %v2233_v40, %v2232_v38 }
 0x4d0   : > { %v2087_v43 = vmul.f32 %v2085_v42, %v2079_v0  ;;  %v2250_v0 = vld [vmem:[%s3926_s7 + $0xe0] sm:$0xff]  ;;  %v2251_v42 = vld [vmem:[%s3926_s7 + $0xe8] sm:$0xff] }
 0x4d1   : > { %v2698_v44 = vpack.c.bf16 %v2251_v42, %v2250_v0 }
 0x4d2   : > { %2089 = vst.msk [vmem:[#allocation12] sm:$0xff] %vm402_vm8, %v2087_v43  ;;  %v2234_v43 = vld [vmem:[%s3926_s7 + $0x60] sm:$0xff] }
 0x4d9   : > { %v2091_v45 = vld [vmem:[#allocation12] sm:$0xf]  ;;  %v2093_v46 = vld [vmem:[#allocation12 + $0x4] sm:$0xf] }
 0x4da   : > { %2092 = vst.msk [vmem:[#allocation5 + $0x7] sm:$0xf] %vm3962_vm10, %v2091_v45  ;;  %v2235_v45 = vld [vmem:[%s3926_s7 + $0x68] sm:$0xff] }
 0x4db   : > { %2094 = vst.msk [vmem:[#allocation5 + $0xd] sm:$0xf] %vm3963_vm11, %v2093_v46  ;;  %v2252_v46 = vld [vmem:[%s3926_s7 + $0xf0] sm:$0xff]  ;;  %v2700_v50 = vpack.c.bf16 %v2235_v45, %v2234_v43 }
 0x4dc   : > { %v2702_v51 = vpack.c.bf16 %v2253_v47, %v2252_v46 }
 0x4e1   : > { %v2130_v61 = vld [vmem:[#allocation5 + $0x8] ss:$2 sm:$0x3]  ;;  %v2127_v11 = vld [vmem:[#allocation5 + $0x7] ss:$2 sm:$0x3] }
 0x4e2   : > { %v2119_v62 = vld [vmem:[#allocation5 + $0x6] ss:$2 sm:$0x3]  ;;  %2132 = vrot.lane.b32.xlu1 %v2130_v61, %s3959_s24  ;;  %v2159_v1 = vld [vmem:[#allocation5 + $0xd] ss:$2 sm:$0x3] }
 0x4e3   : > { %2121 = vrot.lane.b32.xlu0 %v2119_v62, %s3956_s22  ;;  %v2137_v4 = vld [vmem:[#allocation5 + $0xc] ss:$2 sm:$0x3]  ;;  %v2161_v6 = vrot.slane %v2159_v1, 6  ;;  %2128 = vst.msk [vmem:[#allocation9 + $0x4] sm:$0x3] %vm2100_vm4, %v2127_v11 }
 0x4e4   : > { %v2151_v8 = vld [vmem:[#allocation5 + $0xe] ss:$2 sm:$0x3]  ;;  %v2144_v19 = vld [vmem:[#allocation5 + $0xd] ss:$2 sm:$0x3] }
 0x4e5   : > { %v2167_v60 = vld [vmem:[#allocation5 + $0xe] ss:$2 sm:$0x3]  ;;  %2152 = vst.msk [vmem:[#allocation9 + $0x8] sm:$0x3] %vm2100_vm4, %v2151_v8 }
 0x4e6   : > { %2139 = vrot.lane.b32.xlu1 %v2137_v4, %s3957_s23  ;;  %v2153_v13 = vld [vmem:[#allocation5 + $0xc] ss:$2 sm:$0x3]  ;;  %v2169_v18 = vrot.slane %v2167_v60, 6 }
 0x4e7   : > { %2162 = vrot.lane.b32.xlu0 %v2161_v6, %s3959_s24  ;;  %v2155_v16 = vrot.slane %v2153_v13, 6 }
 0x4e9   : > { %2158 = vst.msk [vmem:[#allocation9] sm:$0xc] %vm2157_vm12, %v2155_v16 }
 0x4ea   : > { %2146 = vrot.lane.b32.xlu1 %v2144_v19, %s3956_s22  ;;  %v2519_v19 = vld [vmem:[%s3927_s8] ss:$0 sm:$0xff] }
 0x4eb   : > { %2170 = vrot.lane.b32.xlu0 %v2169_v18, %s3957_s23 }
 0x4ed   : > { %v2075_v21 = vpop.f32.mrb[10].mxu0 }
 0x4ee   : > { %v2076_v22 = vadd.f32 %v3742_v7, %v2075_v21  ;;  %v2077_v23 = vpop.f32.mrb[11].mxu0  ;;  %v2692_v7 = vpack.c.bf16 %v2231_v33, %v2230_v32 }
 0x4f0   : > { %v2082_v24 = vmul.f32 0.70710677, %v2076_v22  ;;  %v2080_v26 = vmul.f32 0.5, %v2076_v22  ;;  %2693 = vmatpush3.bf16.msra.mxu1 %v2692_v7 }
 0x4f1   : > { %2695 = vmatprep.subr.bf16.mxu1 %v2694_v39 }
 0x4f2   : > { %2786 = verf.f32 %v2082_v24 }
 0x4f4   : > { %2697 = vmatpush3.bf16.msra.mxu1 %v2696_v41 }
 0x4f5   : > { %2699 = vmatprep.subr.bf16.mxu1 %v2698_v44 }
 0x4f8   : > { %2701 = vmatpush3.bf16.msra.mxu1 %v2700_v50 }
 0x4f9   : > { %2703 = vmatprep.subr.bf16.mxu1 %v2702_v51 }
 0x4fc   : > { %v2787_v25 = vpop.eup %2786  ;;  %2705 = vmatpush3.bf16.msra.mxu1 %v2704_v59 }
 0x4fd   : > { %v2086_v27 = vadd.f32 1.0, %v2787_v25 }
 0x4ff   : > { %v2088_v29 = vmul.f32 %v2086_v27, %v2080_v26 }
 0x501   : > { %2090 = vst.msk [vmem:[#allocation12 + $0x8] sm:$0xff] %vm402_vm8, %v2088_v29 }
 0x508   : > { %v2095_v34 = vld [vmem:[#allocation12 + $0x8] sm:$0xf]  ;;  %v2097_v35 = vld [vmem:[#allocation12 + $0xc] sm:$0xf] }
 0x509   : > { %2096 = vst.msk [vmem:[#allocation5 + $0x13] sm:$0xf] %vm3964_vm13, %v2095_v34 }
 0x50a   : > { %2098 = vst.msk [vmem:[#allocation5 + $0x19] sm:$0xf] %vm3965_vm14, %v2097_v35 }
 0x510   : > { %v2191_v48 = vld [vmem:[#allocation5 + $0x14] ss:$2 sm:$0x3]  ;;  %v2185_v61 = vld [vmem:[#allocation5 + $0x13] ss:$2 sm:$0x3] }
 0x511   : > { %v2176_v49 = vld [vmem:[#allocation5 + $0x12] ss:$2 sm:$0x3]  ;;  %v2193_v52 = vrot.slane %v2191_v48, 6  ;;  %v2187_v63 = vrot.slane %v2185_v61, 6 }
 0x512   : > { %v2178_v53 = vrot.slane %v2176_v49, 6  ;;  %v2199_v54 = vld [vmem:[#allocation5 + $0x18] ss:$2 sm:$0x3] }
 0x513   : > { %v2215_v56 = vld [vmem:[#allocation5 + $0x1a] ss:$2 sm:$0x3]  ;;  %2194 = vrot.lane.b32.xlu1 %v2193_v52, %s3959_s24  ;;  %v2201_v62 = vrot.slane %v2199_v54, 6  ;;  %2189 = vst.msk [vmem:[#allocation9 + $0x4] sm:$0xc] %vm2157_vm12, %v2187_v63 }
 0x514   : > { %2179 = vrot.lane.b32.xlu0 %v2178_v53, %s3956_s22  ;;  %v2217_v58 = vrot.slane %v2215_v56, 6  ;;  %v2207_v1 = vld [vmem:[#allocation5 + $0x19] ss:$2 sm:$0x3]  ;;  %s323_s24 = sand.u32 1, %s2844_s10  }
 0x515   : > { %v2209_v2 = vrot.slane %v2207_v1, 6  ;;  %s2494_s17 = sshll.u32 %s323_s24, 2  ;;  %s2418_s14 = scalar_lea.sflag [#allocation14], %s323_s24 }
 0x516   : > { %2219 = vst.msk [vmem:[#allocation9 + $0x8] sm:$0xc] %vm2157_vm12, %v2217_v58  ;;  %s325_s26 = scalar_lea.vmem [#allocation13], %s2494_s17 }
 0x517   : > { %2202 = vrot.lane.b32.xlu1 %v2201_v62, %s3957_s23  ;;  %s2431_s1 = sshll.u32 %s325_s26, 4  ;;  %s3878_s1 = int_to_ptr.vmem [resolvable:$true] %s2431_s1 }
 0x518   : > { %s2790_s25 = scalar_lea.vmem %s3878_s1, 64  ;;  %p2797_p0 = scmp.lt.s32.totalorder %s3878_s1, %s2795_s0 }
 0x519   : > { %p2791_p11 = scmp.ne.s32.totalorder %s3878_s1, %s2790_s25  ;;  %p2798_p1 = scmp.lt.s32.totalorder %s2796_s29, %s2790_s25 }
 0x51b   : > { %2210 = vrot.lane.b32.xlu1 %v2209_v2, %s3956_s22  ;;  %p2792_p12 = pnand %p2791_p11, %p2959_p5  ;;  %p2799_p2 = por %p2798_p1, %p2797_p0 }
 0x51d   : > { %v2221_v3 = vld [vmem:[#allocation9 + $0x8] sm:$0xf]  ;;  %p2793_p13 = pneg %p2792_p12 }
 0x51e   : > { %2610 = vmatmul.mubr.msk.f32.vlgmr.msra.gmra.mrb[12].mxu0 %vm402_vm8, %v2221_v3  ;;  %vm3966_vm8 = vmmov %vm3962_vm10 }
 0x51f   : > { %p2800_p3 = pnand %p2799_p2, %p2793_p13 }
 0x554   : > { %v2133_v5 = vpop.permute.xlu1 %2132 }
 0x555   : > { %v2122_v4 = vpop.permute.xlu0 %2121  ;;  %2135 = vst.msk [vmem:[#allocation9 + $0x4] sm:$0x3] %vm2108_vm6, %v2133_v5 }
 0x556   : > { %2125 = vst.msk [vmem:[#allocation9] sm:$0x3] %vm2124_vm15, %v2122_v4 }
 0x558   : > { %v2140_v8 = vpop.permute.xlu1 %2139 }
 0x559   : > { %v2163_v6 = vpop.permute.xlu0 %2162  ;;  %2142 = vst.msk [vmem:[#allocation9 + $0x4] sm:$0x3] %vm2116_vm9, %v2140_v8 }
 0x55a   : > { %2166 = vst.msk [vmem:[#allocation9] sm:$0xc] %vm2165_vm0, %v2163_v6 }
 0x55c   : > { %v2147_v10 = vpop.permute.xlu1 %2146 }
 0x55d   : > { %v2171_v9 = vpop.permute.xlu0 %2170  ;;  %2149 = vst.msk [vmem:[#allocation9 + $0x4] sm:$0x3] %vm2124_vm15, %v2147_v10 }
 0x55e   : > { %2174 = vst.msk [vmem:[#allocation9] sm:$0xc] %vm2173_vm1, %v2171_v9 }
 0x585   : > { %v2195_v11 = vpop.permute.xlu1 %2194 }
 0x586   : > { %v2180_v60 = vpop.permute.xlu0 %2179  ;;  %2197 = vst.msk [vmem:[#allocation9 + $0x4] sm:$0xc] %vm2165_vm0, %v2195_v11 }
 0x587   : > { %2183 = vst.msk [vmem:[#allocation9] sm:$0xc] %vm2182_vm2, %v2180_v60 }
 0x589   : > { %v2203_v12 = vpop.permute.xlu1 %2202 }
 0x58a   : > { %2205 = vst.msk [vmem:[#allocation9 + $0x4] sm:$0xc] %vm2173_vm1, %v2203_v12 }
 0x58d   : > { %v2211_v13 = vpop.permute.xlu1 %2210 }
 0x58e   : > { %2213 = vst.msk [vmem:[#allocation9 + $0x4] sm:$0xc] %vm2182_vm2, %v2211_v13 }
 0x595   : > { %v2220_v14 = vld [vmem:[#allocation9] sm:$0xff] }
 0x596   : > { %v2267_v15 = vcombine.high %v2220_v14, %v2220_v14 }
 0x598   : > { %2335 = vmatprep.mubr.f32.mxu1 %v2267_v15 }
 0x599   : > { %2336 = vmatmul.mubr.f32.vlgmr.msra.gmra.mrb[16].mxu1 %v2220_v14 }
 0x5f1   : > { %v2407_v16 = vpop.f32.mrb[12].mxu0 }
 0x5f2   : > { %v2611_v17 = vpop.f32.mrb[13].mxu0 }
 0x66c   : > { %v2571_v18 = vpop.f32.mrb[16].mxu1 }
 0x66d   : > { %v2572_v20 = vpop.f32.mrb[17].mxu1 }
 0x66e   : > { %v2573_v21 = vadd.f32 %v2572_v20, %v2571_v18 }
 0x670   : > { %v2338_v22 = vadd.f32 %v2573_v21, %v2519_v19 }
 0x672   : > { %v2408_v23 = vadd.f32 %v2407_v16, %v2338_v22 }
 0x674   : > { %v2412_v24 = vmul.f32 0.70710677, %v2408_v23  ;;  %v2411_v26 = vmul.f32 0.5, %v2408_v23 }
 0x676   : > { %2788 = verf.f32 %v2412_v24 }
 0x680   : > { %v2789_v25 = vpop.eup %2788 }
 0x681   : > { %v2414_v27 = vadd.f32 1.0, %v2789_v25 }
 0x683   : > { %v2415_v29 = vmul.f32 %v2414_v27, %v2411_v26 }
 0x685   : > { %2416 = vst.msk [vmem:[%s325_s26] sm:$0xf] %vm3966_vm8, %v2415_v29 }
 0x686   : > { %2803 = shalt.err (!%p2800_p3)
}
 0x687   : > { %s2804_s22 = scalar_lea.hbm %s3876_s21, 64  ;;  %s2808_s17 = scalar_lea.hbm %s3928_s9, 128 }
 0x688   : > { %p2805_p4 = scmp.ne.s32.totalorder %s3876_s21, %s2804_s22  ;;  %p2809_p9 = scmp.lt.u32.totalorder %s3876_s21, %s3928_s9 }
 0x689   : > { %p2810_p10 = scmp.lt.u32.totalorder %s2808_s17, %s2804_s22  ;;  %p2812_p12 = scmp.lt.u32.totalorder %s2804_s22, %s3876_s21 }
 0x68a   : > { %p2806_p7 = pnand %p2805_p4, %p2959_p5 }
 0x68b   : > { %p2811_p11 = por %p2810_p10, %p2809_p9 }
 0x68c   : > { %p2807_p8 = pneg %p2806_p7 }
 0x68d   : > { %p2813_p13 = por %p2812_p12, %p2811_p11 }
 0x68f   : > { %p2814_p0 = pnand %p2813_p13, %p2807_p8 }
 0x691   : > { %2817 = shalt.err (!%p2814_p0)
}
 0x692   : > { %2712 = dma.vmem_to_hbm [thread:$0]  (%p2959_p5), %s3878_s1, 64, %s3876_s21, %s2418_s14  }
 0x693 PF: > { %p2718_p1 = scmp.ge.s32.totalorder %s2852_s12, 2  ;;  %s2443_s16 = sand.u32 1, %s2840_s30  }
 0x694   : > { %s2444_s28 = scalar_lea.sflag [#allocation14], %s2443_s16 }
 0x695   : > { %p2715_p2 = pnand %p2718_p1, %p2963_p6 }
 0x697   : > { %2835 = dma.done.wait (!%p2715_p2), %s2444_s28, 64  }
 0x698   : > { %2837 = vsyncadd (!%p2715_p2), %s2444_s28, 4294967232  ;;  %p19_p3 = scmp.ge.s32.totalorder %s2946_s15, 4   ;;  %s3967_s30 = smov %s2844_s10 }
 0x699   : > { %s3968_s10 = smov %s2848_s11  ;;  %s3969_s11 = smov %s2957_s18 }
 0x69a   : > { %s3970_s12 = smov %s2946_s15  ;;  %21 = sbr.rel (!%p19_p3) target bundleno = 6 (0x6), region = 181 }
 0x6a1   :  { %2449 = vsyncpa [#allocation14], 1 }
 0x6a2   :  { %2451 = vsyncpa [#allocation14 + $0x1], 1 }

</bundles_post_ra>
